<compile_context>
chip_gen: v7x
topology: tpu7x:2x2x1
jax: 0.10.0
libtpu: 0.0.40
codegen_flags: <defaults>
</compile_context>

<pallas_src>
import math

import jax
import jax.numpy as jnp
from jax.experimental import pallas as pl
from jax.experimental.pallas import tpu as pltpu

HID1, HID2, HID3 = 1024, 512, 256


def _round_up(x, m):
    return ((x + m - 1) // m) * m


def _leaky(v):
    # LeakyReLU(0.1) as a single max: fewer VPU ops / live vregs than where().
    return jnp.maximum(v, 0.1 * v)


def _const_spec(block_shape):
    """BlockSpec for a VMEM-resident operand (constant block index).

    Uses pl.Buffered(1) to avoid double-buffering weights whose block index
    never changes; falls back to a plain spec if the kwarg is unavailable.
    """
    index_map = lambda *_: (0,) * len(block_shape)
    try:
        return pl.BlockSpec(block_shape, index_map, pipeline_mode=pl.Buffered(1))
    except (TypeError, AttributeError):
        return pl.BlockSpec(block_shape, index_map)


# ---------------------------------------------------------------------------
# Kernel bodies.
# ---------------------------------------------------------------------------
def _tail(h1, w2_ref, b2_ref, w3_ref, b3_ref, w4_ref, b4_ref, out_ref):
    """Layers 2-4 given the f32 post-LeakyReLU layer-1 activation h1."""
    h = _leaky(jnp.dot(h1.astype(jnp.bfloat16), w2_ref[...],
                       preferred_element_type=jnp.float32) + b2_ref[...])
    h = _leaky(jnp.dot(h.astype(jnp.bfloat16), w3_ref[...],
                       preferred_element_type=jnp.float32) + b3_ref[...])
    out = jnp.dot(h.astype(jnp.bfloat16), w4_ref[...],
                  preferred_element_type=jnp.float32) + b4_ref[...]
    out_ref[...] = out.astype(out_ref.dtype)


def _facemlp_resident_kernel(x_ref, w1_ref, b1_ref, w2_ref, b2_ref,
                             w3_ref, b3_ref, w4_ref, b4_ref, out_ref):
    """All four layers in one grid step; w1 is VMEM-resident (no K tiling)."""
    h1 = _leaky(jnp.dot(x_ref[...], w1_ref[...],
                        preferred_element_type=jnp.float32) + b1_ref[...])
    _tail(h1, w2_ref, b2_ref, w3_ref, b3_ref, w4_ref, b4_ref, out_ref)


def _facemlp_ktiled_kernel(x_ref, w1_ref, b1_ref, w2_ref, b2_ref,
                           w3_ref, b3_ref, w4_ref, b4_ref, out_ref, acc_ref):
    """Layer-1 reduction tiled over K (>= 2 K tiles); layers 2-4 in epilogue.

    The last K-tile partial product is consumed directly (no acc round-trip).
    """
    k = pl.program_id(1)
    last = pl.num_programs(1) - 1

    partial = jnp.dot(x_ref[...], w1_ref[...],
                      preferred_element_type=jnp.float32)

    @pl.when(k == 0)
    def _():
        acc_ref[...] = partial

    @pl.when(jnp.logical_and(k > 0, k < last))
    def _():
        acc_ref[...] += partial

    @pl.when(k == last)
    def _():
        h1 = _leaky(acc_ref[...] + partial + b1_ref[...])
        _tail(h1, w2_ref, b2_ref, w3_ref, b3_ref, w4_ref, b4_ref, out_ref)


# ---------------------------------------------------------------------------
# Parameter construction (matches nn.Module __init__ shapes; Linear weights
# xavier_uniform_, biases zero). BN running stats get non-trivial
# "trained-looking" values so the BN->Linear fold is actually exercised.
# ---------------------------------------------------------------------------
def init_facemlp_params(key, input_size, num_classes, dtype=jnp.float32):
    dims = [input_size, HID1, HID2, HID3, num_classes]
    params = {}
    keys = jax.random.split(key, 16)
    ki = 0
    for i in range(4):
        fan_in, fan_out = dims[i], dims[i + 1]
        bound = math.sqrt(6.0 / (fan_in + fan_out))      # xavier_uniform_
        params[f"w{i+1}"] = jax.random.uniform(
            keys[ki], (fan_in, fan_out), minval=-bound, maxval=bound, dtype=dtype)
        ki += 1
        params[f"b{i+1}"] = jnp.zeros((fan_out,), dtype=dtype)
        if i < 3:
            params[f"gamma{i+1}"] = 1.0 + 0.1 * jax.random.normal(
                keys[ki], (fan_out,), dtype=dtype); ki += 1
            params[f"beta{i+1}"] = 0.1 * jax.random.normal(
                keys[ki], (fan_out,), dtype=dtype); ki += 1
            params[f"mean{i+1}"] = 0.1 * jax.random.normal(
                keys[ki], (fan_out,), dtype=dtype); ki += 1
            params[f"var{i+1}"] = 1.0 + 0.5 * jax.random.uniform(
                keys[ki], (fan_out,), dtype=dtype); ki += 1
    return params


# ---------------------------------------------------------------------------
# Fold eval-mode BatchNorm into the next Linear, pad, and cast for the kernel.
#   s_i = gamma_i / sqrt(var_i + eps), t_i = beta_i - mean_i * s_i
#   b_{i+1} <- b_{i+1} + t_i @ W_{i+1};  W_{i+1} <- diag(s_i) @ W_{i+1}
# ---------------------------------------------------------------------------
def prepare_fused_params(params, input_size, num_classes, *, f_pad, c_pad,
                         eps=1e-5):
    w = [params[f"w{i}"] for i in range(1, 5)]
    b = [params[f"b{i}"] for i in range(1, 5)]
    for i in range(3):
        s = params[f"gamma{i+1}"] / jnp.sqrt(params[f"var{i+1}"] + eps)
        t = params[f"beta{i+1}"] - params[f"mean{i+1}"] * s
        b[i + 1] = b[i + 1] + t @ w[i + 1]     # uses the un-scaled W_{i+1}
        w[i + 1] = w[i + 1] * s[:, None]
    # Zero-pad layer-1 input features (rows of w1) to the K tiling.
    w[0] = jnp.pad(w[0], ((0, f_pad - input_size), (0, 0)))
    # Zero-pad output lanes (cols of w4 / b4) to a multiple of 128.
    w[3] = jnp.pad(w[3], ((0, 0), (0, c_pad - num_classes)))
    b[3] = jnp.pad(b[3], ((0, c_pad - num_classes),))
    fused = {}
    for i in range(4):
        fused[f"w{i+1}"] = w[i].astype(jnp.bfloat16)
        fused[f"b{i+1}"] = b[i].reshape(1, -1).astype(jnp.float32)
    return fused


# ---------------------------------------------------------------------------
# Wrapper: flatten NCHW, pad batch/features/classes, launch the gridded kernel.
# ---------------------------------------------------------------------------
def face_mlp_forward(x_nchw, params, num_classes, *, tm=512, tk=1024,
                     resident_w1_limit_bytes=24 << 20):
    n = x_nchw.shape[0]
    x_flat = x_nchw.reshape(n, -1)            # nn.Flatten()
    f = x_flat.shape[1]

    c_pad = _round_up(num_classes, 128)

    # Size the batch tile to the REAL batch; never burn MXU flops on padding.
    tm = max(8, min(tm, _round_up(n, 8)))
    n_pad = _round_up(n, tm)
    # v7x megacore: if there is only one batch tile but it is splittable at the
    # 8-row sublane granularity, split it so both TensorCores get work.
    if n_pad // tm == 1 and tm >= 16:
        tm = max(8, _round_up((tm + 1) // 2, 8))
        n_pad = _round_up(n, tm)
    n_batch_tiles = n_pad // tm

    # Choose resident-w1 path vs K-tiled path.
    f_pad_res = _round_up(f, 128)
    use_resident = f_pad_res * HID1 * 2 <= resident_w1_limit_bytes
    if use_resident:
        f_pad = f_pad_res
        nk = 1
    else:
        tk = min(tk, _round_up(f, 128))
        f_pad = _round_up(f, tk)
        nk = f_pad // tk
        if nk < 2:                      # K-tiled kernel assumes >= 2 K steps
            use_resident = True
            f_pad = f_pad_res
            nk = 1

    fused = prepare_fused_params(params, f, num_classes, f_pad=f_pad, c_pad=c_pad)

    # Pad once, cast to bf16 once (single extra XLA pass over x).
    x_p = jnp.pad(x_flat, ((0, n_pad - n), (0, f_pad - f))).astype(jnp.bfloat16)

    operands = (x_p,
                fused["w1"], fused["b1"], fused["w2"], fused["b2"],
                fused["w3"], fused["b3"], fused["w4"], fused["b4"])

    # Cost estimate (truthful DMA bytes: w1 is re-streamed per batch tile only
    # on the K-tiled path).
    flops = 2 * n_pad * (f_pad * HID1 + HID1 * HID2 + HID2 * HID3 + HID3 * c_pad)
    small_weight_bytes = (HID1 * HID2 + HID2 * HID3 + HID3 * c_pad) * 2
    bias_bytes = (HID1 + HID2 + HID3 + c_pad) * 4
    x_bytes = n_pad * f_pad * 2
    out_bytes = n_pad * c_pad * 4
    w1_bytes = f_pad * HID1 * 2
    if not use_resident:
        w1_bytes *= n_batch_tiles
    cost = pl.CostEstimate(
        flops=flops, transcendentals=0,
        bytes_accessed=x_bytes + w1_bytes + small_weight_bytes + bias_bytes
        + out_bytes)

    # Explicit VMEM limit: rough per-path estimate + headroom, clamped to a
    # range that is safe on v5e (16 MiB scoped default) through v6e (128 MiB).
    resident_weight_vmem = 2 * (small_weight_bytes + bias_bytes)
    if use_resident:
        stream_vmem = 2 * tm * f_pad * 2 + 2 * f_pad * HID1 * 2
        acc_vmem = 0
    else:
        stream_vmem = 2 * tm * tk * 2 + 2 * tk * HID1 * 2
        acc_vmem = tm * HID1 * 4
    epilogue_vmem = 4 * tm * HID1 * 4 + 2 * tm * c_pad * 4
    vmem_limit = int(min(128 << 20,
                         max(32 << 20,
                             resident_weight_vmem + stream_vmem + acc_vmem
                             + epilogue_vmem + (8 << 20))))

    if use_resident:
        grid = (n_batch_tiles,)
        in_specs = [
            pl.BlockSpec((tm, f_pad), lambda i: (i, 0)),      # x: batch tiled
            _const_spec((f_pad, HID1)), _const_spec((1, HID1)),   # w1/b1 resident
            _const_spec((HID1, HID2)), _const_spec((1, HID2)),    # w2/b2 resident
            _const_spec((HID2, HID3)), _const_spec((1, HID3)),    # w3/b3 resident
            _const_spec((HID3, c_pad)), _const_spec((1, c_pad)),  # w4/b4 resident
        ]
        out_spec = pl.BlockSpec((tm, c_pad), lambda i: (i, 0))
        scratch = []
        kernel = _facemlp_resident_kernel
        dims = ("parallel",)
    else:
        grid = (n_batch_tiles, nk)
        in_specs = [
            pl.BlockSpec((tm, tk), lambda i, k: (i, k)),      # x: batch/K tiled
            pl.BlockSpec((tk, HID1), lambda i, k: (k, 0)),    # w1: K tiled
            _const_spec((1, HID1)),
            _const_spec((HID1, HID2)), _const_spec((1, HID2)),
            _const_spec((HID2, HID3)), _const_spec((1, HID3)),
            _const_spec((HID3, c_pad)), _const_spec((1, c_pad)),
        ]
        out_spec = pl.BlockSpec((tm, c_pad), lambda i, k: (i, 0))
        scratch = [pltpu.VMEM((tm, HID1), jnp.float32)]
        kernel = _facemlp_ktiled_kernel
        dims = ("parallel", "arbitrary")

    out_pad = pl.pallas_call(
        kernel,
        out_shape=jax.ShapeDtypeStruct((n_pad, c_pad), jnp.float32),
        grid_spec=pltpu.PrefetchScalarGridSpec(
            num_scalar_prefetch=0,
            grid=grid,
            in_specs=in_specs,
            out_specs=out_spec,
            scratch_shapes=scratch,
        ),
        compiler_params=pltpu.CompilerParams(
            dimension_semantics=dims,
            vmem_limit_bytes=vmem_limit,
        ),
        cost_estimate=cost,
    )(*operands)

    return out_pad[:n, :num_classes]


# ---------------------------------------------------------------------------
# Pure-JAX f32 reference of the original (un-fused) eval-mode semantics.
# ---------------------------------------------------------------------------
def face_mlp_reference(x_nchw, params, eps=1e-5):
    n = x_nchw.shape[0]
    h = x_nchw.reshape(n, -1).astype(jnp.float32)
    for i in (1, 2, 3):
        h = h @ params[f"w{i}"] + params[f"b{i}"]
        h = jnp.where(h > 0, h, 0.1 * h)
        s = params[f"gamma{i}"] / jnp.sqrt(params[f"var{i}"] + eps)
        t = params[f"beta{i}"] - params[f"mean{i}"] * s
        h = h * s + t
        # Dropout: identity in eval mode.
    return h @ params["w4"] + params["b4"]


if __name__ == "__main__":
    key = jax.random.PRNGKey(0)
    k_param, k_input = jax.random.split(key)

    # Small, shape-consistent example: 4x16x16 "face crops" -> input_size=1024.
    batch, channels, height, width = 8, 4, 16, 16
    input_size = channels * height * width
    num_classes = 10

    params = init_facemlp_params(k_param, input_size, num_classes)
    x = jax.random.normal(
        k_input, (batch, channels, height, width), dtype=jnp.float32
    )
    ref = face_mlp_reference(x, params)

    # Default (resident-w1) path.
    out = face_mlp_forward(x, params, num_classes)
    out = jax.block_until_ready(out)
    assert out.shape == (batch, num_classes)
    max_err = float(jnp.max(jnp.abs(out - ref)))
    # bf16 MXU matmuls vs pure-f32 reference -> tolerances are loose on purpose.
    assert jnp.allclose(out, ref, atol=5e-2, rtol=5e-2), f"max err {max_err}"

    # Force the K-tiled path (2 K tiles of 512) to exercise the accumulator
    # variant at the same small shapes.
    out_kt = face_mlp_forward(x, params, num_classes, tk=512,
                              resident_w1_limit_bytes=0)
    out_kt = jax.block_until_ready(out_kt)
    max_err_kt = float(jnp.max(jnp.abs(out_kt - ref)))
    assert jnp.allclose(out_kt, ref, atol=5e-2, rtol=5e-2), \
        f"max err {max_err_kt}"

    print("KERNEL_OK")
</pallas_src>

<mosaic_0001>
module attributes {stable_mosaic.version = 11 : i64} {
  func.func @_facemlp_resident_kernel(%arg0: i32, %arg1: memref<8x1024xbf16, #tpu.memory_space<vmem>>, %arg2: memref<1024x1024xbf16, #tpu.memory_space<vmem>>, %arg3: memref<1x1024xf32, #tpu.memory_space<vmem>>, %arg4: memref<1024x512xbf16, #tpu.memory_space<vmem>>, %arg5: memref<1x512xf32, #tpu.memory_space<vmem>>, %arg6: memref<512x256xbf16, #tpu.memory_space<vmem>>, %arg7: memref<1x256xf32, #tpu.memory_space<vmem>>, %arg8: memref<256x128xbf16, #tpu.memory_space<vmem>>, %arg9: memref<1x128xf32, #tpu.memory_space<vmem>>, %arg10: memref<8x128xf32, #tpu.memory_space<vmem>>) attributes {dimension_semantics = [#tpu.dimension_semantics<parallel>], iteration_bounds = array<i64: 1>, scalar_prefetch = 0 : i64, scratch_operands = 0 : i64, tpu.core_type = #tpu.core_type<tc>, window_params = [{transform_indices = @transform_0, window_bounds = array<i64: 8, 1024>}, {pipeline_mode = #tpu.pipeline_mode<synchronous>, transform_indices = @transform_1, window_bounds = array<i64: 1024, 1024>}, {pipeline_mode = #tpu.pipeline_mode<synchronous>, transform_indices = @transform_2, window_bounds = array<i64: 1, 1024>}, {pipeline_mode = #tpu.pipeline_mode<synchronous>, transform_indices = @transform_3, window_bounds = array<i64: 1024, 512>}, {pipeline_mode = #tpu.pipeline_mode<synchronous>, transform_indices = @transform_4, window_bounds = array<i64: 1, 512>}, {pipeline_mode = #tpu.pipeline_mode<synchronous>, transform_indices = @transform_5, window_bounds = array<i64: 512, 256>}, {pipeline_mode = #tpu.pipeline_mode<synchronous>, transform_indices = @transform_6, window_bounds = array<i64: 1, 256>}, {pipeline_mode = #tpu.pipeline_mode<synchronous>, transform_indices = @transform_7, window_bounds = array<i64: 256, 128>}, {pipeline_mode = #tpu.pipeline_mode<synchronous>, transform_indices = @transform_8, window_bounds = array<i64: 1, 128>}, {transform_indices = @transform_9, window_bounds = array<i64: 8, 128>}]} {
    %c0 = arith.constant 0 : index
    %c0_0 = arith.constant 0 : index
    %0 = vector.load %arg1[%c0, %c0_0] : memref<8x1024xbf16, #tpu.memory_space<vmem>>, vector<8x1024xbf16>
    %c0_1 = arith.constant 0 : index
    %c0_2 = arith.constant 0 : index
    %1 = vector.load %arg2[%c0_1, %c0_2] : memref<1024x1024xbf16, #tpu.memory_space<vmem>>, vector<1024x1024xbf16>
    %cst = arith.constant dense<0.000000e+00> : vector<8x1024xf32>
    %2 = tpu.matmul %0, %1, %cst {dimension_numbers = #tpu.dot_dimension_numbers<[1], [0], [0], [1], [0, 0, 1, 1], [], []>} : vector<8x1024xbf16>, vector<1024x1024xbf16>, vector<8x1024xf32> -> vector<8x1024xf32>
    %c0_3 = arith.constant 0 : index
    %c0_4 = arith.constant 0 : index
    %3 = vector.load %arg3[%c0_3, %c0_4] : memref<1x1024xf32, #tpu.memory_space<vmem>>, vector<1x1024xf32>
    %4 = vector.broadcast %3 : vector<1x1024xf32> to vector<8x1024xf32>
    %5 = arith.addf %2, %4 : vector<8x1024xf32>
    %cst_5 = arith.constant 1.000000e-01 : f32
    %6 = vector.broadcast %cst_5 : f32 to vector<8x1024xf32>
    %7 = arith.mulf %6, %5 : vector<8x1024xf32>
    %8 = arith.maximumf %5, %7 : vector<8x1024xf32>
    %9 = arith.truncf %8 : vector<8x1024xf32> to vector<8x1024xbf16>
    %c0_6 = arith.constant 0 : index
    %c0_7 = arith.constant 0 : index
    %10 = vector.load %arg4[%c0_6, %c0_7] : memref<1024x512xbf16, #tpu.memory_space<vmem>>, vector<1024x512xbf16>
    %cst_8 = arith.constant dense<0.000000e+00> : vector<8x512xf32>
    %11 = tpu.matmul %9, %10, %cst_8 {dimension_numbers = #tpu.dot_dimension_numbers<[1], [0], [0], [1], [0, 0, 1, 1], [], []>} : vector<8x1024xbf16>, vector<1024x512xbf16>, vector<8x512xf32> -> vector<8x512xf32>
    %c0_9 = arith.constant 0 : index
    %c0_10 = arith.constant 0 : index
    %12 = vector.load %arg5[%c0_9, %c0_10] : memref<1x512xf32, #tpu.memory_space<vmem>>, vector<1x512xf32>
    %13 = vector.broadcast %12 : vector<1x512xf32> to vector<8x512xf32>
    %14 = arith.addf %11, %13 : vector<8x512xf32>
    %cst_11 = arith.constant 1.000000e-01 : f32
    %15 = vector.broadcast %cst_11 : f32 to vector<8x512xf32>
    %16 = arith.mulf %15, %14 : vector<8x512xf32>
    %17 = arith.maximumf %14, %16 : vector<8x512xf32>
    %18 = arith.truncf %17 : vector<8x512xf32> to vector<8x512xbf16>
    %c0_12 = arith.constant 0 : index
    %c0_13 = arith.constant 0 : index
    %19 = vector.load %arg6[%c0_12, %c0_13] : memref<512x256xbf16, #tpu.memory_space<vmem>>, vector<512x256xbf16>
    %cst_14 = arith.constant dense<0.000000e+00> : vector<8x256xf32>
    %20 = tpu.matmul %18, %19, %cst_14 {dimension_numbers = #tpu.dot_dimension_numbers<[1], [0], [0], [1], [0, 0, 1, 1], [], []>} : vector<8x512xbf16>, vector<512x256xbf16>, vector<8x256xf32> -> vector<8x256xf32>
    %c0_15 = arith.constant 0 : index
    %c0_16 = arith.constant 0 : index
    %21 = vector.load %arg7[%c0_15, %c0_16] : memref<1x256xf32, #tpu.memory_space<vmem>>, vector<1x256xf32>
    %22 = vector.broadcast %21 : vector<1x256xf32> to vector<8x256xf32>
    %23 = arith.addf %20, %22 : vector<8x256xf32>
    %cst_17 = arith.constant 1.000000e-01 : f32
    %24 = vector.broadcast %cst_17 : f32 to vector<8x256xf32>
    %25 = arith.mulf %24, %23 : vector<8x256xf32>
    %26 = arith.maximumf %23, %25 : vector<8x256xf32>
    %27 = arith.truncf %26 : vector<8x256xf32> to vector<8x256xbf16>
    %c0_18 = arith.constant 0 : index
    %c0_19 = arith.constant 0 : index
    %28 = vector.load %arg8[%c0_18, %c0_19] : memref<256x128xbf16, #tpu.memory_space<vmem>>, vector<256x128xbf16>
    %cst_20 = arith.constant dense<0.000000e+00> : vector<8x128xf32>
    %29 = tpu.matmul %27, %28, %cst_20 {dimension_numbers = #tpu.dot_dimension_numbers<[1], [0], [0], [1], [0, 0, 1, 1], [], []>} : vector<8x256xbf16>, vector<256x128xbf16>, vector<8x128xf32> -> vector<8x128xf32>
    %c0_21 = arith.constant 0 : index
    %c0_22 = arith.constant 0 : index
    %30 = vector.load %arg9[%c0_21, %c0_22] : memref<1x128xf32, #tpu.memory_space<vmem>>, vector<1x128xf32>
    %31 = vector.broadcast %30 : vector<1x128xf32> to vector<8x128xf32>
    %32 = arith.addf %29, %31 : vector<8x128xf32>
    %c0_23 = arith.constant 0 : index
    %c0_24 = arith.constant 0 : index
    %33 = vector.load %arg10[%c0_23, %c0_24] : memref<8x128xf32, #tpu.memory_space<vmem>>, vector<8x128xf32>
    tpu.vector_store %arg10[%c0_23, %c0_24], %32 {strides = array<i32>} : memref<8x128xf32, #tpu.memory_space<vmem>>, vector<8x128xf32>,
    return
  }
  func.func @transform_0(%arg0: i32) -> (i32, i32) {
    %c0_i32 = arith.constant 0 : i32
    %c0_i32_0 = arith.constant 0 : i32
    return %arg0, %c0_i32 : i32, i32
  }
  func.func @transform_1(%arg0: i32) -> (i32, i32) {
    %c0_i32 = arith.constant 0 : i32
    %c0_i32_0 = arith.constant 0 : i32
    %c0_i32_1 = arith.constant 0 : i32
    return %c0_i32, %c0_i32_0 : i32, i32
  }
  func.func @transform_2(%arg0: i32) -> (i32, i32) {
    %c0_i32 = arith.constant 0 : i32
    %c0_i32_0 = arith.constant 0 : i32
    %c0_i32_1 = arith.constant 0 : i32
    return %c0_i32, %c0_i32_0 : i32, i32
  }
  func.func @transform_3(%arg0: i32) -> (i32, i32) {
    %c0_i32 = arith.constant 0 : i32
    %c0_i32_0 = arith.constant 0 : i32
    %c0_i32_1 = arith.constant 0 : i32
    return %c0_i32, %c0_i32_0 : i32, i32
  }
  func.func @transform_4(%arg0: i32) -> (i32, i32) {
    %c0_i32 = arith.constant 0 : i32
    %c0_i32_0 = arith.constant 0 : i32
    %c0_i32_1 = arith.constant 0 : i32
    return %c0_i32, %c0_i32_0 : i32, i32
  }
  func.func @transform_5(%arg0: i32) -> (i32, i32) {
    %c0_i32 = arith.constant 0 : i32
    %c0_i32_0 = arith.constant 0 : i32
    %c0_i32_1 = arith.constant 0 : i32
    return %c0_i32, %c0_i32_0 : i32, i32
  }
  func.func @transform_6(%arg0: i32) -> (i32, i32) {
    %c0_i32 = arith.constant 0 : i32
    %c0_i32_0 = arith.constant 0 : i32
    %c0_i32_1 = arith.constant 0 : i32
    return %c0_i32, %c0_i32_0 : i32, i32
  }
  func.func @transform_7(%arg0: i32) -> (i32, i32) {
    %c0_i32 = arith.constant 0 : i32
    %c0_i32_0 = arith.constant 0 : i32
    %c0_i32_1 = arith.constant 0 : i32
    return %c0_i32, %c0_i32_0 : i32, i32
  }
  func.func @transform_8(%arg0: i32) -> (i32, i32) {
    %c0_i32 = arith.constant 0 : i32
    %c0_i32_0 = arith.constant 0 : i32
    %c0_i32_1 = arith.constant 0 : i32
    return %c0_i32, %c0_i32_0 : i32, i32
  }
  func.func @transform_9(%arg0: i32) -> (i32, i32) {
    %c0_i32 = arith.constant 0 : i32
    %c0_i32_0 = arith.constant 0 : i32
    return %arg0, %c0_i32 : i32, i32
  }
}

</mosaic_0001>

<bundles_post_ra>
// kernel: tpu_custom_call.1
= control target key start
LH: loop header
LB: loop body
LE: loop exit
PB: predicated region body
PF: predicated region fallthrough
CT: control target
= control target key end

     0   :  { %14 = vsyncpa [#allocation3], 0  ;;  %s8622_s0 = inlined_call_operand.hbm [shape: bf16[8,1024], index: 0, kind: input, shape index: {}]   ;;  %s8623_s1 = inlined_call_operand.hbm [shape: bf16[1024,1024], index: 1, kind: input, shape index: {}]   ;;  %s8624_s2 = inlined_call_operand.hbm [shape: f32[1,1024], index: 2, kind: input, shape index: {}]   ;;  %s8625_s3 = inlined_call_operand.hbm [shape: bf16[1024,512], index: 3, kind: input, shape index: {}]   ;;  %s8626_s4 = inlined_call_operand.hbm [shape: f32[1,512], index: 4, kind: input, shape index: {}]   ;;  %s8627_s5 = inlined_call_operand.hbm [shape: bf16[512,256], index: 5, kind: input, shape index: {}]   ;;  %s8628_s6 = inlined_call_operand.hbm [shape: f32[1,256], index: 6, kind: input, shape index: {}]   ;;  %s8629_s7 = inlined_call_operand.hbm [shape: bf16[256,128], index: 7, kind: input, shape index: {}]   ;;  %s8630_s8 = inlined_call_operand.hbm [shape: f32[1,128], index: 8, kind: input, shape index: {}]   ;;  %s8631_s9 = inlined_call_operand.hbm [shape: f32[8,128], index: 9, kind: output, shape index: {}]  }
   0x1   :  { %15 = vsyncpa [#allocation6], 0 }
   0x2   :  { %16 = vsyncpa [#allocation9], 0 }
   0x3   :  { %17 = vsyncpa [#allocation12], 0 }
   0x4   :  { %18 = vsyncpa [#allocation15], 0 }
   0x5   :  { %19 = vsyncpa [#allocation4], 0  ;;  %s8271_s30 = smov [#allocation5]   ;;  %s8039_s13 = scalar_lea.hbm %s8623_s1, 65536 }
   0x6   :  { %s35_s10 = sshll.u32 %s8271_s30, 4  ;;  %p8040_p0 = scmp.ne.s32.totalorder %s8623_s1, %s8039_s13  ;;  %s36_s10 = int_to_ptr.vmem [resolvable:$true] %s35_s10 }
   0x7   :  { %p8043_p1 = scmp.lt.u32.totalorder %s8039_s13, %s8623_s1 }
   0x9   :  { %p8045_p2 = pnand %p8043_p1, %p8040_p0 }
   0xb   :  { %8048 = shalt.err (!%p8045_p2)
}
   0xc   :  { %s8049_s18 = scalar_lea.vmem %s36_s10, 65536  ;;  %p8054_p4 = scmp.lt.s32.totalorder %s36_s10, %s36_s10 }
   0xd   :  { %p8050_p3 = scmp.ne.s32.totalorder %s36_s10, %s8049_s18  ;;  %p8055_p5 = scmp.lt.s32.totalorder %s8049_s18, %s8049_s18 }
   0xf   :  { %p8056_p6 = por %p8055_p5, %p8054_p4 }
  0x11   :  { %p8057_p7 = pnand %p8056_p6, %p8050_p3 }
  0x13   :  { %8060 = shalt.err (!%p8057_p7)
}
  0x14   :  { %s8272_s19 = smov 512   ;;  %s8273_s20 = smov 32  }
  0x15   :  { %41 = dma.hbm_to_vmem [thread:$0]  %s8623_s1, 65536, %s36_s10, [#allocation6], %s8272_s19, %s8272_s19, %s8273_s20  }
  0x16   :  { %s8274_s23 = smov [#allocation8]   ;;  %s8061_s27 = scalar_lea.hbm %s8625_s3, 32768 }
  0x17   :  { %s57_s24 = sshll.u32 %s8274_s23, 4  ;;  %p8062_p8 = scmp.ne.s32.totalorder %s8625_s3, %s8061_s27  ;;  %s58_s24 = int_to_ptr.vmem [resolvable:$true] %s57_s24 }
  0x18   :  { %p8065_p9 = scmp.lt.u32.totalorder %s8061_s27, %s8625_s3 }
  0x1a   :  { %p8067_p10 = pnand %p8065_p9, %p8062_p8 }
  0x1c   :  { %8070 = shalt.err (!%p8067_p10)
}
  0x1d   :  { %s8071_s12 = scalar_lea.vmem %s58_s24, 32768  ;;  %p8076_p12 = scmp.lt.s32.totalorder %s58_s24, %s58_s24 }
  0x1e   :  { %p8072_p11 = scmp.ne.s32.totalorder %s58_s24, %s8071_s12  ;;  %p8077_p13 = scmp.lt.s32.totalorder %s8071_s12, %s8071_s12 }
  0x20   :  { %p8078_p0 = por %p8077_p13, %p8076_p12 }
  0x22   :  { %p8079_p1 = pnand %p8078_p0, %p8072_p11 }
  0x24   :  { %8082 = shalt.err (!%p8079_p1)
}
  0x25   :  { %s8275_s1 = smov 256   ;;  %s8276_s10 = smov 16  }
  0x26   :  { %63 = dma.hbm_to_vmem [thread:$0]  %s8625_s3, 32768, %s58_s24, [#allocation9], %s8275_s1, %s8275_s1, %s8276_s10  }
  0x27   :  { %s8277_s15 = smov [#allocation11]   ;;  %s8083_s19 = scalar_lea.hbm %s8627_s5, 8192 }
  0x28   :  { %s79_s16 = sshll.u32 %s8277_s15, 4  ;;  %p8084_p2 = scmp.ne.s32.totalorder %s8627_s5, %s8083_s19  ;;  %s80_s16 = int_to_ptr.vmem [resolvable:$true] %s79_s16 }
  0x29   :  { %p8087_p3 = scmp.lt.u32.totalorder %s8083_s19, %s8627_s5 }
  0x2b   :  { %p8089_p4 = pnand %p8087_p3, %p8084_p2 }
  0x2d   :  { %8092 = shalt.err (!%p8089_p4)
}
  0x2e   :  { %s8093_s25 = scalar_lea.vmem %s80_s16, 8192  ;;  %p8098_p6 = scmp.lt.s32.totalorder %s80_s16, %s80_s16 }
  0x2f   :  { %p8094_p5 = scmp.ne.s32.totalorder %s80_s16, %s8093_s25  ;;  %p8099_p7 = scmp.lt.s32.totalorder %s8093_s25, %s8093_s25 }
  0x31   :  { %p8100_p8 = por %p8099_p7, %p8098_p6 }
  0x33   :  { %p8101_p9 = pnand %p8100_p8, %p8094_p5 }
  0x35   :  { %8104 = shalt.err (!%p8101_p9)
}
  0x36   :  { %s8278_s3 = smov 128   ;;  %s8279_s24 = smov 8  }
  0x37   :  { %85 = dma.hbm_to_vmem [thread:$0]  %s8627_s5, 8192, %s80_s16, [#allocation12], %s8278_s3, %s8278_s3, %s8279_s24  }
  0x38   :  { %s8280_s28 = smov [#allocation14]   ;;  %s8105_s12 = scalar_lea.hbm %s8629_s7, 2048 }
  0x39   :  { %s101_s29 = sshll.u32 %s8280_s28, 4  ;;  %p8106_p10 = scmp.ne.s32.totalorder %s8629_s7, %s8105_s12  ;;  %s102_s29 = int_to_ptr.vmem [resolvable:$true] %s101_s29 }
  0x3a   :  { %p8109_p11 = scmp.lt.u32.totalorder %s8105_s12, %s8629_s7 }
  0x3c   :  { %p8111_p12 = pnand %p8109_p11, %p8106_p10 }
  0x3e   :  { %8114 = shalt.err (!%p8111_p12)
}
  0x3f   :  { %s8115_s15 = scalar_lea.vmem %s102_s29, 2048  ;;  %p8120_p0 = scmp.lt.s32.totalorder %s102_s29, %s102_s29 }
  0x40   :  { %p8116_p13 = scmp.ne.s32.totalorder %s102_s29, %s8115_s15  ;;  %p8121_p1 = scmp.lt.s32.totalorder %s8115_s15, %s8115_s15 }
  0x42   :  { %p8122_p2 = por %p8121_p1, %p8120_p0 }
  0x44   :  { %p8123_p3 = pnand %p8122_p2, %p8116_p13 }
  0x46   :  { %8126 = shalt.err (!%p8123_p3)
}
  0x47   :  { %s8281_s5 = smov 64   ;;  %s8282_s16 = smov 4  }
  0x48   :  { %107 = dma.hbm_to_vmem [thread:$0]  %s8629_s7, 2048, %s102_s29, [#allocation15], %s8281_s5, %s8281_s5, %s8282_s16  }
  0x49   :  { %s8283_s19 = smov [#allocation2]   ;;  %s8284_s21 = smov [#allocation7]  }
  0x4a   :  { %s26_s20 = sshll.u32 %s8283_s19, 4  ;;  %s48_s22 = sshll.u32 %s8284_s21, 4  ;;  %s27_s20 = int_to_ptr.vmem [resolvable:$true] %s26_s20  ;;  %s49_s22 = int_to_ptr.vmem [resolvable:$true] %s48_s22 }
  0x4b   :  { %s8127_s3 = scalar_lea.hbm %s8622_s0, 512 }
  0x4c   :  { %p8128_p4 = scmp.ne.s32.totalorder %s8622_s0, %s8127_s3  ;;  %p8131_p5 = scmp.lt.u32.totalorder %s8127_s3, %s8622_s0 }
  0x4e   :  { %p8133_p6 = pnand %p8131_p5, %p8128_p4 }
  0x50   :  { %8136 = shalt.err (!%p8133_p6)
}
  0x51   :  { %s8137_s7 = scalar_lea.vmem %s27_s20, 512  ;;  %p8142_p8 = scmp.lt.s32.totalorder %s27_s20, %s27_s20 }
  0x52   :  { %p8138_p7 = scmp.ne.s32.totalorder %s27_s20, %s8137_s7  ;;  %p8143_p9 = scmp.lt.s32.totalorder %s8137_s7, %s8137_s7 }
  0x54   :  { %p8144_p10 = por %p8143_p9, %p8142_p8 }
  0x56   :  { %p8145_p11 = pnand %p8144_p10, %p8138_p7 }
  0x58   :  { %8148 = shalt.err (!%p8145_p11)
}
  0x59   :  { %29 = dma.hbm_to_vmem [thread:$0]  %s8622_s0, 512, %s27_s20, [#allocation3]  }
  0x5a   :  { %s8149_s1 = scalar_lea.hbm %s8624_s2, 128 }
  0x5b   :  { %p8150_p12 = scmp.ne.s32.totalorder %s8624_s2, %s8149_s1  ;;  %p8153_p13 = scmp.lt.u32.totalorder %s8149_s1, %s8624_s2 }
  0x5d   :  { %p8155_p0 = pnand %p8153_p13, %p8150_p12 }
  0x5f   :  { %8158 = shalt.err (!%p8155_p0)
}
  0x60   :  { %s8159_s5 = scalar_lea.vmem %s49_s22, 128  ;;  %p8164_p2 = scmp.lt.s32.totalorder %s49_s22, %s49_s22 }
  0x61   :  { %p8160_p1 = scmp.ne.s32.totalorder %s49_s22, %s8159_s5  ;;  %p8165_p3 = scmp.lt.s32.totalorder %s8159_s5, %s8159_s5 }
  0x63   :  { %p8166_p4 = por %p8165_p3, %p8164_p2 }
  0x65   :  { %p8167_p5 = pnand %p8166_p4, %p8160_p1 }
  0x67   :  { %8170 = shalt.err (!%p8167_p5)
}
  0x68   :  { %51 = dma.hbm_to_vmem [thread:$0]  %s8624_s2, 128, %s49_s22, [#allocation6]  }
  0x69   :  { %s8285_s17 = smov [#allocation10]   ;;  %s8286_s19 = smov [#allocation13]  }
  0x6a   :  { %s70_s18 = sshll.u32 %s8285_s17, 4  ;;  %s92_s20 = sshll.u32 %s8286_s19, 4  ;;  %s71_s18 = int_to_ptr.vmem [resolvable:$true] %s70_s18  ;;  %s93_s20 = int_to_ptr.vmem [resolvable:$true] %s92_s20 }
  0x6b   :  { %s8171_s25 = scalar_lea.hbm %s8626_s4, 64 }
  0x6c   :  { %p8172_p6 = scmp.ne.s32.totalorder %s8626_s4, %s8171_s25  ;;  %p8175_p7 = scmp.lt.u32.totalorder %s8171_s25, %s8626_s4 }
  0x6e   :  { %p8177_p8 = pnand %p8175_p7, %p8172_p6 }
  0x70   :  { %8180 = shalt.err (!%p8177_p8)
}
  0x71   :  { %s8181_s2 = scalar_lea.vmem %s71_s18, 64  ;;  %p8186_p10 = scmp.lt.s32.totalorder %s71_s18, %s71_s18 }
  0x72   :  { %p8182_p9 = scmp.ne.s32.totalorder %s71_s18, %s8181_s2  ;;  %p8187_p11 = scmp.lt.s32.totalorder %s8181_s2, %s8181_s2 }
  0x74   :  { %p8188_p12 = por %p8187_p11, %p8186_p10 }
  0x76   :  { %p8189_p13 = pnand %p8188_p12, %p8182_p9 }
  0x78   :  { %8192 = shalt.err (!%p8189_p13)
}
  0x79   :  { %73 = dma.hbm_to_vmem [thread:$0]  %s8626_s4, 64, %s71_s18, [#allocation9]  }
  0x7a   :  { %s8193_s30 = scalar_lea.hbm %s8628_s6, 32 }
  0x7b   :  { %p8194_p0 = scmp.ne.s32.totalorder %s8628_s6, %s8193_s30  ;;  %p8197_p1 = scmp.lt.u32.totalorder %s8193_s30, %s8628_s6 }
  0x7d   :  { %p8199_p2 = pnand %p8197_p1, %p8194_p0 }
  0x7f   :  { %8202 = shalt.err (!%p8199_p2)
}
  0x80   :  { %s8203_s13 = scalar_lea.vmem %s93_s20, 32  ;;  %p8208_p4 = scmp.lt.s32.totalorder %s93_s20, %s93_s20 }
  0x81   :  { %p8204_p3 = scmp.ne.s32.totalorder %s93_s20, %s8203_s13  ;;  %p8209_p5 = scmp.lt.s32.totalorder %s8203_s13, %s8203_s13 }
  0x83   :  { %p8210_p6 = por %p8209_p5, %p8208_p4 }
  0x85   :  { %p8211_p7 = pnand %p8210_p6, %p8204_p3 }
  0x87   :  { %8214 = shalt.err (!%p8211_p7)
}
  0x88   :  { %95 = dma.hbm_to_vmem [thread:$0]  %s8628_s6, 32, %s93_s20, [#allocation12]  }
  0x89   :  { %s8287_s15 = smov [#allocation16]   ;;  %s8215_s17 = scalar_lea.hbm %s8630_s8, 16 }
  0x8a   :  { %s114_s5 = sshll.u32 %s8287_s15, 4  ;;  %p8216_p8 = scmp.ne.s32.totalorder %s8630_s8, %s8215_s17  ;;  %s115_s5 = int_to_ptr.vmem [resolvable:$true] %s114_s5 }
  0x8b   :  { %p8219_p9 = scmp.lt.u32.totalorder %s8215_s17, %s8630_s8 }
  0x8d   :  { %p8221_p10 = pnand %p8219_p9, %p8216_p8 }
  0x8f   :  { %8224 = shalt.err (!%p8221_p10)
}
  0x90   :  { %s8225_s25 = scalar_lea.vmem %s115_s5, 16  ;;  %s8229_s6 = scalar_lea.vmem %s115_s5, 32 }
  0x91   :  { %p8226_p11 = scmp.ne.s32.totalorder %s115_s5, %s8225_s25  ;;  %p8230_p12 = scmp.lt.s32.totalorder %s115_s5, %s115_s5 }
  0x92   :  { %p8231_p13 = scmp.lt.s32.totalorder %s8229_s6, %s8225_s25 }
  0x94   :  { %p8232_p0 = por %p8231_p13, %p8230_p12 }
  0x96   :  { %p8233_p1 = pnand %p8232_p0, %p8226_p11 }
  0x98   :  { %8236 = shalt.err (!%p8233_p1)
}
  0x99   :  { %117 = dma.hbm_to_vmem [thread:$0]  %s8630_s8, 16, %s115_s5, [#allocation15]  }
  0x9a   :  { %8259 = dma.done.wait [#allocation3], 512  }
  0x9b   :  { %8260 = vsyncadd [#allocation3], 4294966784 }
  0x9c   :  { %8261 = dma.done.wait [#allocation6], 65664  }
  0x9d   :  { %8262 = vsyncadd [#allocation6], 4294901632 }
  0x9e   :  { %8263 = dma.done.wait [#allocation9], 32832  }
  0x9f   :  { %8264 = vsyncadd [#allocation9], 4294934464 }
  0xa0   :  { %8265 = dma.done.wait [#allocation12], 8224  }
  0xa1   :  { %8266 = vsyncadd [#allocation12], 4294959072 }
  0xa2   :  { %8267 = dma.done.wait [#allocation15], 2064  }
  0xa3   :  { %8268 = vsyncadd [#allocation15], 4294965232  ;;  %v150_v0 = vld [vmem:[#allocation5] sm:$0xff]  ;;  %v8449_v54 = vld [vmem:[#allocation2 + $0x8] sm:$0xff]  ;;  %s8288_s8 = smov [#allocation17]  }
  0xa4   :  { %v154_v1 = vld [vmem:[#allocation5 + $0x20] sm:$0xff]  ;;  %v8457_v61 = vcombine.high %v8449_v54, %v8449_v54  ;;  %s6536_s24 = sshll.u32 %s8288_s8, 4  ;;  %s6537_s24 = int_to_ptr.vmem [resolvable:$true] %s6536_s24 }
  0xa5   :  { %v278_v2 = vld [vmem:[#allocation5 + $0x400] sm:$0xff]  ;;  %v6558_v3 = vcombine.high %v150_v0, %v154_v1  ;;  %v6557_v5 = vcombine.low %v150_v0, %v154_v1  ;;  %s8237_s26 = scalar_lea.vmem %s6537_s24, 128  ;;  %p8242_p3 = scmp.lt.s32.totalorder %s6537_s24, %s6537_s24 }
  0xa6   :  { %v282_v4 = vld [vmem:[#allocation5 + $0x420] sm:$0xff]  ;;  %3365 = vmatprep.mubr.bf16.mxu0 %v8457_v61  ;;  %p8238_p2 = scmp.ne.s32.totalorder %s6537_s24, %s8237_s26  ;;  %p8243_p4 = scmp.lt.s32.totalorder %s8237_s26, %s8237_s26 }
  0xa7   :  { %v158_v6 = vld [vmem:[#allocation5 + $0x40] sm:$0xff]  ;;  %v6686_v8 = vcombine.high %v278_v2, %v282_v4  ;;  %v6685_v9 = vcombine.low %v278_v2, %v282_v4  ;;  %3292 = vmatprep.subr.bf16.mxu1 %v6558_v3 }
  0xa8   :  { %v162_v7 = vld [vmem:[#allocation5 + $0x60] sm:$0xff]  ;;  %3293 = vmatpush1.bf16.msra.mxu1 %v6557_v5  ;;  %p8244_p5 = por %p8243_p4, %p8242_p3 }
  0xa9   :  { %v6566_v10 = vcombine.high %v158_v6, %v162_v7  ;;  %v286_v11 = vld [vmem:[#allocation5 + $0x440] sm:$0xff]  ;;  %3333 = vmatprep.subr.bf16.mxu0 %v6686_v8  ;;  %v6565_v18 = vcombine.low %v158_v6, %v162_v7 }
  0xaa   :  { %v290_v12 = vld [vmem:[#allocation5 + $0x460] sm:$0xff]  ;;  %3334 = vmatpush1.bf16.msra.mxu0 %v6685_v9  ;;  %p8245_p6 = pnand %p8244_p5, %p8238_p2 }
  0xab   :  { %v166_v13 = vld [vmem:[#allocation5 + $0x80] sm:$0xff]  ;;  %v6694_v14 = vcombine.high %v286_v11, %v290_v12  ;;  %3294 = vmatprep.subr.bf16.mxu1 %v6566_v10  ;;  %v6693_v19 = vcombine.low %v286_v11, %v290_v12 }
  0xac   :  { %v170_v15 = vld [vmem:[#allocation5 + $0xa0] sm:$0xff]  ;;  %3295 = vmatpush1.bf16.msra.mxu1 %v6565_v18 }
  0xad   :  { %v294_v16 = vld [vmem:[#allocation5 + $0x480] sm:$0xff]  ;;  %v6574_v20 = vcombine.high %v166_v13, %v170_v15  ;;  %3335 = vmatprep.subr.bf16.mxu0 %v6694_v14  ;;  %v6573_v26 = vcombine.low %v166_v13, %v170_v15 }
  0xae   :  { %v298_v17 = vld [vmem:[#allocation5 + $0x4a0] sm:$0xff]  ;;  %3336 = vmatpush1.bf16.msra.mxu0 %v6693_v19 }
  0xaf   :  { %v6702_v21 = vcombine.high %v294_v16, %v298_v17  ;;  %v174_v22 = vld [vmem:[#allocation5 + $0xc0] sm:$0xff]  ;;  %3296 = vmatprep.subr.bf16.mxu1 %v6574_v20  ;;  %v6701_v27 = vcombine.low %v294_v16, %v298_v17 }
  0xb0   :  { %v178_v23 = vld [vmem:[#allocation5 + $0xe0] sm:$0xff]  ;;  %3297 = vmatpush1.bf16.msra.mxu1 %v6573_v26 }
  0xb1   :  { %v302_v24 = vld [vmem:[#allocation5 + $0x4c0] sm:$0xff]  ;;  %v6582_v28 = vcombine.high %v174_v22, %v178_v23  ;;  %3337 = vmatprep.subr.bf16.mxu0 %v6702_v21  ;;  %v6581_v34 = vcombine.low %v174_v22, %v178_v23 }
  0xb2   :  { %v306_v25 = vld [vmem:[#allocation5 + $0x4e0] sm:$0xff]  ;;  %3338 = vmatpush1.bf16.msra.mxu0 %v6701_v27 }
  0xb3   :  { %v6710_v29 = vcombine.high %v302_v24, %v306_v25  ;;  %v182_v30 = vld [vmem:[#allocation5 + $0x100] sm:$0xff]  ;;  %3298 = vmatprep.subr.bf16.mxu1 %v6582_v28  ;;  %v6709_v35 = vcombine.low %v302_v24, %v306_v25 }
  0xb4   :  { %v186_v31 = vld [vmem:[#allocation5 + $0x120] sm:$0xff]  ;;  %3299 = vmatpush1.bf16.msra.mxu1 %v6581_v34 }
  0xb5   :  { %v310_v32 = vld [vmem:[#allocation5 + $0x500] sm:$0xff]  ;;  %v6590_v36 = vcombine.high %v182_v30, %v186_v31  ;;  %3339 = vmatprep.subr.bf16.mxu0 %v6710_v29  ;;  %v6589_v42 = vcombine.low %v182_v30, %v186_v31 }
  0xb6   :  { %v314_v33 = vld [vmem:[#allocation5 + $0x520] sm:$0xff]  ;;  %3340 = vmatpush1.bf16.msra.mxu0 %v6709_v35 }
  0xb7   :  { %v6718_v37 = vcombine.high %v310_v32, %v314_v33  ;;  %v190_v38 = vld [vmem:[#allocation5 + $0x140] sm:$0xff]  ;;  %3300 = vmatprep.subr.bf16.mxu1 %v6590_v36  ;;  %v6717_v43 = vcombine.low %v310_v32, %v314_v33 }
  0xb8   :  { %v194_v39 = vld [vmem:[#allocation5 + $0x160] sm:$0xff]  ;;  %3301 = vmatpush1.bf16.msra.mxu1 %v6589_v42 }
  0xb9   :  { %v318_v40 = vld [vmem:[#allocation5 + $0x540] sm:$0xff]  ;;  %v6598_v44 = vcombine.high %v190_v38, %v194_v39  ;;  %3341 = vmatprep.subr.bf16.mxu0 %v6718_v37  ;;  %v6597_v50 = vcombine.low %v190_v38, %v194_v39 }
  0xba   :  { %v322_v41 = vld [vmem:[#allocation5 + $0x560] sm:$0xff]  ;;  %3342 = vmatpush1.bf16.msra.mxu0 %v6717_v43 }
  0xbb   :  { %v6726_v45 = vcombine.high %v318_v40, %v322_v41  ;;  %v198_v46 = vld [vmem:[#allocation5 + $0x180] sm:$0xff]  ;;  %3302 = vmatprep.subr.bf16.mxu1 %v6598_v44  ;;  %v6725_v51 = vcombine.low %v318_v40, %v322_v41 }
  0xbc   :  { %v202_v47 = vld [vmem:[#allocation5 + $0x1a0] sm:$0xff]  ;;  %3303 = vmatpush1.bf16.msra.mxu1 %v6597_v50 }
  0xbd   :  { %v326_v48 = vld [vmem:[#allocation5 + $0x580] sm:$0xff]  ;;  %v6606_v52 = vcombine.high %v198_v46, %v202_v47  ;;  %3343 = vmatprep.subr.bf16.mxu0 %v6726_v45  ;;  %v6605_v62 = vcombine.low %v198_v46, %v202_v47 }
  0xbe   :  { %v330_v49 = vld [vmem:[#allocation5 + $0x5a0] sm:$0xff]  ;;  %3344 = vmatpush1.bf16.msra.mxu0 %v6725_v51 }
  0xbf   :  { %v8447_v53 = vld [vmem:[#allocation2] sm:$0xff]  ;;  %v6734_v55 = vcombine.high %v326_v48, %v330_v49  ;;  %3304 = vmatprep.subr.bf16.mxu1 %v6606_v52  ;;  %v6733_v63 = vcombine.low %v326_v48, %v330_v49 }
  0xc0   :  { %v206_v56 = vld [vmem:[#allocation5 + $0x1c0] sm:$0xff]  ;;  %v8453_v58 = vcombine.high %v8447_v53, %v8447_v53  ;;  %3305 = vmatpush1.bf16.msra.mxu1 %v6605_v62 }
  0xc1   :  { %v210_v57 = vld [vmem:[#allocation5 + $0x1e0] sm:$0xff]  ;;  %3345 = vmatprep.subr.bf16.mxu0 %v6734_v55 }
  0xc2   :  { %v334_v59 = vld [vmem:[#allocation5 + $0x5c0] sm:$0xff]  ;;  %3324 = vmatprep.mubr.bf16.mxu1 %v8453_v58  ;;  %v6614_v0 = vcombine.high %v206_v56, %v210_v57  ;;  %v6613_v6 = vcombine.low %v206_v56, %v210_v57  ;;  %3346 = vmatpush1.bf16.msra.mxu0 %v6733_v63 }
  0xc3   :  { %v338_v60 = vld [vmem:[#allocation5 + $0x5e0] sm:$0xff] }
  0xc4   :  { %v6742_v1 = vcombine.high %v334_v59, %v338_v60  ;;  %v214_v2 = vld [vmem:[#allocation5 + $0x200] sm:$0xff]  ;;  %3306 = vmatprep.subr.bf16.mxu1 %v6614_v0  ;;  %v6741_v7 = vcombine.low %v334_v59, %v338_v60 }
  0xc5   :  { %v218_v3 = vld [vmem:[#allocation5 + $0x220] sm:$0xff]  ;;  %3307 = vmatpush1.bf16.msra.mxu1 %v6613_v6  ;;  %v151_v6 = vld [vmem:[#allocation5 + $0x8] sm:$0xff] }
  0xc6   :  { %v342_v4 = vld [vmem:[#allocation5 + $0x600] sm:$0xff]  ;;  %v6622_v8 = vcombine.high %v214_v2, %v218_v3  ;;  %3347 = vmatprep.subr.bf16.mxu0 %v6742_v1  ;;  %v6621_v14 = vcombine.low %v214_v2, %v218_v3 }
  0xc7   :  { %v346_v5 = vld [vmem:[#allocation5 + $0x620] sm:$0xff]  ;;  %3348 = vmatpush1.bf16.msra.mxu0 %v6741_v7  ;;  %v155_v7 = vld [vmem:[#allocation5 + $0x28] sm:$0xff] }
  0xc8   :  { %v6750_v9 = vcombine.high %v342_v4, %v346_v5  ;;  %v222_v10 = vld [vmem:[#allocation5 + $0x240] sm:$0xff]  ;;  %3308 = vmatprep.subr.bf16.mxu1 %v6622_v8  ;;  %v6749_v15 = vcombine.low %v342_v4, %v346_v5 }
  0xc9   :  { %v226_v11 = vld [vmem:[#allocation5 + $0x260] sm:$0xff]  ;;  %3309 = vmatpush1.bf16.msra.mxu1 %v6621_v14  ;;  %v159_v14 = vld [vmem:[#allocation5 + $0x48] sm:$0xff] }
  0xca   :  { %v350_v12 = vld [vmem:[#allocation5 + $0x640] sm:$0xff]  ;;  %v6630_v16 = vcombine.high %v222_v10, %v226_v11  ;;  %3349 = vmatprep.subr.bf16.mxu0 %v6750_v9  ;;  %v6629_v22 = vcombine.low %v222_v10, %v226_v11 }
  0xcb   :  { %v354_v13 = vld [vmem:[#allocation5 + $0x660] sm:$0xff]  ;;  %3350 = vmatpush1.bf16.msra.mxu0 %v6749_v15  ;;  %v163_v15 = vld [vmem:[#allocation5 + $0x68] sm:$0xff] }
  0xcc   :  { %v6758_v17 = vcombine.high %v350_v12, %v354_v13  ;;  %v230_v18 = vld [vmem:[#allocation5 + $0x280] sm:$0xff]  ;;  %3310 = vmatprep.subr.bf16.mxu1 %v6630_v16  ;;  %v6757_v23 = vcombine.low %v350_v12, %v354_v13  ;;  %v6560_v12 = vcombine.high %v151_v6, %v155_v7  ;;  %v8463_v16 = vcombine.low %v8447_v53, %v8447_v53  ;;  %v167_v53 = vld [vmem:[#allocation5 + $0x88] sm:$0xff] }
  0xcd   :  { %v234_v19 = vld [vmem:[#allocation5 + $0x2a0] sm:$0xff]  ;;  %3311 = vmatpush1.bf16.msra.mxu1 %v6629_v22 }
  0xce   :  { %v358_v20 = vld [vmem:[#allocation5 + $0x680] sm:$0xff]  ;;  %v6638_v24 = vcombine.high %v230_v18, %v234_v19  ;;  %3351 = vmatprep.subr.bf16.mxu0 %v6758_v17  ;;  %v6637_v30 = vcombine.low %v230_v18, %v234_v19  ;;  %v8465_v19 = vld [vmem:[#allocation2 + $0x10] sm:$0xff] }
  0xcf   :  { %v362_v21 = vld [vmem:[#allocation5 + $0x6a0] sm:$0xff]  ;;  %3352 = vmatpush1.bf16.msra.mxu0 %v6757_v23  ;;  %v6568_v23 = vcombine.high %v159_v14, %v163_v15 }
  0xd0   :  { %v6766_v25 = vcombine.high %v358_v20, %v362_v21  ;;  %v238_v26 = vld [vmem:[#allocation5 + $0x2c0] sm:$0xff]  ;;  %3312 = vmatprep.subr.bf16.mxu1 %v6638_v24  ;;  %v6765_v31 = vcombine.low %v358_v20, %v362_v21  ;;  %v6559_v20 = vcombine.low %v151_v6, %v155_v7  ;;  %v8469_v21 = vcombine.low %v8449_v54, %v8449_v54  ;;  %v211_v7 = vld [vmem:[#allocation5 + $0x1e8] sm:$0xff] }
  0xd1   :  { %v242_v27 = vld [vmem:[#allocation5 + $0x2e0] sm:$0xff]  ;;  %3313 = vmatpush1.bf16.msra.mxu1 %v6637_v30  ;;  %v6567_v54 = vcombine.low %v159_v14, %v163_v15  ;;  %v219_v15 = vld [vmem:[#allocation5 + $0x228] sm:$0xff] }
  0xd2   :  { %v366_v28 = vld [vmem:[#allocation5 + $0x6c0] sm:$0xff]  ;;  %v6646_v32 = vcombine.high %v238_v26, %v242_v27  ;;  %3353 = vmatprep.subr.bf16.mxu0 %v6766_v25  ;;  %v6645_v38 = vcombine.low %v238_v26, %v242_v27  ;;  %v171_v27 = vld [vmem:[#allocation5 + $0xa8] sm:$0xff] }
  0xd3   :  { %v370_v29 = vld [vmem:[#allocation5 + $0x6e0] sm:$0xff]  ;;  %3354 = vmatpush1.bf16.msra.mxu0 %v6765_v31  ;;  %v6576_v30 = vcombine.high %v167_v53, %v171_v27 }
  0xd4   :  { %v6774_v33 = vcombine.high %v366_v28, %v370_v29  ;;  %v246_v34 = vld [vmem:[#allocation5 + $0x300] sm:$0xff]  ;;  %3314 = vmatprep.subr.bf16.mxu1 %v6646_v32  ;;  %v6773_v39 = vcombine.low %v366_v28, %v370_v29  ;;  %v8473_v28 = vcombine.high %v8465_v19, %v8465_v19 }
  0xd5   :  { %v250_v35 = vld [vmem:[#allocation5 + $0x320] sm:$0xff]  ;;  %3315 = vmatpush1.bf16.msra.mxu1 %v6645_v38 }
  0xd6   :  { %v374_v36 = vld [vmem:[#allocation5 + $0x700] sm:$0xff]  ;;  %v6654_v40 = vcombine.high %v246_v34, %v250_v35  ;;  %3355 = vmatprep.subr.bf16.mxu0 %v6774_v33  ;;  %v6653_v46 = vcombine.low %v246_v34, %v250_v35  ;;  %v175_v33 = vld [vmem:[#allocation5 + $0xc8] sm:$0xff] }
  0xd7   :  { %v378_v37 = vld [vmem:[#allocation5 + $0x720] sm:$0xff]  ;;  %3356 = vmatpush1.bf16.msra.mxu0 %v6773_v39  ;;  %v179_v35 = vld [vmem:[#allocation5 + $0xe8] sm:$0xff] }
  0xd8   :  { %v6782_v41 = vcombine.high %v374_v36, %v378_v37  ;;  %v254_v42 = vld [vmem:[#allocation5 + $0x340] sm:$0xff]  ;;  %3316 = vmatprep.subr.bf16.mxu1 %v6654_v40  ;;  %v6781_v47 = vcombine.low %v374_v36, %v378_v37  ;;  %v6575_v36 = vcombine.low %v167_v53, %v171_v27  ;;  %v6584_v38 = vcombine.high %v175_v33, %v179_v35 }
  0xd9   :  { %v258_v43 = vld [vmem:[#allocation5 + $0x360] sm:$0xff]  ;;  %3317 = vmatpush1.bf16.msra.mxu1 %v6653_v46 }
  0xda   :  { %v382_v44 = vld [vmem:[#allocation5 + $0x740] sm:$0xff]  ;;  %v6662_v48 = vcombine.high %v254_v42, %v258_v43  ;;  %3357 = vmatprep.subr.bf16.mxu0 %v6782_v41  ;;  %v6661_v56 = vcombine.low %v254_v42, %v258_v43  ;;  %v183_v41 = vld [vmem:[#allocation5 + $0x108] sm:$0xff] }
  0xdb   :  { %v386_v45 = vld [vmem:[#allocation5 + $0x760] sm:$0xff]  ;;  %3358 = vmatpush1.bf16.msra.mxu0 %v6781_v47  ;;  %v187_v43 = vld [vmem:[#allocation5 + $0x128] sm:$0xff] }
  0xdc   :  { %v6790_v49 = vcombine.high %v382_v44, %v386_v45  ;;  %v262_v50 = vld [vmem:[#allocation5 + $0x380] sm:$0xff]  ;;  %3318 = vmatprep.subr.bf16.mxu1 %v6662_v48  ;;  %v6789_v57 = vcombine.low %v382_v44, %v386_v45  ;;  %v6583_v44 = vcombine.low %v175_v33, %v179_v35  ;;  %v6592_v46 = vcombine.high %v183_v41, %v187_v43  ;;  %v235_v33 = vld [vmem:[#allocation5 + $0x2a8] sm:$0xff] }
  0xdd   :  { %v266_v51 = vld [vmem:[#allocation5 + $0x3a0] sm:$0xff]  ;;  %3319 = vmatpush1.bf16.msra.mxu1 %v6661_v56 }
  0xde   :  { %v390_v52 = vld [vmem:[#allocation5 + $0x780] sm:$0xff]  ;;  %v6670_v59 = vcombine.high %v262_v50, %v266_v51  ;;  %3359 = vmatprep.subr.bf16.mxu0 %v6790_v49  ;;  %v6669_v2 = vcombine.low %v262_v50, %v266_v51  ;;  %v191_v49 = vld [vmem:[#allocation5 + $0x148] sm:$0xff] }
  0xdf   :  { %v394_v55 = vld [vmem:[#allocation5 + $0x7a0] sm:$0xff]  ;;  %3360 = vmatpush1.bf16.msra.mxu0 %v6789_v57  ;;  %v195_v51 = vld [vmem:[#allocation5 + $0x168] sm:$0xff] }
  0xe0   :  { %v6798_v60 = vcombine.high %v390_v52, %v394_v55  ;;  %v270_v62 = vld [vmem:[#allocation5 + $0x3c0] sm:$0xff]  ;;  %3320 = vmatprep.subr.bf16.mxu1 %v6670_v59  ;;  %v6797_v3 = vcombine.low %v390_v52, %v394_v55  ;;  %v6591_v52 = vcombine.low %v183_v41, %v187_v43  ;;  %v6600_v56 = vcombine.high %v191_v49, %v195_v51  ;;  %v243_v41 = vld [vmem:[#allocation5 + $0x2e8] sm:$0xff] }
  0xe1   :  { %v274_v63 = vld [vmem:[#allocation5 + $0x3e0] sm:$0xff]  ;;  %3321 = vmatpush1.bf16.msra.mxu1 %v6669_v2 }
  0xe2   :  { %v398_v0 = vld [vmem:[#allocation5 + $0x7c0] sm:$0xff]  ;;  %v6678_v4 = vcombine.high %v270_v62, %v274_v63  ;;  %3361 = vmatprep.subr.bf16.mxu0 %v6798_v60  ;;  %v6677_v10 = vcombine.low %v270_v62, %v274_v63  ;;  %v199_v60 = vld [vmem:[#allocation5 + $0x188] sm:$0xff] }
  0xe3   :  { %v402_v1 = vld [vmem:[#allocation5 + $0x7e0] sm:$0xff]  ;;  %3362 = vmatpush1.bf16.msra.mxu0 %v6797_v3  ;;  %v203_v63 = vld [vmem:[#allocation5 + $0x1a8] sm:$0xff] }
  0xe4   :  { %v6806_v5 = vcombine.high %v398_v0, %v402_v1  ;;  %v406_v8 = vld [vmem:[#allocation5 + $0x800] sm:$0xff]  ;;  %3322 = vmatprep.subr.bf16.mxu1 %v6678_v4  ;;  %v6805_v11 = vcombine.low %v398_v0, %v402_v1  ;;  %v6599_v0 = vcombine.low %v191_v49, %v195_v51  ;;  %v6608_v2 = vcombine.high %v199_v60, %v203_v63  ;;  %v251_v49 = vld [vmem:[#allocation5 + $0x328] sm:$0xff] }
  0xe5   :  { %v410_v9 = vld [vmem:[#allocation5 + $0x820] sm:$0xff]  ;;  %3323 = vmatpush1.bf16.msra.mxu1 %v6677_v10 }
  0xe6   :  { %3363 = vmatprep.subr.bf16.mxu0 %v6806_v5  ;;  %v6814_v13 = vcombine.high %v406_v8, %v410_v9  ;;  %v414_v17 = vld [vmem:[#allocation5 + $0x840] sm:$0xff]  ;;  %v6813_v22 = vcombine.low %v406_v8, %v410_v9  ;;  %3456 = vmatprep.subr.bf16.mxu1 %v6560_v12  ;;  %v207_v5 = vld [vmem:[#allocation5 + $0x1c8] sm:$0xff]  ;;  %v6607_v8 = vcombine.low %v199_v60, %v203_v63 }
  0xe7   :  { %v418_v18 = vld [vmem:[#allocation5 + $0x860] sm:$0xff]  ;;  %3364 = vmatpush1.bf16.msra.mxu0 %v6805_v11  ;;  %v6616_v10 = vcombine.high %v207_v5, %v211_v7  ;;  %v259_v60 = vld [vmem:[#allocation5 + $0x368] sm:$0xff] }
  0xe8   :  { %v422_v24 = vld [vmem:[#allocation5 + $0x880] sm:$0xff]  ;;  %3374 = vmatprep.subr.bf16.mxu0 %v6814_v13  ;;  %v6822_v26 = vcombine.high %v414_v17, %v418_v18  ;;  %3325 = vmatmul.mubr.bf16.vlgmr.msra.gmra.mrb[0].mxu1 %v8463_v16  ;;  %v6821_v29 = vcombine.low %v414_v17, %v418_v18  ;;  %v215_v13 = vld [vmem:[#allocation5 + $0x208] sm:$0xff]  ;;  %v6615_v17 = vcombine.low %v207_v5, %v211_v7 }
  0xe9   :  { %v426_v25 = vld [vmem:[#allocation5 + $0x8a0] sm:$0xff]  ;;  %3457 = vmatpush1.bf16.msra.mxu1 %v6559_v20  ;;  %3488 = vmatprep.mubr.bf16.mxu1 %v8453_v58  ;;  %v6624_v20 = vcombine.high %v215_v13, %v219_v15  ;;  %v6623_v53 = vcombine.low %v215_v13, %v219_v15  ;;  %v267_v5 = vld [vmem:[#allocation5 + $0x3a8] sm:$0xff] }
  0xea   :  { %3366 = vmatmul.mubr.bf16.vlgmr.msra.gmra.mrb[0].mxu0 %v8469_v21  ;;  %3458 = vmatprep.subr.bf16.mxu1 %v6568_v23  ;;  %v430_v31 = vld [vmem:[#allocation5 + $0x8c0] sm:$0xff]  ;;  %v6830_v34 = vcombine.high %v422_v24, %v426_v25  ;;  %v6829_v37 = vcombine.low %v422_v24, %v426_v25  ;;  %v223_v24 = vld [vmem:[#allocation5 + $0x248] sm:$0xff] }
  0xeb   :  { %3375 = vmatpush1.bf16.msra.mxu0 %v6813_v22  ;;  %v434_v32 = vld [vmem:[#allocation5 + $0x8e0] sm:$0xff]  ;;  %3406 = vmatprep.mubr.bf16.mxu0 %v8473_v28  ;;  %v275_v13 = vld [vmem:[#allocation5 + $0x3e8] sm:$0xff] }
  0xec   :  { %3376 = vmatprep.subr.bf16.mxu0 %v6822_v26  ;;  %v438_v39 = vld [vmem:[#allocation5 + $0x900] sm:$0xff]  ;;  %v6838_v42 = vcombine.high %v430_v31, %v434_v32  ;;  %v6837_v45 = vcombine.low %v430_v31, %v434_v32  ;;  %v227_v26 = vld [vmem:[#allocation5 + $0x268] sm:$0xff] }
  0xed   :  { %3459 = vmatpush1.bf16.msra.mxu1 %v6567_v54  ;;  %v442_v40 = vld [vmem:[#allocation5 + $0x920] sm:$0xff]  ;;  %v6632_v54 = vcombine.high %v223_v24, %v227_v26  ;;  %v231_v31 = vld [vmem:[#allocation5 + $0x288] sm:$0xff] }
  0xee   :  { %3460 = vmatprep.subr.bf16.mxu1 %v6576_v30  ;;  %v446_v47 = vld [vmem:[#allocation5 + $0x940] sm:$0xff]  ;;  %v6846_v50 = vcombine.high %v438_v39, %v442_v40  ;;  %v6845_v55 = vcombine.low %v438_v39, %v442_v40  ;;  %v239_v39 = vld [vmem:[#allocation5 + $0x2c8] sm:$0xff] }
  0xef   :  { %3377 = vmatpush1.bf16.msra.mxu0 %v6821_v29  ;;  %v450_v48 = vld [vmem:[#allocation5 + $0x960] sm:$0xff] }
  0xf0   :  { %3378 = vmatprep.subr.bf16.mxu0 %v6830_v34  ;;  %v454_v57 = vld [vmem:[#allocation5 + $0x980] sm:$0xff]  ;;  %v6854_v62 = vcombine.high %v446_v47, %v450_v48  ;;  %v6853_v1 = vcombine.low %v446_v47, %v450_v48  ;;  %v6631_v34 = vcombine.low %v223_v24, %v227_v26  ;;  %v247_v47 = vld [vmem:[#allocation5 + $0x308] sm:$0xff] }
  0xf1   :  { %3461 = vmatpush1.bf16.msra.mxu1 %v6575_v36  ;;  %v458_v59 = vld [vmem:[#allocation5 + $0x9a0] sm:$0xff]  ;;  %v6640_v36 = vcombine.high %v231_v31, %v235_v33  ;;  %v283_v24 = vld [vmem:[#allocation5 + $0x428] sm:$0xff] }
  0xf2   :  { %3462 = vmatprep.subr.bf16.mxu1 %v6584_v38  ;;  %v462_v3 = vld [vmem:[#allocation5 + $0x9c0] sm:$0xff]  ;;  %v6862_v6 = vcombine.high %v454_v57, %v458_v59  ;;  %v6861_v9 = vcombine.low %v454_v57, %v458_v59  ;;  %v255_v57 = vld [vmem:[#allocation5 + $0x348] sm:$0xff] }
  0xf3   :  { %3379 = vmatpush1.bf16.msra.mxu0 %v6829_v37  ;;  %v466_v4 = vld [vmem:[#allocation5 + $0x9e0] sm:$0xff] }
  0xf4   :  { %3380 = vmatprep.subr.bf16.mxu0 %v6838_v42  ;;  %v470_v11 = vld [vmem:[#allocation5 + $0xa00] sm:$0xff]  ;;  %v6870_v14 = vcombine.high %v462_v3, %v466_v4  ;;  %v6869_v18 = vcombine.low %v462_v3, %v466_v4  ;;  %v6639_v42 = vcombine.low %v231_v31, %v235_v33  ;;  %v263_v3 = vld [vmem:[#allocation5 + $0x388] sm:$0xff] }
  0xf5   :  { %3463 = vmatpush1.bf16.msra.mxu1 %v6583_v44  ;;  %v474_v12 = vld [vmem:[#allocation5 + $0xa20] sm:$0xff]  ;;  %v6648_v44 = vcombine.high %v239_v39, %v243_v41 }
  0xf6   :  { %3464 = vmatprep.subr.bf16.mxu1 %v6592_v46  ;;  %v478_v22 = vld [vmem:[#allocation5 + $0xa40] sm:$0xff]  ;;  %v6878_v25 = vcombine.high %v470_v11, %v474_v12  ;;  %v6877_v27 = vcombine.low %v470_v11, %v474_v12  ;;  %v271_v11 = vld [vmem:[#allocation5 + $0x3c8] sm:$0xff] }
  0xf7   :  { %3381 = vmatpush1.bf16.msra.mxu0 %v6837_v45  ;;  %v482_v23 = vld [vmem:[#allocation5 + $0xa60] sm:$0xff] }
  0xf8   :  { %3382 = vmatprep.subr.bf16.mxu0 %v6846_v50  ;;  %v486_v29 = vld [vmem:[#allocation5 + $0xa80] sm:$0xff]  ;;  %v6886_v32 = vcombine.high %v478_v22, %v482_v23  ;;  %v6885_v35 = vcombine.low %v478_v22, %v482_v23  ;;  %v6647_v50 = vcombine.low %v239_v39, %v243_v41  ;;  %v279_v22 = vld [vmem:[#allocation5 + $0x408] sm:$0xff] }
  0xf9   :  { %3465 = vmatpush1.bf16.msra.mxu1 %v6591_v52  ;;  %v490_v30 = vld [vmem:[#allocation5 + $0xaa0] sm:$0xff]  ;;  %v6656_v52 = vcombine.high %v247_v47, %v251_v49  ;;  %v6687_v33 = vcombine.low %v279_v22, %v283_v24  ;;  %v295_v39 = vld [vmem:[#allocation5 + $0x488] sm:$0xff] }
  0xfa   :  { %3466 = vmatprep.subr.bf16.mxu1 %v6600_v56  ;;  %v494_v37 = vld [vmem:[#allocation5 + $0xac0] sm:$0xff]  ;;  %v6894_v40 = vcombine.high %v486_v29, %v490_v30  ;;  %v6893_v43 = vcombine.low %v486_v29, %v490_v30  ;;  %v287_v29 = vld [vmem:[#allocation5 + $0x448] sm:$0xff] }
  0xfb   :  { %3383 = vmatpush1.bf16.msra.mxu0 %v6845_v55  ;;  %v498_v38 = vld [vmem:[#allocation5 + $0xae0] sm:$0xff]  ;;  %v291_v30 = vld [vmem:[#allocation5 + $0x468] sm:$0xff] }
  0xfc   :  { %3384 = vmatprep.subr.bf16.mxu0 %v6854_v62  ;;  %v502_v45 = vld [vmem:[#allocation5 + $0xb00] sm:$0xff]  ;;  %v6902_v48 = vcombine.high %v494_v37, %v498_v38  ;;  %v6901_v51 = vcombine.low %v494_v37, %v498_v38  ;;  %v6655_v62 = vcombine.low %v247_v47, %v251_v49  ;;  %v299_v41 = vld [vmem:[#allocation5 + $0x4a8] sm:$0xff] }
  0xfd   :  { %3467 = vmatpush1.bf16.msra.mxu1 %v6599_v0  ;;  %v506_v46 = vld [vmem:[#allocation5 + $0xb20] sm:$0xff]  ;;  %v6664_v0 = vcombine.high %v255_v57, %v259_v60  ;;  %v303_v47 = vld [vmem:[#allocation5 + $0x4c8] sm:$0xff] }
  0xfe   :  { %3468 = vmatprep.subr.bf16.mxu1 %v6608_v2  ;;  %v510_v55 = vld [vmem:[#allocation5 + $0xb40] sm:$0xff]  ;;  %v6910_v59 = vcombine.high %v502_v45, %v506_v46  ;;  %v6909_v63 = vcombine.low %v502_v45, %v506_v46  ;;  %v307_v49 = vld [vmem:[#allocation5 + $0x4e8] sm:$0xff] }
  0xff   :  { %3385 = vmatpush1.bf16.msra.mxu0 %v6853_v1  ;;  %v514_v56 = vld [vmem:[#allocation5 + $0xb60] sm:$0xff] }
 0x100   :  { %3386 = vmatprep.subr.bf16.mxu0 %v6862_v6  ;;  %v518_v1 = vld [vmem:[#allocation5 + $0xb80] sm:$0xff]  ;;  %v6918_v4 = vcombine.high %v510_v55, %v514_v56  ;;  %v6663_v6 = vcombine.low %v255_v57, %v259_v60  ;;  %v6917_v7 = vcombine.low %v510_v55, %v514_v56  ;;  %v311_v57 = vld [vmem:[#allocation5 + $0x508] sm:$0xff] }
 0x101   :  { %3469 = vmatpush1.bf16.msra.mxu1 %v6607_v8  ;;  %v522_v2 = vld [vmem:[#allocation5 + $0xba0] sm:$0xff]  ;;  %v6672_v8 = vcombine.high %v263_v3, %v267_v5  ;;  %v315_v60 = vld [vmem:[#allocation5 + $0x528] sm:$0xff] }
 0x102   :  { %3470 = vmatprep.subr.bf16.mxu1 %v6616_v10  ;;  %v530_v10 = vld [vmem:[#allocation5 + $0xbe0] sm:$0xff]  ;;  %v6926_v12 = vcombine.high %v518_v1, %v522_v2  ;;  %v6925_v15 = vcombine.low %v518_v1, %v522_v2 }
 0x103   :  { %3387 = vmatpush1.bf16.msra.mxu0 %v6861_v9  ;;  %v526_v9 = vld [vmem:[#allocation5 + $0xbc0] sm:$0xff] }
 0x104   :  { %3388 = vmatprep.subr.bf16.mxu0 %v6870_v14  ;;  %v6671_v14 = vcombine.low %v263_v3, %v267_v5  ;;  %v6934_v23 = vcombine.high %v526_v9, %v530_v10  ;;  %v6933_v26 = vcombine.low %v526_v9, %v530_v10  ;;  %v550_v37 = vld [vmem:[#allocation5 + $0xc80] sm:$0xff]  ;;  %v319_v3 = vld [vmem:[#allocation5 + $0x548] sm:$0xff] }
 0x105   :  { %3471 = vmatpush1.bf16.msra.mxu1 %v6615_v17  ;;  %v6680_v17 = vcombine.high %v271_v11, %v275_v13  ;;  %v554_v38 = vld [vmem:[#allocation5 + $0xca0] sm:$0xff]  ;;  %v323_v5 = vld [vmem:[#allocation5 + $0x568] sm:$0xff] }
 0x106   :  { %3472 = vmatprep.subr.bf16.mxu1 %v6624_v20  ;;  %v538_v20 = vld [vmem:[#allocation5 + $0xc20] sm:$0xff] }
 0x107   :  { %3389 = vmatpush1.bf16.msra.mxu0 %v6869_v18  ;;  %v534_v18 = vld [vmem:[#allocation5 + $0xc00] sm:$0xff] }
 0x108   :  { %3390 = vmatprep.subr.bf16.mxu0 %v6878_v25  ;;  %v6679_v25 = vcombine.low %v271_v11, %v275_v13  ;;  %v6942_v31 = vcombine.high %v534_v18, %v538_v20  ;;  %v558_v45 = vld [vmem:[#allocation5 + $0xcc0] sm:$0xff]  ;;  %v327_v11 = vld [vmem:[#allocation5 + $0x588] sm:$0xff] }
 0x109   :  { %3473 = vmatpush1.bf16.msra.mxu1 %v6623_v53  ;;  %v6688_v53 = vcombine.high %v279_v22, %v283_v24  ;;  %v562_v46 = vld [vmem:[#allocation5 + $0xce0] sm:$0xff]  ;;  %v331_v13 = vld [vmem:[#allocation5 + $0x5a8] sm:$0xff] }
 0x10a   :  { %3474 = vmatprep.subr.bf16.mxu1 %v6632_v54  ;;  %v546_v54 = vld [vmem:[#allocation5 + $0xc60] sm:$0xff]  ;;  %v339_v24 = vld [vmem:[#allocation5 + $0x5e8] sm:$0xff] }
 0x10b   :  { %3391 = vmatpush1.bf16.msra.mxu0 %v6877_v27  ;;  %v542_v27 = vld [vmem:[#allocation5 + $0xc40] sm:$0xff] }
 0x10c   :  { %3392 = vmatprep.subr.bf16.mxu0 %v6886_v32  ;;  %v8479_v32 = vld [vmem:[#allocation2 + $0x18] sm:$0xff]  ;;  %v566_v55 = vld [vmem:[#allocation5 + $0xd00] sm:$0xff] }
 0x10d   :  { %3475 = vmatpush1.bf16.msra.mxu1 %v6631_v34  ;;  %v8483_v34 = vcombine.low %v8465_v19, %v8465_v19  ;;  %v6695_v19 = vcombine.low %v287_v29, %v291_v30  ;;  %v570_v56 = vld [vmem:[#allocation5 + $0xd20] sm:$0xff] }
 0x10e   :  { %3476 = vmatprep.subr.bf16.mxu1 %v6640_v36  ;;  %v6696_v36 = vcombine.high %v287_v29, %v291_v30  ;;  %v574_v1 = vld [vmem:[#allocation5 + $0xd40] sm:$0xff]  ;;  %v343_v29 = vld [vmem:[#allocation5 + $0x608] sm:$0xff] }
 0x10f   :  { %3393 = vmatpush1.bf16.msra.mxu0 %v6885_v35  ;;  %v6941_v35 = vcombine.low %v534_v18, %v538_v20  ;;  %v578_v2 = vld [vmem:[#allocation5 + $0xd60] sm:$0xff] }
 0x110   :  { %3394 = vmatprep.subr.bf16.mxu0 %v6894_v40  ;;  %v6950_v40 = vcombine.high %v542_v27, %v546_v54  ;;  %v582_v9 = vld [vmem:[#allocation5 + $0xd80] sm:$0xff] }
 0x111   :  { %3477 = vmatpush1.bf16.msra.mxu1 %v6639_v42  ;;  %v8487_v42 = vcombine.high %v8479_v32, %v8479_v32  ;;  %v586_v10 = vld [vmem:[#allocation5 + $0xda0] sm:$0xff] }
 0x112   :  { %3478 = vmatprep.subr.bf16.mxu1 %v6648_v44  ;;  %v6704_v44 = vcombine.high %v295_v39, %v299_v41  ;;  %v590_v18 = vld [vmem:[#allocation5 + $0xdc0] sm:$0xff]  ;;  %v6990_v22 = vcombine.high %v582_v9, %v586_v10 }
 0x113   :  { %3395 = vmatpush1.bf16.msra.mxu0 %v6893_v43  ;;  %v6949_v43 = vcombine.low %v542_v27, %v546_v54  ;;  %v594_v20 = vld [vmem:[#allocation5 + $0xde0] sm:$0xff] }
 0x114   :  { %3396 = vmatprep.subr.bf16.mxu0 %v6902_v48  ;;  %v6958_v48 = vcombine.high %v550_v37, %v554_v38  ;;  %v598_v27 = vld [vmem:[#allocation5 + $0xe00] sm:$0xff]  ;;  %v6998_v30 = vcombine.high %v590_v18, %v594_v20 }
 0x115   :  { %3479 = vmatpush1.bf16.msra.mxu1 %v6647_v50  ;;  %v6703_v50 = vcombine.low %v295_v39, %v299_v41  ;;  %v602_v54 = vld [vmem:[#allocation5 + $0xe20] sm:$0xff]  ;;  %v351_v39 = vld [vmem:[#allocation5 + $0x648] sm:$0xff] }
 0x116   :  { %3480 = vmatprep.subr.bf16.mxu1 %v6656_v52  ;;  %v6712_v52 = vcombine.high %v303_v47, %v307_v49  ;;  %v355_v41 = vld [vmem:[#allocation5 + $0x668] sm:$0xff] }
 0x117   :  { %3397 = vmatpush1.bf16.msra.mxu0 %v6901_v51  ;;  %v6957_v51 = vcombine.low %v550_v37, %v554_v38  ;;  %v606_v37 = vld [vmem:[#allocation5 + $0xe40] sm:$0xff] }
 0x118   :  { %3398 = vmatprep.subr.bf16.mxu0 %v6910_v59  ;;  %v6966_v59 = vcombine.high %v558_v45, %v562_v46  ;;  %v610_v38 = vld [vmem:[#allocation5 + $0xe60] sm:$0xff] }
 0x119   :  { %3481 = vmatpush1.bf16.msra.mxu1 %v6655_v62  ;;  %v6711_v62 = vcombine.low %v303_v47, %v307_v49  ;;  %v359_v47 = vld [vmem:[#allocation5 + $0x688] sm:$0xff] }
 0x11a   :  { %3482 = vmatprep.subr.bf16.mxu1 %v6664_v0  ;;  %v6720_v0 = vcombine.high %v311_v57, %v315_v60  ;;  %v363_v49 = vld [vmem:[#allocation5 + $0x6a8] sm:$0xff] }
 0x11b   :  { %3399 = vmatpush1.bf16.msra.mxu0 %v6909_v63  ;;  %v6965_v63 = vcombine.low %v558_v45, %v562_v46  ;;  %v614_v45 = vld [vmem:[#allocation5 + $0xe80] sm:$0xff] }
 0x11c   :  { %3400 = vmatprep.subr.bf16.mxu0 %v6918_v4  ;;  %v6974_v4 = vcombine.high %v566_v55, %v570_v56  ;;  %v618_v46 = vld [vmem:[#allocation5 + $0xea0] sm:$0xff] }
 0x11d   :  { %3483 = vmatpush1.bf16.msra.mxu1 %v6663_v6  ;;  %v6719_v6 = vcombine.low %v311_v57, %v315_v60  ;;  %v367_v57 = vld [vmem:[#allocation5 + $0x6c8] sm:$0xff] }
 0x11e   :  { %3484 = vmatprep.subr.bf16.mxu1 %v6672_v8  ;;  %v6728_v8 = vcombine.high %v319_v3, %v323_v5  ;;  %v371_v60 = vld [vmem:[#allocation5 + $0x6e8] sm:$0xff] }
 0x11f   :  { %3401 = vmatpush1.bf16.msra.mxu0 %v6917_v7  ;;  %v6973_v7 = vcombine.low %v566_v55, %v570_v56  ;;  %v622_v55 = vld [vmem:[#allocation5 + $0xec0] sm:$0xff] }
 0x120   :  { %3402 = vmatprep.subr.bf16.mxu0 %v6926_v12  ;;  %v6982_v12 = vcombine.high %v574_v1, %v578_v2  ;;  %v626_v56 = vld [vmem:[#allocation5 + $0xee0] sm:$0xff] }
 0x121   :  { %3485 = vmatpush1.bf16.msra.mxu1 %v6671_v14  ;;  %v6727_v14 = vcombine.low %v319_v3, %v323_v5  ;;  %v375_v3 = vld [vmem:[#allocation5 + $0x708] sm:$0xff] }
 0x122   :  { %3486 = vmatprep.subr.bf16.mxu1 %v6680_v17  ;;  %v6736_v17 = vcombine.high %v327_v11, %v331_v13  ;;  %v379_v5 = vld [vmem:[#allocation5 + $0x728] sm:$0xff] }
 0x123   :  { %3403 = vmatpush1.bf16.msra.mxu0 %v6925_v15  ;;  %v6981_v15 = vcombine.low %v574_v1, %v578_v2  ;;  %v630_v1 = vld [vmem:[#allocation5 + $0xf00] sm:$0xff] }
 0x124   :  { %3404 = vmatprep.subr.bf16.mxu0 %v6934_v23  ;;  %v335_v23 = vld [vmem:[#allocation5 + $0x5c8] sm:$0xff]  ;;  %v634_v2 = vld [vmem:[#allocation5 + $0xf20] sm:$0xff] }
 0x125   :  { %3487 = vmatpush1.bf16.msra.mxu1 %v6679_v25  ;;  %v6735_v25 = vcombine.low %v327_v11, %v331_v13  ;;  %v383_v11 = vld [vmem:[#allocation5 + $0x748] sm:$0xff] }
 0x126   :  { %3497 = vmatprep.subr.bf16.mxu1 %v6688_v53  ;;  %v6744_v53 = vcombine.high %v335_v23, %v339_v24  ;;  %v387_v13 = vld [vmem:[#allocation5 + $0x768] sm:$0xff] }
 0x127   :  { %3405 = vmatpush1.bf16.msra.mxu0 %v6933_v26  ;;  %v6989_v26 = vcombine.low %v582_v9, %v586_v10  ;;  %v638_v9 = vld [vmem:[#allocation5 + $0xf40] sm:$0xff] }
 0x128   :  { %3415 = vmatprep.subr.bf16.mxu0 %v6942_v31  ;;  %3489 = vmatmul.mubr.bf16.vlgmr.msra.gmra.mrb[4].mxu1 %v8463_v16  ;;  %v347_v31 = vld [vmem:[#allocation5 + $0x628] sm:$0xff]  ;;  %v642_v10 = vld [vmem:[#allocation5 + $0xf60] sm:$0xff] }
 0x129   :  { %3498 = vmatpush1.bf16.msra.mxu1 %v6687_v33  ;;  %3529 = vmatprep.mubr.bf16.mxu1 %v8457_v61  ;;  %v6743_v33 = vcombine.low %v335_v23, %v339_v24  ;;  %v7046_v23 = vcombine.high %v638_v9, %v642_v10  ;;  %v395_v24 = vld [vmem:[#allocation5 + $0x7a8] sm:$0xff] }
 0x12a   :  { %3407 = vmatmul.mubr.bf16.vlgmr.msra.gmra.mrb[0].mxu0 %v8483_v34  ;;  %3499 = vmatprep.subr.bf16.mxu1 %v6696_v36  ;;  %v6752_v36 = vcombine.high %v343_v29, %v347_v31 }
 0x12b   :  { %3416 = vmatpush1.bf16.msra.mxu0 %v6941_v35  ;;  %3447 = vmatprep.mubr.bf16.mxu0 %v8487_v42  ;;  %v6997_v35 = vcombine.low %v590_v18, %v594_v20  ;;  %v646_v18 = vld [vmem:[#allocation5 + $0xf80] sm:$0xff] }
 0x12c   :  { %3417 = vmatprep.subr.bf16.mxu0 %v6950_v40  ;;  %v7006_v40 = vcombine.high %v598_v27, %v602_v54  ;;  %v650_v20 = vld [vmem:[#allocation5 + $0xfa0] sm:$0xff] }
 0x12d   :  { %3500 = vmatpush1.bf16.msra.mxu1 %v6695_v19  ;;  %v6751_v19 = vcombine.low %v343_v29, %v347_v31  ;;  %v399_v29 = vld [vmem:[#allocation5 + $0x7c8] sm:$0xff] }
 0x12e   :  { %3501 = vmatprep.subr.bf16.mxu1 %v6704_v44  ;;  %v6760_v44 = vcombine.high %v351_v39, %v355_v41  ;;  %v403_v31 = vld [vmem:[#allocation5 + $0x7e8] sm:$0xff] }
 0x12f   :  { %3418 = vmatpush1.bf16.msra.mxu0 %v6949_v43  ;;  %v7005_v43 = vcombine.low %v598_v27, %v602_v54  ;;  %v654_v27 = vld [vmem:[#allocation5 + $0xfc0] sm:$0xff] }
 0x130   :  { %3419 = vmatprep.subr.bf16.mxu0 %v6958_v48  ;;  %v7014_v48 = vcombine.high %v606_v37, %v610_v38  ;;  %v658_v54 = vld [vmem:[#allocation5 + $0xfe0] sm:$0xff] }
 0x131   :  { %3502 = vmatpush1.bf16.msra.mxu1 %v6703_v50  ;;  %v6759_v50 = vcombine.low %v351_v39, %v355_v41  ;;  %v152_v39 = vld [vmem:[#allocation5 + $0x10] sm:$0xff] }
 0x132   :  { %3503 = vmatprep.subr.bf16.mxu1 %v6712_v52  ;;  %v6768_v52 = vcombine.high %v359_v47, %v363_v49  ;;  %v156_v41 = vld [vmem:[#allocation5 + $0x30] sm:$0xff] }
 0x133   :  { %3420 = vmatpush1.bf16.msra.mxu0 %v6957_v51  ;;  %v7013_v51 = vcombine.low %v606_v37, %v610_v38  ;;  %v407_v37 = vld [vmem:[#allocation5 + $0x808] sm:$0xff] }
 0x134   :  { %3421 = vmatprep.subr.bf16.mxu0 %v6966_v59  ;;  %v7022_v59 = vcombine.high %v614_v45, %v618_v46  ;;  %v411_v38 = vld [vmem:[#allocation5 + $0x828] sm:$0xff] }
 0x135   :  { %3504 = vmatpush1.bf16.msra.mxu1 %v6711_v62  ;;  %v6767_v62 = vcombine.low %v359_v47, %v363_v49  ;;  %v160_v47 = vld [vmem:[#allocation5 + $0x50] sm:$0xff] }
 0x136   :  { %3505 = vmatprep.subr.bf16.mxu1 %v6720_v0  ;;  %v6776_v0 = vcombine.high %v367_v57, %v371_v60  ;;  %v164_v49 = vld [vmem:[#allocation5 + $0x70] sm:$0xff] }
 0x137   :  { %3422 = vmatpush1.bf16.msra.mxu0 %v6965_v63  ;;  %v7021_v63 = vcombine.low %v614_v45, %v618_v46  ;;  %v415_v45 = vld [vmem:[#allocation5 + $0x848] sm:$0xff] }
 0x138   :  { %3423 = vmatprep.subr.bf16.mxu0 %v6974_v4  ;;  %v7030_v4 = vcombine.high %v622_v55, %v626_v56  ;;  %v419_v46 = vld [vmem:[#allocation5 + $0x868] sm:$0xff] }
 0x139   :  { %3506 = vmatpush1.bf16.msra.mxu1 %v6719_v6  ;;  %v6775_v6 = vcombine.low %v367_v57, %v371_v60  ;;  %v427_v57 = vld [vmem:[#allocation5 + $0x8a8] sm:$0xff]  ;;  %v6570_v60 = vcombine.high %v160_v47, %v164_v49 }
 0x13a   :  { %3507 = vmatprep.subr.bf16.mxu1 %v6728_v8  ;;  %v6784_v8 = vcombine.high %v375_v3, %v379_v5 }
 0x13b   :  { %3424 = vmatpush1.bf16.msra.mxu0 %v6973_v7  ;;  %v7029_v7 = vcombine.low %v622_v55, %v626_v56  ;;  %v6824_v55 = vcombine.high %v415_v45, %v419_v46  ;;  %v423_v56 = vld [vmem:[#allocation5 + $0x888] sm:$0xff] }
 0x13c   :  { %3425 = vmatprep.subr.bf16.mxu0 %v6982_v12  ;;  %v7038_v12 = vcombine.high %v630_v1, %v634_v2 }
 0x13d   :  { %3508 = vmatpush1.bf16.msra.mxu1 %v6727_v14  ;;  %v6783_v14 = vcombine.low %v375_v3, %v379_v5  ;;  %v176_v3 = vld [vmem:[#allocation5 + $0xd0] sm:$0xff] }
 0x13e   :  { %3509 = vmatprep.subr.bf16.mxu1 %v6736_v17  ;;  %v6792_v17 = vcombine.high %v383_v11, %v387_v13  ;;  %v180_v5 = vld [vmem:[#allocation5 + $0xf0] sm:$0xff] }
 0x13f   :  { %3426 = vmatpush1.bf16.msra.mxu0 %v6981_v15  ;;  %v7037_v15 = vcombine.low %v630_v1, %v634_v2  ;;  %v431_v1 = vld [vmem:[#allocation5 + $0x8c8] sm:$0xff] }
 0x140   :  { %3427 = vmatprep.subr.bf16.mxu0 %v6990_v22  ;;  %v391_v22 = vld [vmem:[#allocation5 + $0x788] sm:$0xff] }
 0x141   :  { %3510 = vmatpush1.bf16.msra.mxu1 %v6735_v25  ;;  %v6791_v25 = vcombine.low %v383_v11, %v387_v13  ;;  %v435_v2 = vld [vmem:[#allocation5 + $0x8e8] sm:$0xff]  ;;  %v184_v11 = vld [vmem:[#allocation5 + $0x110] sm:$0xff] }
 0x142   :  { %3511 = vmatprep.subr.bf16.mxu1 %v6744_v53  ;;  %v6800_v53 = vcombine.high %v391_v22, %v395_v24  ;;  %v188_v13 = vld [vmem:[#allocation5 + $0x130] sm:$0xff] }
 0x143   :  { %3428 = vmatpush1.bf16.msra.mxu0 %v6989_v26  ;;  %v7045_v26 = vcombine.low %v638_v9, %v642_v10  ;;  %v439_v9 = vld [vmem:[#allocation5 + $0x908] sm:$0xff] }
 0x144   :  { %3429 = vmatprep.subr.bf16.mxu0 %v6998_v30  ;;  %v7054_v30 = vcombine.high %v646_v18, %v650_v20  ;;  %v443_v10 = vld [vmem:[#allocation5 + $0x928] sm:$0xff] }
 0x145   :  { %3512 = vmatpush1.bf16.msra.mxu1 %v6743_v33  ;;  %v6799_v33 = vcombine.low %v391_v22, %v395_v24  ;;  %v192_v22 = vld [vmem:[#allocation5 + $0x150] sm:$0xff] }
 0x146   :  { %3513 = vmatprep.subr.bf16.mxu1 %v6752_v36  ;;  %v6808_v36 = vcombine.high %v399_v29, %v403_v31  ;;  %v196_v24 = vld [vmem:[#allocation5 + $0x170] sm:$0xff] }
 0x147   :  { %3430 = vmatpush1.bf16.msra.mxu0 %v6997_v35  ;;  %v7053_v35 = vcombine.low %v646_v18, %v650_v20  ;;  %v447_v18 = vld [vmem:[#allocation5 + $0x948] sm:$0xff] }
 0x148   :  { %3431 = vmatprep.subr.bf16.mxu0 %v7006_v40  ;;  %v7062_v40 = vcombine.high %v654_v27, %v658_v54  ;;  %v451_v20 = vld [vmem:[#allocation5 + $0x968] sm:$0xff] }
 0x149   :  { %3514 = vmatpush1.bf16.msra.mxu1 %v6751_v19  ;;  %v6807_v19 = vcombine.low %v399_v29, %v403_v31  ;;  %v200_v29 = vld [vmem:[#allocation5 + $0x190] sm:$0xff] }
 0x14a   :  { %3515 = vmatprep.subr.bf16.mxu1 %v6760_v44  ;;  %v6816_v44 = vcombine.high %v407_v37, %v411_v38  ;;  %v204_v31 = vld [vmem:[#allocation5 + $0x1b0] sm:$0xff] }
 0x14b   :  { %3432 = vmatpush1.bf16.msra.mxu0 %v7005_v43  ;;  %v7061_v43 = vcombine.low %v654_v27, %v658_v54  ;;  %v455_v27 = vld [vmem:[#allocation5 + $0x988] sm:$0xff] }
 0x14c   :  { %3433 = vmatprep.subr.bf16.mxu0 %v7014_v48  ;;  %v6562_v48 = vcombine.high %v152_v39, %v156_v41  ;;  %v459_v54 = vld [vmem:[#allocation5 + $0x9a8] sm:$0xff] }
 0x14d   :  { %3516 = vmatpush1.bf16.msra.mxu1 %v6759_v50  ;;  %v8495_v50 = vcombine.low %v8479_v32, %v8479_v32  ;;  %v6569_v32 = vcombine.low %v160_v47, %v164_v49  ;;  %v216_v47 = vld [vmem:[#allocation5 + $0x210] sm:$0xff] }
 0x14e   :  { %3517 = vmatprep.subr.bf16.mxu1 %v6768_v52  ;;  %v6561_v52 = vcombine.low %v152_v39, %v156_v41  ;;  %v208_v39 = vld [vmem:[#allocation5 + $0x1d0] sm:$0xff] }
 0x14f   :  { %3434 = vmatpush1.bf16.msra.mxu0 %v7013_v51  ;;  %v6815_v51 = vcombine.low %v407_v37, %v411_v38  ;;  %v463_v37 = vld [vmem:[#allocation5 + $0x9c8] sm:$0xff]  ;;  %v212_v41 = vld [vmem:[#allocation5 + $0x1f0] sm:$0xff] }
 0x150   :  { %3435 = vmatprep.subr.bf16.mxu0 %v7022_v59  ;;  %v168_v59 = vld [vmem:[#allocation5 + $0x90] sm:$0xff]  ;;  %v467_v38 = vld [vmem:[#allocation5 + $0x9e8] sm:$0xff] }
 0x151   :  { %3518 = vmatpush1.bf16.msra.mxu1 %v6767_v62  ;;  %v172_v62 = vld [vmem:[#allocation5 + $0xb0] sm:$0xff] }
 0x152   :  { %3519 = vmatprep.subr.bf16.mxu1 %v6776_v0  ;;  %v6832_v0 = vcombine.high %v423_v56, %v427_v57  ;;  %v220_v49 = vld [vmem:[#allocation5 + $0x230] sm:$0xff] }
 0x153   :  { %3436 = vmatpush1.bf16.msra.mxu0 %v7021_v63  ;;  %v6823_v63 = vcombine.low %v415_v45, %v419_v46  ;;  %v471_v45 = vld [vmem:[#allocation5 + $0xa08] sm:$0xff] }
 0x154   :  { %3437 = vmatprep.subr.bf16.mxu0 %v7030_v4  ;;  %v6578_v4 = vcombine.high %v168_v59, %v172_v62  ;;  %v475_v46 = vld [vmem:[#allocation5 + $0xa28] sm:$0xff] }
 0x155   :  { %3520 = vmatpush1.bf16.msra.mxu1 %v6775_v6  ;;  %v6831_v6 = vcombine.low %v423_v56, %v427_v57  ;;  %v479_v56 = vld [vmem:[#allocation5 + $0xa48] sm:$0xff] }
 0x156   :  { %3521 = vmatprep.subr.bf16.mxu1 %v6784_v8  ;;  %v6840_v8 = vcombine.high %v431_v1, %v435_v2  ;;  %v483_v57 = vld [vmem:[#allocation5 + $0xa68] sm:$0xff] }
 0x157   :  { %3438 = vmatpush1.bf16.msra.mxu0 %v7029_v7  ;;  %v6577_v7 = vcombine.low %v168_v59, %v172_v62  ;;  %v224_v59 = vld [vmem:[#allocation5 + $0x250] sm:$0xff] }
 0x158   :  { %3439 = vmatprep.subr.bf16.mxu0 %v7038_v12  ;;  %v6586_v12 = vcombine.high %v176_v3, %v180_v5  ;;  %v228_v62 = vld [vmem:[#allocation5 + $0x270] sm:$0xff] }
 0x159   :  { %3522 = vmatpush1.bf16.msra.mxu1 %v6783_v14  ;;  %v6839_v14 = vcombine.low %v431_v1, %v435_v2  ;;  %v487_v1 = vld [vmem:[#allocation5 + $0xa88] sm:$0xff] }
 0x15a   :  { %3523 = vmatprep.subr.bf16.mxu1 %v6792_v17  ;;  %v6848_v17 = vcombine.high %v439_v9, %v443_v10  ;;  %v491_v2 = vld [vmem:[#allocation5 + $0xaa8] sm:$0xff] }
 0x15b   :  { %3440 = vmatpush1.bf16.msra.mxu0 %v7037_v15  ;;  %v6585_v15 = vcombine.low %v176_v3, %v180_v5  ;;  %v232_v3 = vld [vmem:[#allocation5 + $0x290] sm:$0xff] }
 0x15c   :  { %3441 = vmatprep.subr.bf16.mxu0 %v7046_v23  ;;  %v6594_v23 = vcombine.high %v184_v11, %v188_v13  ;;  %v236_v5 = vld [vmem:[#allocation5 + $0x2b0] sm:$0xff] }
 0x15d   :  { %3524 = vmatpush1.bf16.msra.mxu1 %v6791_v25  ;;  %v6847_v25 = vcombine.low %v439_v9, %v443_v10  ;;  %v495_v9 = vld [vmem:[#allocation5 + $0xac8] sm:$0xff] }
 0x15e   :  { %3525 = vmatprep.subr.bf16.mxu1 %v6800_v53  ;;  %v6856_v53 = vcombine.high %v447_v18, %v451_v20  ;;  %v499_v10 = vld [vmem:[#allocation5 + $0xae8] sm:$0xff] }
 0x15f   :  { %3442 = vmatpush1.bf16.msra.mxu0 %v7045_v26  ;;  %v6593_v26 = vcombine.low %v184_v11, %v188_v13  ;;  %v240_v11 = vld [vmem:[#allocation5 + $0x2d0] sm:$0xff] }
 0x160   :  { %3443 = vmatprep.subr.bf16.mxu0 %v7054_v30  ;;  %v6602_v30 = vcombine.high %v192_v22, %v196_v24  ;;  %v244_v13 = vld [vmem:[#allocation5 + $0x2f0] sm:$0xff] }
 0x161   :  { %3526 = vmatpush1.bf16.msra.mxu1 %v6799_v33  ;;  %v6855_v33 = vcombine.low %v447_v18, %v451_v20  ;;  %v503_v18 = vld [vmem:[#allocation5 + $0xb08] sm:$0xff] }
 0x162   :  { %3527 = vmatprep.subr.bf16.mxu1 %v6808_v36  ;;  %v6864_v36 = vcombine.high %v455_v27, %v459_v54  ;;  %v507_v20 = vld [vmem:[#allocation5 + $0xb28] sm:$0xff] }
 0x163   :  { %3444 = vmatpush1.bf16.msra.mxu0 %v7053_v35  ;;  %v6601_v35 = vcombine.low %v192_v22, %v196_v24  ;;  %v248_v22 = vld [vmem:[#allocation5 + $0x310] sm:$0xff] }
 0x164   :  { %3445 = vmatprep.subr.bf16.mxu0 %v7062_v40  ;;  %v6610_v40 = vcombine.high %v200_v29, %v204_v31  ;;  %v252_v24 = vld [vmem:[#allocation5 + $0x330] sm:$0xff] }
 0x165   :  { %3528 = vmatpush1.bf16.msra.mxu1 %v6807_v19  ;;  %v6863_v19 = vcombine.low %v455_v27, %v459_v54  ;;  %v511_v27 = vld [vmem:[#allocation5 + $0xb48] sm:$0xff] }
 0x166   :  { %3538 = vmatprep.subr.bf16.mxu1 %v6816_v44  ;;  %v6872_v44 = vcombine.high %v463_v37, %v467_v38  ;;  %v515_v54 = vld [vmem:[#allocation5 + $0xb68] sm:$0xff] }
 0x167   :  { %3446 = vmatpush1.bf16.msra.mxu0 %v7061_v43  ;;  %v6609_v43 = vcombine.low %v200_v29, %v204_v31  ;;  %v256_v29 = vld [vmem:[#allocation5 + $0x350] sm:$0xff] }
 0x168   :  { %3620 = vmatprep.subr.bf16.mxu0 %v6562_v48  ;;  %3530 = vmatmul.mubr.bf16.vlgmr.msra.gmra.mrb[4].mxu1 %v8469_v21  ;;  %v6618_v48 = vcombine.high %v208_v39, %v212_v41  ;;  %v260_v31 = vld [vmem:[#allocation5 + $0x370] sm:$0xff] }
 0x169   :  { %3539 = vmatpush1.bf16.msra.mxu1 %v6815_v51  ;;  %3570 = vmatprep.mubr.bf16.mxu1 %v8473_v28  ;;  %v6871_v51 = vcombine.low %v463_v37, %v467_v38  ;;  %v519_v37 = vld [vmem:[#allocation5 + $0xb88] sm:$0xff]  ;;  %v6666_v38 = vcombine.high %v256_v29, %v260_v31 }
 0x16a   :  { %3448 = vmatmul.mubr.bf16.vlgmr.msra.gmra.mrb[0].mxu0 %v8495_v50  ;;  %3540 = vmatprep.subr.bf16.mxu1 %v6824_v55  ;;  %v6880_v55 = vcombine.high %v471_v45, %v475_v46 }
 0x16b   :  { %3621 = vmatpush1.bf16.msra.mxu0 %v6561_v52  ;;  %3652 = vmatprep.mubr.bf16.mxu0 %v8453_v58  ;;  %v6617_v52 = vcombine.low %v208_v39, %v212_v41  ;;  %v523_v39 = vld [vmem:[#allocation5 + $0xba8] sm:$0xff]  ;;  %v268_v41 = vld [vmem:[#allocation5 + $0x3b0] sm:$0xff] }
 0x16c   :  { %3622 = vmatprep.subr.bf16.mxu0 %v6570_v60  ;;  %v6626_v60 = vcombine.high %v216_v47, %v220_v49 }
 0x16d   :  { %3541 = vmatpush1.bf16.msra.mxu1 %v6823_v63  ;;  %v6879_v63 = vcombine.low %v471_v45, %v475_v46  ;;  %v527_v46 = vld [vmem:[#allocation5 + $0xbc8] sm:$0xff] }
 0x16e   :  { %3542 = vmatprep.subr.bf16.mxu1 %v6832_v0  ;;  %v6888_v0 = vcombine.high %v479_v56, %v483_v57 }
 0x16f   :  { %3623 = vmatpush1.bf16.msra.mxu0 %v6569_v32  ;;  %v6625_v32 = vcombine.low %v216_v47, %v220_v49  ;;  %v531_v47 = vld [vmem:[#allocation5 + $0xbe8] sm:$0xff]  ;;  %v276_v49 = vld [vmem:[#allocation5 + $0x3f0] sm:$0xff] }
 0x170   :  { %3624 = vmatprep.subr.bf16.mxu0 %v6578_v4  ;;  %v6634_v4 = vcombine.high %v224_v59, %v228_v62 }
 0x171   :  { %3543 = vmatpush1.bf16.msra.mxu1 %v6831_v6  ;;  %v6887_v6 = vcombine.low %v479_v56, %v483_v57  ;;  %v535_v57 = vld [vmem:[#allocation5 + $0xc08] sm:$0xff] }
 0x172   :  { %3544 = vmatprep.subr.bf16.mxu1 %v6840_v8  ;;  %v6896_v8 = vcombine.high %v487_v1, %v491_v2 }
 0x173   :  { %3625 = vmatpush1.bf16.msra.mxu0 %v6577_v7  ;;  %v6633_v7 = vcombine.low %v224_v59, %v228_v62  ;;  %v539_v59 = vld [vmem:[#allocation5 + $0xc28] sm:$0xff]  ;;  %v284_v62 = vld [vmem:[#allocation5 + $0x430] sm:$0xff] }
 0x174   :  { %3626 = vmatprep.subr.bf16.mxu0 %v6586_v12  ;;  %v6642_v12 = vcombine.high %v232_v3, %v236_v5 }
 0x175   :  { %3545 = vmatpush1.bf16.msra.mxu1 %v6839_v14  ;;  %v6895_v14 = vcombine.low %v487_v1, %v491_v2  ;;  %v543_v2 = vld [vmem:[#allocation5 + $0xc48] sm:$0xff] }
 0x176   :  { %3546 = vmatprep.subr.bf16.mxu1 %v6848_v17  ;;  %v6904_v17 = vcombine.high %v495_v9, %v499_v10 }
 0x177   :  { %3627 = vmatpush1.bf16.msra.mxu0 %v6585_v15  ;;  %v6641_v15 = vcombine.low %v232_v3, %v236_v5  ;;  %v547_v3 = vld [vmem:[#allocation5 + $0xc68] sm:$0xff]  ;;  %v292_v5 = vld [vmem:[#allocation5 + $0x470] sm:$0xff] }
 0x178   :  { %3628 = vmatprep.subr.bf16.mxu0 %v6594_v23  ;;  %v6650_v23 = vcombine.high %v240_v11, %v244_v13 }
 0x179   :  { %3547 = vmatpush1.bf16.msra.mxu1 %v6847_v25  ;;  %v6903_v25 = vcombine.low %v495_v9, %v499_v10  ;;  %v551_v10 = vld [vmem:[#allocation5 + $0xc88] sm:$0xff] }
 0x17a   :  { %3548 = vmatprep.subr.bf16.mxu1 %v6856_v53  ;;  %v6912_v53 = vcombine.high %v503_v18, %v507_v20 }
 0x17b   :  { %3629 = vmatpush1.bf16.msra.mxu0 %v6593_v26  ;;  %v6649_v26 = vcombine.low %v240_v11, %v244_v13  ;;  %v555_v11 = vld [vmem:[#allocation5 + $0xca8] sm:$0xff]  ;;  %v300_v13 = vld [vmem:[#allocation5 + $0x4b0] sm:$0xff] }
 0x17c   :  { %3630 = vmatprep.subr.bf16.mxu0 %v6602_v30  ;;  %v6658_v30 = vcombine.high %v248_v22, %v252_v24 }
 0x17d   :  { %3549 = vmatpush1.bf16.msra.mxu1 %v6855_v33  ;;  %v6911_v33 = vcombine.low %v503_v18, %v507_v20  ;;  %v559_v20 = vld [vmem:[#allocation5 + $0xcc8] sm:$0xff] }
 0x17e   :  { %3550 = vmatprep.subr.bf16.mxu1 %v6864_v36  ;;  %v6920_v36 = vcombine.high %v511_v27, %v515_v54 }
 0x17f   :  { %3631 = vmatpush1.bf16.msra.mxu0 %v6601_v35  ;;  %v6657_v35 = vcombine.low %v248_v22, %v252_v24  ;;  %v563_v22 = vld [vmem:[#allocation5 + $0xce8] sm:$0xff]  ;;  %v308_v24 = vld [vmem:[#allocation5 + $0x4f0] sm:$0xff] }
 0x180   :  { %3632 = vmatprep.subr.bf16.mxu0 %v6610_v40  ;;  %v264_v40 = vld [vmem:[#allocation5 + $0x390] sm:$0xff] }
 0x181   :  { %3551 = vmatpush1.bf16.msra.mxu1 %v6863_v19  ;;  %v6919_v19 = vcombine.low %v511_v27, %v515_v54  ;;  %v6674_v45 = vcombine.high %v264_v40, %v268_v41  ;;  %v567_v54 = vld [vmem:[#allocation5 + $0xd08] sm:$0xff] }
 0x182   :  { %3552 = vmatprep.subr.bf16.mxu1 %v6872_v44  ;;  %v6928_v44 = vcombine.high %v519_v37, %v523_v39 }
 0x183   :  { %3633 = vmatpush1.bf16.msra.mxu0 %v6609_v43  ;;  %v6665_v43 = vcombine.low %v256_v29, %v260_v31  ;;  %v571_v29 = vld [vmem:[#allocation5 + $0xd28] sm:$0xff]  ;;  %v316_v31 = vld [vmem:[#allocation5 + $0x530] sm:$0xff] }
 0x184   :  { %3634 = vmatprep.subr.bf16.mxu0 %v6618_v48  ;;  %v272_v48 = vld [vmem:[#allocation5 + $0x3d0] sm:$0xff] }
 0x185   :  { %3553 = vmatpush1.bf16.msra.mxu1 %v6871_v51  ;;  %v6927_v51 = vcombine.low %v519_v37, %v523_v39  ;;  %v6682_v56 = vcombine.high %v272_v48, %v276_v49  ;;  %v579_v39 = vld [vmem:[#allocation5 + $0xd68] sm:$0xff] }
 0x186   :  { %3554 = vmatprep.subr.bf16.mxu1 %v6880_v55  ;;  %v6936_v55 = vcombine.high %v527_v46, %v531_v47 }
 0x187   :  { %3635 = vmatpush1.bf16.msra.mxu0 %v6617_v52  ;;  %v6673_v52 = vcombine.low %v264_v40, %v268_v41  ;;  %v320_v40 = vld [vmem:[#allocation5 + $0x550] sm:$0xff] }
 0x188   :  { %3636 = vmatprep.subr.bf16.mxu0 %v6626_v60  ;;  %v280_v60 = vld [vmem:[#allocation5 + $0x410] sm:$0xff] }
 0x189   :  { %3555 = vmatpush1.bf16.msra.mxu1 %v6879_v63  ;;  %v6935_v63 = vcombine.low %v527_v46, %v531_v47  ;;  %v6690_v1 = vcombine.high %v280_v60, %v284_v62  ;;  %v324_v41 = vld [vmem:[#allocation5 + $0x570] sm:$0xff]  ;;  %v583_v46 = vld [vmem:[#allocation5 + $0xd88] sm:$0xff] }
 0x18a   :  { %3556 = vmatprep.subr.bf16.mxu1 %v6888_v0  ;;  %v6944_v0 = vcombine.high %v535_v57, %v539_v59  ;;  %v587_v47 = vld [vmem:[#allocation5 + $0xda8] sm:$0xff] }
 0x18b   :  { %3637 = vmatpush1.bf16.msra.mxu0 %v6625_v32  ;;  %v6681_v32 = vcombine.low %v272_v48, %v276_v49  ;;  %v328_v48 = vld [vmem:[#allocation5 + $0x590] sm:$0xff] }
 0x18c   :  { %3638 = vmatprep.subr.bf16.mxu0 %v6634_v4  ;;  %v288_v4 = vld [vmem:[#allocation5 + $0x450] sm:$0xff] }
 0x18d   :  { %3557 = vmatpush1.bf16.msra.mxu1 %v6887_v6  ;;  %v6943_v6 = vcombine.low %v535_v57, %v539_v59  ;;  %v6698_v9 = vcombine.high %v288_v4, %v292_v5  ;;  %v332_v49 = vld [vmem:[#allocation5 + $0x5b0] sm:$0xff]  ;;  %v591_v59 = vld [vmem:[#allocation5 + $0xdc8] sm:$0xff] }
 0x18e   :  { %3558 = vmatprep.subr.bf16.mxu1 %v6896_v8  ;;  %v6952_v8 = vcombine.high %v543_v2, %v547_v3  ;;  %v6738_v57 = vcombine.high %v328_v48, %v332_v49 }
 0x18f   :  { %3639 = vmatpush1.bf16.msra.mxu0 %v6633_v7  ;;  %v6689_v7 = vcombine.low %v280_v60, %v284_v62  ;;  %v595_v60 = vld [vmem:[#allocation5 + $0xde8] sm:$0xff] }
 0x190   :  { %3640 = vmatprep.subr.bf16.mxu0 %v6642_v12  ;;  %v296_v12 = vld [vmem:[#allocation5 + $0x490] sm:$0xff] }
 0x191   :  { %3559 = vmatpush1.bf16.msra.mxu1 %v6895_v14  ;;  %v6951_v14 = vcombine.low %v543_v2, %v547_v3  ;;  %v6706_v18 = vcombine.high %v296_v12, %v300_v13  ;;  %v6737_v3 = vcombine.low %v328_v48, %v332_v49 }
 0x192   :  { %3560 = vmatprep.subr.bf16.mxu1 %v6904_v17  ;;  %v6960_v17 = vcombine.high %v551_v10, %v555_v11 }
 0x193   :  { %3641 = vmatpush1.bf16.msra.mxu0 %v6641_v15  ;;  %v6697_v15 = vcombine.low %v288_v4, %v292_v5  ;;  %v7000_v4 = vcombine.high %v591_v59, %v595_v60 }
 0x194   :  { %3642 = vmatprep.subr.bf16.mxu0 %v6650_v23  ;;  %v304_v23 = vld [vmem:[#allocation5 + $0x4d0] sm:$0xff] }
 0x195   :  { %3561 = vmatpush1.bf16.msra.mxu1 %v6903_v25  ;;  %v6959_v25 = vcombine.low %v551_v10, %v555_v11  ;;  %v6714_v27 = vcombine.high %v304_v23, %v308_v24  ;;  %v6999_v10 = vcombine.low %v591_v59, %v595_v60 }
 0x196   :  { %3562 = vmatprep.subr.bf16.mxu1 %v6912_v53  ;;  %v6968_v53 = vcombine.high %v559_v20, %v563_v22 }
 0x197   :  { %3643 = vmatpush1.bf16.msra.mxu0 %v6649_v26  ;;  %v6705_v26 = vcombine.low %v296_v12, %v300_v13 }
 0x198   :  { %3644 = vmatprep.subr.bf16.mxu0 %v6658_v30  ;;  %v312_v30 = vld [vmem:[#allocation5 + $0x510] sm:$0xff] }
 0x199   :  { %3563 = vmatpush1.bf16.msra.mxu1 %v6911_v33  ;;  %v6967_v33 = vcombine.low %v559_v20, %v563_v22  ;;  %v6722_v37 = vcombine.high %v312_v30, %v316_v31 }
 0x19a   :  { %3564 = vmatprep.subr.bf16.mxu1 %v6920_v36  ;;  %v6976_v36 = vcombine.high %v567_v54, %v571_v29 }
 0x19b   :  { %3645 = vmatpush1.bf16.msra.mxu0 %v6657_v35  ;;  %v6713_v35 = vcombine.low %v304_v23, %v308_v24 }
 0x19c   :  { %3646 = vmatprep.subr.bf16.mxu0 %v6666_v38  ;;  %v575_v38 = vld [vmem:[#allocation5 + $0xd48] sm:$0xff] }
 0x19d   :  { %3565 = vmatpush1.bf16.msra.mxu1 %v6919_v19  ;;  %v6975_v19 = vcombine.low %v567_v54, %v571_v29 }
 0x19e   :  { %3566 = vmatprep.subr.bf16.mxu1 %v6928_v44  ;;  %v6984_v44 = vcombine.high %v575_v38, %v579_v39 }
 0x19f   :  { %3647 = vmatpush1.bf16.msra.mxu0 %v6665_v43  ;;  %v6721_v43 = vcombine.low %v312_v30, %v316_v31 }
 0x1a0   :  { %3648 = vmatprep.subr.bf16.mxu0 %v6674_v45  ;;  %v6730_v45 = vcombine.high %v320_v40, %v324_v41 }
 0x1a1   :  { %3567 = vmatpush1.bf16.msra.mxu1 %v6927_v51  ;;  %v6983_v51 = vcombine.low %v575_v38, %v579_v39 }
 0x1a2   :  { %3568 = vmatprep.subr.bf16.mxu1 %v6936_v55  ;;  %v6992_v55 = vcombine.high %v583_v46, %v587_v47 }
 0x1a3   :  { %3649 = vmatpush1.bf16.msra.mxu0 %v6673_v52  ;;  %v6729_v52 = vcombine.low %v320_v40, %v324_v41 }
 0x1a4   :  { %3650 = vmatprep.subr.bf16.mxu0 %v6682_v56 }
 0x1a5   :  { %3569 = vmatpush1.bf16.msra.mxu1 %v6935_v63  ;;  %v336_v63 = vld [vmem:[#allocation5 + $0x5d0] sm:$0xff] }
 0x1a6   :  { %3579 = vmatprep.subr.bf16.mxu1 %v6944_v0 }
 0x1a7   :  { %3651 = vmatpush1.bf16.msra.mxu0 %v6681_v32  ;;  %v340_v32 = vld [vmem:[#allocation5 + $0x5f0] sm:$0xff] }
 0x1a8   :  { %3661 = vmatprep.subr.bf16.mxu0 %v6690_v1  ;;  %3571 = vmatmul.mubr.bf16.vlgmr.msra.gmra.mrb[4].mxu1 %v8483_v34  ;;  %v6991_v1 = vcombine.low %v583_v46, %v587_v47  ;;  %v6746_v5 = vcombine.high %v336_v63, %v340_v32  ;;  %v6745_v11 = vcombine.low %v336_v63, %v340_v32 }
 0x1a9   :  { %3580 = vmatpush1.bf16.msra.mxu1 %v6943_v6  ;;  %3611 = vmatprep.mubr.bf16.mxu1 %v8487_v42  ;;  %v599_v6 = vld [vmem:[#allocation5 + $0xe08] sm:$0xff] }
 0x1aa   :  { %3653 = vmatmul.mubr.bf16.vlgmr.msra.gmra.mrb[4].mxu0 %v8463_v16  ;;  %3581 = vmatprep.subr.bf16.mxu1 %v6952_v8  ;;  %v344_v8 = vld [vmem:[#allocation5 + $0x610] sm:$0xff] }
 0x1ab   :  { %3662 = vmatpush1.bf16.msra.mxu0 %v6689_v7  ;;  %3693 = vmatprep.mubr.bf16.mxu0 %v8457_v61  ;;  %v603_v7 = vld [vmem:[#allocation5 + $0xe28] sm:$0xff] }
 0x1ac   :  { %3663 = vmatprep.subr.bf16.mxu0 %v6698_v9  ;;  %v348_v9 = vld [vmem:[#allocation5 + $0x630] sm:$0xff]  ;;  %v7008_v12 = vcombine.high %v599_v6, %v603_v7  ;;  %v7007_v20 = vcombine.low %v599_v6, %v603_v7 }
 0x1ad   :  { %3582 = vmatpush1.bf16.msra.mxu1 %v6951_v14  ;;  %v6754_v13 = vcombine.high %v344_v8, %v348_v9  ;;  %v607_v14 = vld [vmem:[#allocation5 + $0xe48] sm:$0xff]  ;;  %v6753_v22 = vcombine.low %v344_v8, %v348_v9 }
 0x1ae   :  { %3583 = vmatprep.subr.bf16.mxu1 %v6960_v17  ;;  %v352_v17 = vld [vmem:[#allocation5 + $0x650] sm:$0xff]  ;;  %v655_v8 = vld [vmem:[#allocation5 + $0xfc8] sm:$0xff] }
 0x1af   :  { %3664 = vmatpush1.bf16.msra.mxu0 %v6697_v15  ;;  %v611_v15 = vld [vmem:[#allocation5 + $0xe68] sm:$0xff] }
 0x1b0   :  { %3665 = vmatprep.subr.bf16.mxu0 %v6706_v18  ;;  %v356_v18 = vld [vmem:[#allocation5 + $0x670] sm:$0xff]  ;;  %v7016_v23 = vcombine.high %v607_v14, %v611_v15  ;;  %v7015_v54 = vcombine.low %v607_v14, %v611_v15  ;;  %v659_v9 = vld [vmem:[#allocation5 + $0xfe8] sm:$0xff] }
 0x1b1   :  { %3584 = vmatpush1.bf16.msra.mxu1 %v6959_v25  ;;  %v6762_v24 = vcombine.high %v352_v17, %v356_v18  ;;  %v615_v25 = vld [vmem:[#allocation5 + $0xe88] sm:$0xff]  ;;  %v6761_v29 = vcombine.low %v352_v17, %v356_v18  ;;  %v7064_v14 = vcombine.high %v655_v8, %v659_v9  ;;  %v153_v17 = vld [vmem:[#allocation5 + $0x18] sm:$0xff] }
 0x1b2   :  { %3585 = vmatprep.subr.bf16.mxu1 %v6968_v53  ;;  %v360_v53 = vld [vmem:[#allocation5 + $0x690] sm:$0xff]  ;;  %v157_v18 = vld [vmem:[#allocation5 + $0x38] sm:$0xff] }
 0x1b3   :  { %3666 = vmatpush1.bf16.msra.mxu0 %v6705_v26  ;;  %v619_v26 = vld [vmem:[#allocation5 + $0xea8] sm:$0xff] }
 0x1b4   :  { %3667 = vmatprep.subr.bf16.mxu0 %v6714_v27  ;;  %v364_v27 = vld [vmem:[#allocation5 + $0x6b0] sm:$0xff]  ;;  %v7024_v30 = vcombine.high %v615_v25, %v619_v26  ;;  %v7023_v38 = vcombine.low %v615_v25, %v619_v26  ;;  %v6564_v25 = vcombine.high %v153_v17, %v157_v18 }
 0x1b5   :  { %3586 = vmatpush1.bf16.msra.mxu1 %v6967_v33  ;;  %v6770_v31 = vcombine.high %v360_v53, %v364_v27  ;;  %v623_v33 = vld [vmem:[#allocation5 + $0xec8] sm:$0xff]  ;;  %v6769_v39 = vcombine.low %v360_v53, %v364_v27  ;;  %v161_v53 = vld [vmem:[#allocation5 + $0x58] sm:$0xff] }
 0x1b6   :  { %3587 = vmatprep.subr.bf16.mxu1 %v6976_v36  ;;  %v368_v36 = vld [vmem:[#allocation5 + $0x6d0] sm:$0xff]  ;;  %v165_v27 = vld [vmem:[#allocation5 + $0x78] sm:$0xff] }
 0x1b7   :  { %3668 = vmatpush1.bf16.msra.mxu0 %v6713_v35  ;;  %v627_v35 = vld [vmem:[#allocation5 + $0xee8] sm:$0xff] }
 0x1b8   :  { %3669 = vmatprep.subr.bf16.mxu0 %v6722_v37  ;;  %v372_v37 = vld [vmem:[#allocation5 + $0x6f0] sm:$0xff]  ;;  %v7032_v40 = vcombine.high %v623_v33, %v627_v35  ;;  %v7031_v46 = vcombine.low %v623_v33, %v627_v35  ;;  %v6572_v33 = vcombine.high %v161_v53, %v165_v27 }
 0x1b9   :  { %3588 = vmatpush1.bf16.msra.mxu1 %v6975_v19  ;;  %v6778_v41 = vcombine.high %v368_v36, %v372_v37  ;;  %v631_v19 = vld [vmem:[#allocation5 + $0xf08] sm:$0xff]  ;;  %v6777_v47 = vcombine.low %v368_v36, %v372_v37  ;;  %v169_v36 = vld [vmem:[#allocation5 + $0x98] sm:$0xff] }
 0x1ba   :  { %3589 = vmatprep.subr.bf16.mxu1 %v6984_v44  ;;  %v376_v44 = vld [vmem:[#allocation5 + $0x710] sm:$0xff]  ;;  %v173_v37 = vld [vmem:[#allocation5 + $0xb8] sm:$0xff] }
 0x1bb   :  { %3670 = vmatpush1.bf16.msra.mxu0 %v6721_v43  ;;  %v8505_v56 = vpop.f32.mrb[0].mxu1  ;;  %v635_v43 = vld [vmem:[#allocation5 + $0xf28] sm:$0xff] }
 0x1bc   :  { %3671 = vmatprep.subr.bf16.mxu0 %v6730_v45  ;;  %v8507_v62 = vpop.f32.mrb[1].mxu1  ;;  %v380_v45 = vld [vmem:[#allocation5 + $0x730] sm:$0xff]  ;;  %v7040_v48 = vcombine.high %v631_v19, %v635_v43  ;;  %v7039_v59 = vcombine.low %v631_v19, %v635_v43  ;;  %v6580_v19 = vcombine.high %v169_v36, %v173_v37 }
 0x1bd   :  { %v3330_v0 = vpop.f32.mrb[2].mxu1  ;;  %3590 = vmatpush1.bf16.msra.mxu1 %v6983_v51  ;;  %v6786_v49 = vcombine.high %v376_v44, %v380_v45  ;;  %v639_v51 = vld [vmem:[#allocation5 + $0xf48] sm:$0xff]  ;;  %v6785_v60 = vcombine.low %v376_v44, %v380_v45  ;;  %v177_v44 = vld [vmem:[#allocation5 + $0xd8] sm:$0xff] }
 0x1be   :  { %v3331_v2 = vpop.f32.mrb[3].mxu1  ;;  %3591 = vmatprep.subr.bf16.mxu1 %v6992_v55  ;;  %v384_v55 = vld [vmem:[#allocation5 + $0x750] sm:$0xff]  ;;  %v647_v0 = vld [vmem:[#allocation5 + $0xf88] sm:$0xff]  ;;  %v181_v45 = vld [vmem:[#allocation5 + $0xf8] sm:$0xff] }
 0x1bf   :  { %3672 = vmatpush1.bf16.msra.mxu0 %v6729_v52  ;;  %v643_v52 = vld [vmem:[#allocation5 + $0xf68] sm:$0xff]  ;;  %v392_v2 = vld [vmem:[#allocation5 + $0x790] sm:$0xff] }
 0x1c0   :  { %3673 = vmatprep.subr.bf16.mxu0 %v6738_v57  ;;  %v388_v57 = vld [vmem:[#allocation5 + $0x770] sm:$0xff]  ;;  %v7048_v63 = vcombine.high %v639_v51, %v643_v52 }
 0x1c1   :  { %3592 = vmatpush1.bf16.msra.mxu1 %v6991_v1  ;;  %v6794_v32 = vcombine.high %v384_v55, %v388_v57  ;;  %v651_v1 = vld [vmem:[#allocation5 + $0xfa8] sm:$0xff] }
 0x1c2   :  { %3593 = vmatprep.subr.bf16.mxu1 %v7000_v4  ;;  %v7047_v4 = vcombine.low %v639_v51, %v643_v52  ;;  %v7056_v6 = vcombine.high %v647_v0, %v651_v1  ;;  %v6588_v51 = vcombine.high %v177_v44, %v181_v45 }
 0x1c3   :  { %3674 = vmatpush1.bf16.msra.mxu0 %v6737_v3  ;;  %v396_v3 = vld [vmem:[#allocation5 + $0x7b0] sm:$0xff] }
 0x1c4   :  { %3675 = vmatprep.subr.bf16.mxu0 %v6746_v5  ;;  %v6793_v5 = vcombine.low %v384_v55, %v388_v57  ;;  %v6802_v7 = vcombine.high %v392_v2, %v396_v3  ;;  %v185_v55 = vld [vmem:[#allocation5 + $0x118] sm:$0xff] }
 0x1c5   :  { %3594 = vmatpush1.bf16.msra.mxu1 %v6999_v10  ;;  %v400_v10 = vld [vmem:[#allocation5 + $0x7d0] sm:$0xff]  ;;  %v189_v57 = vld [vmem:[#allocation5 + $0x138] sm:$0xff] }
 0x1c6   :  { %3595 = vmatprep.subr.bf16.mxu1 %v7008_v12  ;;  %v7055_v12 = vcombine.low %v647_v0, %v651_v1  ;;  %v6596_v0 = vcombine.high %v185_v55, %v189_v57  ;;  %v193_v1 = vld [vmem:[#allocation5 + $0x158] sm:$0xff] }
 0x1c7   :  { %3676 = vmatpush1.bf16.msra.mxu0 %v6745_v11  ;;  %v404_v11 = vld [vmem:[#allocation5 + $0x7f0] sm:$0xff] }
 0x1c8   :  { %3677 = vmatprep.subr.bf16.mxu0 %v6754_v13  ;;  %v6801_v13 = vcombine.low %v392_v2, %v396_v3  ;;  %v6810_v15 = vcombine.high %v400_v10, %v404_v11  ;;  %v197_v2 = vld [vmem:[#allocation5 + $0x178] sm:$0xff]  ;;  %v448_v3 = vld [vmem:[#allocation5 + $0x950] sm:$0xff] }
 0x1c9   :  { %3596 = vmatpush1.bf16.msra.mxu1 %v7007_v20  ;;  %v408_v20 = vld [vmem:[#allocation5 + $0x810] sm:$0xff] }
 0x1ca   :  { %3597 = vmatprep.subr.bf16.mxu1 %v7016_v23  ;;  %v7063_v23 = vcombine.low %v655_v8, %v659_v9  ;;  %v201_v9 = vld [vmem:[#allocation5 + $0x198] sm:$0xff] }
 0x1cb   :  { %3678 = vmatpush1.bf16.msra.mxu0 %v6753_v22  ;;  %v412_v22 = vld [vmem:[#allocation5 + $0x830] sm:$0xff] }
 0x1cc   :  { %3679 = vmatprep.subr.bf16.mxu0 %v6762_v24  ;;  %v6809_v24 = vcombine.low %v400_v10, %v404_v11  ;;  %v6818_v26 = vcombine.high %v408_v20, %v412_v22  ;;  %v205_v10 = vld [vmem:[#allocation5 + $0x1b8] sm:$0xff]  ;;  %v456_v11 = vld [vmem:[#allocation5 + $0x990] sm:$0xff] }
 0x1cd   :  { %3598 = vmatpush1.bf16.msra.mxu1 %v7015_v54  ;;  %v416_v54 = vld [vmem:[#allocation5 + $0x850] sm:$0xff] }
 0x1ce   :  { %3599 = vmatprep.subr.bf16.mxu1 %v7024_v30  ;;  %v6563_v30 = vcombine.low %v153_v17, %v157_v18  ;;  %v209_v18 = vld [vmem:[#allocation5 + $0x1d8] sm:$0xff] }
 0x1cf   :  { %3680 = vmatpush1.bf16.msra.mxu0 %v6761_v29  ;;  %v420_v29 = vld [vmem:[#allocation5 + $0x870] sm:$0xff] }
 0x1d0   :  { %3681 = vmatprep.subr.bf16.mxu0 %v6770_v31  ;;  %v6817_v31 = vcombine.low %v408_v20, %v412_v22  ;;  %v6826_v35 = vcombine.high %v416_v54, %v420_v29  ;;  %v213_v20 = vld [vmem:[#allocation5 + $0x1f8] sm:$0xff]  ;;  %v464_v22 = vld [vmem:[#allocation5 + $0x9d0] sm:$0xff] }
 0x1d1   :  { %3600 = vmatpush1.bf16.msra.mxu1 %v7023_v38  ;;  %v424_v38 = vld [vmem:[#allocation5 + $0x890] sm:$0xff] }
 0x1d2   :  { %3601 = vmatprep.subr.bf16.mxu1 %v7032_v40  ;;  %v6571_v40 = vcombine.low %v161_v53, %v165_v27  ;;  %v217_v27 = vld [vmem:[#allocation5 + $0x218] sm:$0xff] }
 0x1d3   :  { %3682 = vmatpush1.bf16.msra.mxu0 %v6769_v39  ;;  %v428_v39 = vld [vmem:[#allocation5 + $0x8b0] sm:$0xff] }
 0x1d4   :  { %3683 = vmatprep.subr.bf16.mxu0 %v6778_v41  ;;  %v6825_v41 = vcombine.low %v416_v54, %v420_v29  ;;  %v6834_v43 = vcombine.high %v424_v38, %v428_v39  ;;  %v221_v54 = vld [vmem:[#allocation5 + $0x238] sm:$0xff]  ;;  %v472_v29 = vld [vmem:[#allocation5 + $0xa10] sm:$0xff] }
 0x1d5   :  { %3602 = vmatpush1.bf16.msra.mxu1 %v7031_v46  ;;  %v432_v46 = vld [vmem:[#allocation5 + $0x8d0] sm:$0xff] }
 0x1d6   :  { %3603 = vmatprep.subr.bf16.mxu1 %v7040_v48  ;;  %v6579_v48 = vcombine.low %v169_v36, %v173_v37  ;;  %v225_v37 = vld [vmem:[#allocation5 + $0x258] sm:$0xff] }
 0x1d7   :  { %3684 = vmatpush1.bf16.msra.mxu0 %v6777_v47  ;;  %v436_v47 = vld [vmem:[#allocation5 + $0x8f0] sm:$0xff] }
 0x1d8   :  { %3685 = vmatprep.subr.bf16.mxu0 %v6786_v49  ;;  %v6833_v49 = vcombine.low %v424_v38, %v428_v39  ;;  %v6842_v52 = vcombine.high %v432_v46, %v436_v47  ;;  %v229_v38 = vld [vmem:[#allocation5 + $0x278] sm:$0xff]  ;;  %v480_v39 = vld [vmem:[#allocation5 + $0xa50] sm:$0xff] }
 0x1d9   :  { %3604 = vmatpush1.bf16.msra.mxu1 %v7039_v59  ;;  %v440_v59 = vld [vmem:[#allocation5 + $0x910] sm:$0xff] }
 0x1da   :  { %3605 = vmatprep.subr.bf16.mxu1 %v7048_v63  ;;  %v6587_v63 = vcombine.low %v177_v44, %v181_v45  ;;  %v233_v45 = vld [vmem:[#allocation5 + $0x298] sm:$0xff] }
 0x1db   :  { %3686 = vmatpush1.bf16.msra.mxu0 %v6785_v60  ;;  %v444_v60 = vld [vmem:[#allocation5 + $0x930] sm:$0xff] }
 0x1dc   :  { %3687 = vmatprep.subr.bf16.mxu0 %v6794_v32  ;;  %v6841_v32 = vcombine.low %v432_v46, %v436_v47  ;;  %v237_v46 = vld [vmem:[#allocation5 + $0x2b8] sm:$0xff]  ;;  %v488_v47 = vld [vmem:[#allocation5 + $0xa90] sm:$0xff] }
 0x1dd   :  { %3606 = vmatpush1.bf16.msra.mxu1 %v7047_v4  ;;  %v452_v4 = vld [vmem:[#allocation5 + $0x970] sm:$0xff] }
 0x1de   :  { %3607 = vmatprep.subr.bf16.mxu1 %v7056_v6  ;;  %v6849_v6 = vcombine.low %v440_v59, %v444_v60  ;;  %v6858_v8 = vcombine.high %v448_v3, %v452_v4 }
 0x1df   :  { %3688 = vmatpush1.bf16.msra.mxu0 %v6793_v5  ;;  %v6595_v5 = vcombine.low %v185_v55, %v189_v57  ;;  %v241_v57 = vld [vmem:[#allocation5 + $0x2d8] sm:$0xff] }
 0x1e0   :  { %3689 = vmatprep.subr.bf16.mxu0 %v6802_v7  ;;  %v6604_v7 = vcombine.high %v193_v1, %v197_v2 }
 0x1e1   :  { %3608 = vmatpush1.bf16.msra.mxu1 %v7055_v12  ;;  %v460_v12 = vld [vmem:[#allocation5 + $0x9b0] sm:$0xff] }
 0x1e2   :  { %3609 = vmatprep.subr.bf16.mxu1 %v7064_v14  ;;  %v6857_v14 = vcombine.low %v448_v3, %v452_v4  ;;  %v6866_v17 = vcombine.high %v456_v11, %v460_v12  ;;  %v253_v3 = vld [vmem:[#allocation5 + $0x338] sm:$0xff]  ;;  %v504_v4 = vld [vmem:[#allocation5 + $0xb10] sm:$0xff] }
 0x1e3   :  { %3690 = vmatpush1.bf16.msra.mxu0 %v6801_v13  ;;  %v6603_v13 = vcombine.low %v193_v1, %v197_v2  ;;  %v249_v2 = vld [vmem:[#allocation5 + $0x318] sm:$0xff] }
 0x1e4   :  { %3691 = vmatprep.subr.bf16.mxu0 %v6810_v15  ;;  %v6612_v15 = vcombine.high %v201_v9, %v205_v10 }
 0x1e5   :  { %3610 = vmatpush1.bf16.msra.mxu1 %v7063_v23  ;;  %v468_v23 = vld [vmem:[#allocation5 + $0x9f0] sm:$0xff] }
 0x1e6   :  { %3784 = vmatprep.subr.bf16.mxu1 %v6564_v25  ;;  %v6865_v25 = vcombine.low %v456_v11, %v460_v12  ;;  %v6874_v53 = vcombine.high %v464_v22, %v468_v23  ;;  %v261_v11 = vld [vmem:[#allocation5 + $0x378] sm:$0xff]  ;;  %v512_v12 = vld [vmem:[#allocation5 + $0xb50] sm:$0xff] }
 0x1e7   :  { %3692 = vmatpush1.bf16.msra.mxu0 %v6809_v24  ;;  %v6611_v24 = vcombine.low %v201_v9, %v205_v10  ;;  %v257_v10 = vld [vmem:[#allocation5 + $0x358] sm:$0xff] }
 0x1e8   :  { %3702 = vmatprep.subr.bf16.mxu0 %v6818_v26  ;;  %3612 = vmatmul.mubr.bf16.vlgmr.msra.gmra.mrb[4].mxu1 %v8495_v50  ;;  %v6620_v26 = vcombine.high %v209_v18, %v213_v20 }
 0x1e9   :  { %3785 = vmatpush1.bf16.msra.mxu1 %v6563_v30  ;;  %3816 = vmatprep.mubr.bf16.mxu1 %v8453_v58  ;;  %v6850_v58 = vcombine.high %v440_v59, %v444_v60  ;;  %v476_v30 = vld [vmem:[#allocation5 + $0xa30] sm:$0xff]  ;;  %v245_v59 = vld [vmem:[#allocation5 + $0x2f8] sm:$0xff] }
 0x1ea   :  { %3694 = vmatmul.mubr.bf16.vlgmr.msra.gmra.mrb[4].mxu0 %v8469_v21  ;;  %3786 = vmatprep.subr.bf16.mxu1 %v6572_v33  ;;  %v6873_v33 = vcombine.low %v464_v22, %v468_v23  ;;  %v6882_v36 = vcombine.high %v472_v29, %v476_v30  ;;  %v496_v60 = vld [vmem:[#allocation5 + $0xad0] sm:$0xff]  ;;  %v269_v22 = vld [vmem:[#allocation5 + $0x3b8] sm:$0xff] }
 0x1eb   :  { %3703 = vmatpush1.bf16.msra.mxu0 %v6817_v31  ;;  %3734 = vmatprep.mubr.bf16.mxu0 %v8473_v28  ;;  %v6619_v31 = vcombine.low %v209_v18, %v213_v20  ;;  %v265_v20 = vld [vmem:[#allocation5 + $0x398] sm:$0xff]  ;;  %v520_v23 = vld [vmem:[#allocation5 + $0xb90] sm:$0xff] }
 0x1ec   :  { %3704 = vmatprep.subr.bf16.mxu0 %v6826_v35  ;;  %v6628_v35 = vcombine.high %v217_v27, %v221_v54 }
 0x1ed   :  { %3787 = vmatpush1.bf16.msra.mxu1 %v6571_v40  ;;  %v484_v40 = vld [vmem:[#allocation5 + $0xa70] sm:$0xff] }
 0x1ee   :  { %3788 = vmatprep.subr.bf16.mxu1 %v6580_v19  ;;  %v6881_v19 = vcombine.low %v472_v29, %v476_v30  ;;  %v6890_v44 = vcombine.high %v480_v39, %v484_v40  ;;  %v277_v29 = vld [vmem:[#allocation5 + $0x3f8] sm:$0xff]  ;;  %v528_v30 = vld [vmem:[#allocation5 + $0xbd0] sm:$0xff] }
 0x1ef   :  { %3705 = vmatpush1.bf16.msra.mxu0 %v6825_v41  ;;  %v6627_v41 = vcombine.low %v217_v27, %v221_v54  ;;  %v273_v54 = vld [vmem:[#allocation5 + $0x3d8] sm:$0xff] }
 0x1f0   :  { %3706 = vmatprep.subr.bf16.mxu0 %v6834_v43  ;;  %v6636_v43 = vcombine.high %v225_v37, %v229_v38 }
 0x1f1   :  { %3789 = vmatpush1.bf16.msra.mxu1 %v6579_v48  ;;  %v492_v48 = vld [vmem:[#allocation5 + $0xab0] sm:$0xff] }
 0x1f2   :  { %3790 = vmatprep.subr.bf16.mxu1 %v6588_v51  ;;  %v6889_v51 = vcombine.low %v480_v39, %v484_v40  ;;  %v6898_v55 = vcombine.high %v488_v47, %v492_v48  ;;  %v285_v39 = vld [vmem:[#allocation5 + $0x438] sm:$0xff]  ;;  %v536_v40 = vld [vmem:[#allocation5 + $0xc10] sm:$0xff] }
 0x1f3   :  { %3707 = vmatpush1.bf16.msra.mxu0 %v6833_v49  ;;  %v6635_v49 = vcombine.low %v225_v37, %v229_v38  ;;  %v281_v38 = vld [vmem:[#allocation5 + $0x418] sm:$0xff] }
 0x1f4   :  { %3708 = vmatprep.subr.bf16.mxu0 %v6842_v52  ;;  %v6644_v52 = vcombine.high %v233_v45, %v237_v46 }
 0x1f5   :  { %3791 = vmatpush1.bf16.msra.mxu1 %v6587_v63  ;;  %v500_v63 = vld [vmem:[#allocation5 + $0xaf0] sm:$0xff] }
 0x1f6   :  { %3792 = vmatprep.subr.bf16.mxu1 %v6596_v0  ;;  %v6897_v0 = vcombine.low %v488_v47, %v492_v48  ;;  %v6906_v1 = vcombine.high %v496_v60, %v500_v63  ;;  %v293_v47 = vld [vmem:[#allocation5 + $0x478] sm:$0xff]  ;;  %v544_v48 = vld [vmem:[#allocation5 + $0xc50] sm:$0xff] }
 0x1f7   :  { %3709 = vmatpush1.bf16.msra.mxu0 %v6841_v32  ;;  %v6643_v32 = vcombine.low %v233_v45, %v237_v46  ;;  %v289_v46 = vld [vmem:[#allocation5 + $0x458] sm:$0xff] }
 0x1f8   :  { %3710 = vmatprep.subr.bf16.mxu0 %v6850_v58  ;;  %v6652_v58 = vcombine.high %v241_v57, %v245_v59 }
 0x1f9   :  { %3793 = vmatpush1.bf16.msra.mxu1 %v6595_v5  ;;  %v508_v5 = vld [vmem:[#allocation5 + $0xb30] sm:$0xff] }
 0x1fa   :  { %3794 = vmatprep.subr.bf16.mxu1 %v6604_v7  ;;  %v6905_v7 = vcombine.low %v496_v60, %v500_v63  ;;  %v6914_v9 = vcombine.high %v504_v4, %v508_v5  ;;  %v301_v60 = vld [vmem:[#allocation5 + $0x4b8] sm:$0xff]  ;;  %v552_v63 = vld [vmem:[#allocation5 + $0xc90] sm:$0xff] }
 0x1fb   :  { %3711 = vmatpush1.bf16.msra.mxu0 %v6849_v6  ;;  %v6651_v6 = vcombine.low %v241_v57, %v245_v59  ;;  %v297_v59 = vld [vmem:[#allocation5 + $0x498] sm:$0xff] }
 0x1fc   :  { %3712 = vmatprep.subr.bf16.mxu0 %v6858_v8  ;;  %v6660_v8 = vcombine.high %v249_v2, %v253_v3 }
 0x1fd   :  { %3795 = vmatpush1.bf16.msra.mxu1 %v6603_v13  ;;  %v516_v13 = vld [vmem:[#allocation5 + $0xb70] sm:$0xff] }
 0x1fe   :  { %3796 = vmatprep.subr.bf16.mxu1 %v6612_v15  ;;  %v6913_v15 = vcombine.low %v504_v4, %v508_v5  ;;  %v6922_v18 = vcombine.high %v512_v12, %v516_v13  ;;  %v305_v4 = vld [vmem:[#allocation5 + $0x4d8] sm:$0xff] }
 0x1ff   :  { %3713 = vmatpush1.bf16.msra.mxu0 %v6857_v14  ;;  %v6659_v14 = vcombine.low %v249_v2, %v253_v3  ;;  %v664_v2 = vlaneseq  ;;  %v309_v5 = vld [vmem:[#allocation5 + $0x4f8] sm:$0xff] }
 0x200   :  { %3714 = vmatprep.subr.bf16.mxu0 %v6866_v17  ;;  %v6668_v17 = vcombine.high %v257_v10, %v261_v11 }
 0x201   :  { %3797 = vmatpush1.bf16.msra.mxu1 %v6611_v24  ;;  %v524_v24 = vld [vmem:[#allocation5 + $0xbb0] sm:$0xff] }
 0x202   :  { %3798 = vmatprep.subr.bf16.mxu1 %v6620_v26  ;;  %v6921_v26 = vcombine.low %v512_v12, %v516_v13  ;;  %v6930_v27 = vcombine.high %v520_v23, %v524_v24  ;;  %v313_v12 = vld [vmem:[#allocation5 + $0x518] sm:$0xff] }
 0x203   :  { %3715 = vmatpush1.bf16.msra.mxu0 %v6865_v25  ;;  %v6667_v25 = vcombine.low %v257_v10, %v261_v11  ;;  %v8517_v10 = vshrl.u32 %v664_v2, 7  ;;  %v317_v13 = vld [vmem:[#allocation5 + $0x538] sm:$0xff]  ;;  %v604_v2 = vld [vmem:[#allocation5 + $0xe30] sm:$0xff] }
 0x204   :  { %3716 = vmatprep.subr.bf16.mxu0 %v6874_v53  ;;  %v6676_v53 = vcombine.high %v265_v20, %v269_v22 }
 0x205   :  { %3799 = vmatpush1.bf16.msra.mxu1 %v6619_v31  ;;  %v532_v31 = vld [vmem:[#allocation5 + $0xbf0] sm:$0xff] }
 0x206   :  { %3800 = vmatprep.subr.bf16.mxu1 %v6628_v35  ;;  %v6929_v35 = vcombine.low %v520_v23, %v524_v24  ;;  %v6938_v37 = vcombine.high %v528_v30, %v532_v31  ;;  %v321_v23 = vld [vmem:[#allocation5 + $0x558] sm:$0xff] }
 0x207   :  { %3717 = vmatpush1.bf16.msra.mxu0 %v6873_v33  ;;  %v6675_v33 = vcombine.low %v265_v20, %v269_v22  ;;  %v8520_v20 = vsub.s32 0, %v8517_v10  ;;  %v325_v24 = vld [vmem:[#allocation5 + $0x578] sm:$0xff] }
 0x208   :  { %3718 = vmatprep.subr.bf16.mxu0 %v6882_v36  ;;  %v6684_v36 = vcombine.high %v273_v54, %v277_v29 }
 0x209   :  { %3801 = vmatpush1.bf16.msra.mxu1 %v6627_v41  ;;  %v540_v41 = vld [vmem:[#allocation5 + $0xc30] sm:$0xff] }
 0x20a   :  { %3802 = vmatprep.subr.bf16.mxu1 %v6636_v43  ;;  %v6937_v43 = vcombine.low %v528_v30, %v532_v31  ;;  %v6946_v45 = vcombine.high %v536_v40, %v540_v41  ;;  %v6732_v30 = vcombine.high %v321_v23, %v325_v24 }
 0x20b   :  { %3719 = vmatpush1.bf16.msra.mxu0 %v6881_v19  ;;  %v6683_v19 = vcombine.low %v273_v54, %v277_v29  ;;  %v6723_v54 = vcombine.low %v313_v12, %v317_v13 }
 0x20c   :  { %3720 = vmatprep.subr.bf16.mxu0 %v6890_v44  ;;  %v6692_v44 = vcombine.high %v281_v38, %v285_v39 }
 0x20d   :  { %3803 = vmatpush1.bf16.msra.mxu1 %v6635_v49  ;;  %v548_v49 = vld [vmem:[#allocation5 + $0xc70] sm:$0xff] }
 0x20e   :  { %3804 = vmatprep.subr.bf16.mxu1 %v6644_v52  ;;  %v6945_v52 = vcombine.low %v536_v40, %v540_v41  ;;  %v6954_v57 = vcombine.high %v544_v48, %v548_v49  ;;  %v6731_v40 = vcombine.low %v321_v23, %v325_v24 }
 0x20f   :  { %3721 = vmatpush1.bf16.msra.mxu0 %v6889_v51  ;;  %v6691_v51 = vcombine.low %v281_v38, %v285_v39  ;;  %v584_v38 = vld [vmem:[#allocation5 + $0xd90] sm:$0xff] }
 0x210   :  { %3722 = vmatprep.subr.bf16.mxu0 %v6898_v55  ;;  %v6700_v55 = vcombine.high %v289_v46, %v293_v47  ;;  %v588_v39 = vld [vmem:[#allocation5 + $0xdb0] sm:$0xff] }
 0x211   :  { %3805 = vmatpush1.bf16.msra.mxu1 %v6643_v32  ;;  %v556_v32 = vld [vmem:[#allocation5 + $0xcb0] sm:$0xff] }
 0x212   :  { %3806 = vmatprep.subr.bf16.mxu1 %v6652_v58  ;;  %v6953_v58 = vcombine.low %v544_v48, %v548_v49  ;;  %v6962_v3 = vcombine.high %v552_v63, %v556_v32  ;;  %v592_v49 = vld [vmem:[#allocation5 + $0xdd0] sm:$0xff] }
 0x213   :  { %3723 = vmatpush1.bf16.msra.mxu0 %v6897_v0  ;;  %v6699_v0 = vcombine.low %v289_v46, %v293_v47  ;;  %v341_v46 = vld [vmem:[#allocation5 + $0x5f8] sm:$0xff] }
 0x214   :  { %3724 = vmatprep.subr.bf16.mxu0 %v6906_v1  ;;  %v6708_v1 = vcombine.high %v297_v59, %v301_v60 }
 0x215   :  { %3807 = vmatpush1.bf16.msra.mxu1 %v6651_v6  ;;  %v560_v6 = vld [vmem:[#allocation5 + $0xcd0] sm:$0xff] }
 0x216   :  { %3808 = vmatprep.subr.bf16.mxu1 %v6660_v8  ;;  %v6961_v8 = vcombine.low %v552_v63, %v556_v32  ;;  %v6993_v63 = vcombine.low %v584_v38, %v588_v39 }
 0x217   :  { %3725 = vmatpush1.bf16.msra.mxu0 %v6905_v7  ;;  %v564_v7 = vld [vmem:[#allocation5 + $0xcf0] sm:$0xff] }
 0x218   :  { %3726 = vmatprep.subr.bf16.mxu0 %v6914_v9  ;;  %v6716_v9 = vcombine.high %v305_v4, %v309_v5  ;;  %v6970_v11 = vcombine.high %v560_v6, %v564_v7 }
 0x219   :  { %3809 = vmatpush1.bf16.msra.mxu1 %v6659_v14  ;;  %v568_v14 = vld [vmem:[#allocation5 + $0xd10] sm:$0xff] }
 0x21a   :  { %3810 = vmatprep.subr.bf16.mxu1 %v6668_v17  ;;  %v6715_v17 = vcombine.low %v305_v4, %v309_v5 }
 0x21b   :  { %3727 = vmatpush1.bf16.msra.mxu0 %v6913_v15  ;;  %v572_v15 = vld [vmem:[#allocation5 + $0xd30] sm:$0xff] }
 0x21c   :  { %3728 = vmatprep.subr.bf16.mxu0 %v6922_v18  ;;  %v6969_v18 = vcombine.low %v560_v6, %v564_v7  ;;  %v6978_v22 = vcombine.high %v568_v14, %v572_v15  ;;  %v6977_v29 = vcombine.low %v568_v14, %v572_v15  ;;  %v353_v7 = vld [vmem:[#allocation5 + $0x658] sm:$0xff] }
 0x21d   :  { %3811 = vmatpush1.bf16.msra.mxu1 %v6667_v25  ;;  %v8522_v25 = vld [vmem:[#allocation7] sm:$0xff]  ;;  %v361_v15 = vld [vmem:[#allocation5 + $0x698] sm:$0xff] }
 0x21e   :  { %3812 = vmatprep.subr.bf16.mxu1 %v6676_v53  ;;  %v576_v53 = vld [vmem:[#allocation5 + $0xd50] sm:$0xff]  ;;  %v667_v31 = vrot.slane %v8522_v25, %v8520_v20 }
 0x21f   :  { %3729 = vmatpush1.bf16.msra.mxu0 %v6921_v26  ;;  %v8525_v26 = vsub.s32 1, %v8517_v10 }
 0x220   :  { %3730 = vmatprep.subr.bf16.mxu0 %v6930_v27  ;;  %v580_v27 = vld [vmem:[#allocation5 + $0xd70] sm:$0xff] }
 0x221   :  { %3813 = vmatpush1.bf16.msra.mxu1 %v6675_v33  ;;  %v6986_v33 = vcombine.high %v576_v53, %v580_v27  ;;  %v6985_v41 = vcombine.low %v576_v53, %v580_v27  ;;  %v369_v27 = vld [vmem:[#allocation5 + $0x6d8] sm:$0xff] }
 0x222   :  { %3814 = vmatprep.subr.bf16.mxu1 %v6684_v36  ;;  %v333_v36 = vld [vmem:[#allocation5 + $0x5b8] sm:$0xff] }
 0x223   :  { %3731 = vmatpush1.bf16.msra.mxu0 %v6929_v35  ;;  %v329_v35 = vld [vmem:[#allocation5 + $0x598] sm:$0xff] }
 0x224   :  { %3732 = vmatprep.subr.bf16.mxu0 %v6938_v37  ;;  %v671_v37 = vrot.slane %v8522_v25, %v8525_v26 }
 0x225   :  { %3815 = vmatpush1.bf16.msra.mxu1 %v6683_v19  ;;  %v6740_v19 = vcombine.high %v329_v35, %v333_v36 }
 0x226   :  { %3825 = vmatprep.subr.bf16.mxu1 %v6692_v44  ;;  %v6994_v44 = vcombine.high %v584_v38, %v588_v39  ;;  %v3329_v47 = vadd.f32 %v8507_v62, %v671_v37  ;;  %v349_v62 = vld [vmem:[#allocation5 + $0x638] sm:$0xff]  ;;  %v632_v39 = vld [vmem:[#allocation5 + $0xf10] sm:$0xff] }
 0x227   :  { %3733 = vmatpush1.bf16.msra.mxu0 %v6937_v43  ;;  %v3327_v43 = vadd.f32 %v8505_v56, %v667_v31  ;;  %v377_v37 = vld [vmem:[#allocation5 + $0x718] sm:$0xff] }
 0x228   :  { %3743 = vmatprep.subr.bf16.mxu0 %v6946_v45  ;;  %3817 = vmatmul.mubr.bf16.vlgmr.msra.gmra.mrb[8].mxu1 %v8463_v16  ;;  %v6707_v16 = vcombine.low %v297_v59, %v301_v60  ;;  %v337_v45 = vld [vmem:[#allocation5 + $0x5d8] sm:$0xff] }
 0x229   :  { %3826 = vmatpush1.bf16.msra.mxu1 %v6691_v51  ;;  %3857 = vmatprep.mubr.bf16.mxu1 %v8457_v61  ;;  %v6724_v61 = vcombine.high %v313_v12, %v317_v13  ;;  %v596_v51 = vld [vmem:[#allocation5 + $0xdf0] sm:$0xff]  ;;  %v6748_v56 = vcombine.high %v337_v45, %v341_v46  ;;  %v381_v38 = vld [vmem:[#allocation5 + $0x738] sm:$0xff] }
 0x22a   :  { %3735 = vmatmul.mubr.bf16.vlgmr.msra.gmra.mrb[4].mxu0 %v8483_v34  ;;  %3827 = vmatprep.subr.bf16.mxu1 %v6700_v55  ;;  %v7001_v4 = vcombine.low %v592_v49, %v596_v51 }
 0x22b   :  { %3744 = vmatpush1.bf16.msra.mxu0 %v6945_v52  ;;  %3775 = vmatprep.mubr.bf16.mxu0 %v8487_v42 }
 0x22c   :  { %3745 = vmatprep.subr.bf16.mxu0 %v6954_v57  ;;  %v6739_v57 = vcombine.low %v329_v35, %v333_v36 }
 0x22d   :  { %3828 = vmatpush1.bf16.msra.mxu1 %v6699_v0  ;;  %v7002_v0 = vcombine.high %v592_v49, %v596_v51  ;;  %v6787_v49 = vcombine.low %v377_v37, %v381_v38 }
 0x22e   :  { %3829 = vmatprep.subr.bf16.mxu1 %v6708_v1  ;;  %v600_v1 = vld [vmem:[#allocation5 + $0xe10] sm:$0xff] }
 0x22f   :  { %3746 = vmatpush1.bf16.msra.mxu0 %v6953_v58  ;;  %v345_v58 = vld [vmem:[#allocation5 + $0x618] sm:$0xff]  ;;  %v7010_v6 = vcombine.high %v600_v1, %v604_v2  ;;  %v7009_v12 = vcombine.low %v600_v1, %v604_v2 }
 0x230   :  { %3747 = vmatprep.subr.bf16.mxu0 %v6962_v3  ;;  %v6747_v3 = vcombine.low %v337_v45, %v341_v46  ;;  %v6756_v5 = vcombine.high %v345_v58, %v349_v62  ;;  %v385_v45 = vld [vmem:[#allocation5 + $0x758] sm:$0xff] }
 0x231   :  { %3830 = vmatpush1.bf16.msra.mxu1 %v6707_v16  ;;  %v357_v16 = vld [vmem:[#allocation5 + $0x678] sm:$0xff] }
 0x232   :  { %3831 = vmatprep.subr.bf16.mxu1 %v6716_v9  ;;  %v612_v9 = vld [vmem:[#allocation5 + $0xe70] sm:$0xff]  ;;  %v6764_v13 = vcombine.high %v353_v7, %v357_v16  ;;  %v389_v46 = vld [vmem:[#allocation5 + $0x778] sm:$0xff] }
 0x233   :  { %3748 = vmatpush1.bf16.msra.mxu0 %v6961_v8  ;;  %v608_v8 = vld [vmem:[#allocation5 + $0xe50] sm:$0xff]  ;;  %v401_v2 = vld [vmem:[#allocation5 + $0x7d8] sm:$0xff] }
 0x234   :  { %3749 = vmatprep.subr.bf16.mxu0 %v6970_v11  ;;  %v6755_v11 = vcombine.low %v345_v58, %v349_v62  ;;  %v7018_v14 = vcombine.high %v608_v8, %v612_v9  ;;  %v7017_v23 = vcombine.low %v608_v8, %v612_v9  ;;  %v409_v9 = vld [vmem:[#allocation5 + $0x818] sm:$0xff] }
 0x235   :  { %3832 = vmatpush1.bf16.msra.mxu1 %v6715_v17  ;;  %v365_v17 = vld [vmem:[#allocation5 + $0x6b8] sm:$0xff] }
 0x236   :  { %3833 = vmatprep.subr.bf16.mxu1 %v6724_v61  ;;  %v620_v61 = vld [vmem:[#allocation5 + $0xeb0] sm:$0xff]  ;;  %v6772_v24 = vcombine.high %v361_v15, %v365_v17  ;;  %v6771_v31 = vcombine.low %v361_v15, %v365_v17  ;;  %v7544_v17 = vld [vmem:[#allocation8 + $0x4] ss:$16 sps:$4 sm:$0xff]  }
 0x237   :  { %3750 = vmatpush1.bf16.msra.mxu0 %v6969_v18  ;;  %v616_v18 = vld [vmem:[#allocation5 + $0xe90] sm:$0xff] }
 0x238   :  { %3751 = vmatprep.subr.bf16.mxu0 %v6978_v22  ;;  %v6763_v22 = vcombine.low %v353_v7, %v357_v16  ;;  %v7026_v53 = vcombine.high %v616_v18, %v620_v61 }
 0x239   :  { %3834 = vmatpush1.bf16.msra.mxu1 %v6723_v54  ;;  %v373_v54 = vld [vmem:[#allocation5 + $0x6f8] sm:$0xff] }
 0x23a   :  { %3835 = vmatprep.subr.bf16.mxu1 %v6732_v30  ;;  %v628_v30 = vld [vmem:[#allocation5 + $0xef0] sm:$0xff]  ;;  %v6780_v35 = vcombine.high %v369_v27, %v373_v54 }
 0x23b   :  { %3752 = vmatpush1.bf16.msra.mxu0 %v6977_v29  ;;  %v624_v29 = vld [vmem:[#allocation5 + $0xed0] sm:$0xff] }
 0x23c   :  { %3753 = vmatprep.subr.bf16.mxu0 %v6986_v33  ;;  %v7025_v33 = vcombine.low %v616_v18, %v620_v61  ;;  %v7034_v36 = vcombine.high %v624_v29, %v628_v30  ;;  %v417_v61 = vld [vmem:[#allocation5 + $0x858] sm:$0xff] }
 0x23d   :  { %v3449_v48 = vpop.f32.mrb[0].mxu0  ;;  %3836 = vmatpush1.bf16.msra.mxu1 %v6731_v40  ;;  %v636_v40 = vld [vmem:[#allocation5 + $0xf30] sm:$0xff] }
 0x23e   :  { %v8533_v52 = vadd.f32 %v3449_v48, %v3327_v43  ;;  %v3451_v55 = vpop.f32.mrb[1].mxu0  ;;  %3837 = vmatprep.subr.bf16.mxu1 %v6740_v19  ;;  %v7033_v19 = vcombine.low %v624_v29, %v628_v30  ;;  %v6788_v43 = vcombine.high %v377_v37, %v381_v38  ;;  %v644_v48 = vld [vmem:[#allocation5 + $0xf70] sm:$0xff]  ;;  %v7041_v51 = vcombine.low %v632_v39, %v636_v40  ;;  %v429_v29 = vld [vmem:[#allocation5 + $0x8b8] sm:$0xff] }
 0x23f   :  { %v8535_v59 = vadd.f32 %v3451_v55, %v3329_v47  ;;  %v3453_v60 = vpop.f32.mrb[2].mxu0  ;;  %3754 = vmatpush1.bf16.msra.mxu0 %v6985_v41  ;;  %v6779_v41 = vcombine.low %v369_v27, %v373_v54  ;;  %v640_v47 = vld [vmem:[#allocation5 + $0xf50] sm:$0xff]  ;;  %v6796_v55 = vcombine.high %v385_v45, %v389_v46  ;;  %v7547_v27 = vld [vmem:[#allocation8 + $0x24] ss:$16 sps:$4 sm:$0xff]  }
 0x240   :  { %v3454_v32 = vpop.f32.mrb[3].mxu0  ;;  %3755 = vmatprep.subr.bf16.mxu0 %v6994_v44  ;;  %v7042_v44 = vcombine.high %v632_v39, %v636_v40  ;;  %v393_v60 = vld [vmem:[#allocation5 + $0x798] sm:$0xff]  ;;  %v7049_v58 = vcombine.low %v640_v47, %v644_v48 }
 0x241   :  { %3838 = vmatpush1.bf16.msra.mxu1 %v6739_v57  ;;  %v7050_v57 = vcombine.high %v640_v47, %v644_v48  ;;  %v652_v32 = vld [vmem:[#allocation5 + $0xfb0] sm:$0xff]  ;;  %v425_v54 = vld [vmem:[#allocation5 + $0x898] sm:$0xff] }
 0x242   :  { %3839 = vmatprep.subr.bf16.mxu1 %v6748_v56  ;;  %v648_v56 = vld [vmem:[#allocation5 + $0xf90] sm:$0xff]  ;;  %v437_v37 = vld [vmem:[#allocation5 + $0x8f8] sm:$0xff]  ;;  %v6835_v38 = vcombine.low %v425_v54, %v429_v29 }
 0x243   :  { %3756 = vmatpush1.bf16.msra.mxu0 %v6993_v63  ;;  %v397_v63 = vld [vmem:[#allocation5 + $0x7b8] sm:$0xff]  ;;  %v7058_v1 = vcombine.high %v648_v56, %v652_v32  ;;  %v7057_v7 = vcombine.low %v648_v56, %v652_v32 }
 0x244   :  { %3757 = vmatprep.subr.bf16.mxu0 %v7002_v0  ;;  %v6795_v0 = vcombine.low %v385_v45, %v389_v46  ;;  %v6804_v62 = vcombine.high %v393_v60, %v397_v63  ;;  %v7553_v40 = vld [vmem:[#allocation8 + $0x64] ss:$16 sps:$4 sm:$0xff]   ;;  %v7557_v56 = vld [vmem:[#allocation8 + $0xa0] ss:$16 sps:$4 sm:$0xff]  }
 0x245   :  { %3840 = vmatpush1.bf16.msra.mxu1 %v6747_v3  ;;  %v405_v3 = vld [vmem:[#allocation5 + $0x7f8] sm:$0xff] }
 0x246   :  { %3841 = vmatprep.subr.bf16.mxu1 %v6756_v5  ;;  %v660_v5 = vld [vmem:[#allocation5 + $0xff0] sm:$0xff]  ;;  %v6812_v16 = vcombine.high %v401_v2, %v405_v3  ;;  %v7556_v46 = vld [vmem:[#allocation8 + $0x84] ss:$16 sps:$4 sm:$0xff]  }
 0x247   :  { %3758 = vmatpush1.bf16.msra.mxu0 %v7001_v4  ;;  %v656_v4 = vld [vmem:[#allocation5 + $0xfd0] sm:$0xff]  ;;  %v449_v47 = vld [vmem:[#allocation5 + $0x958] sm:$0xff] }
 0x248   :  { %3759 = vmatprep.subr.bf16.mxu0 %v7010_v6  ;;  %v6803_v6 = vcombine.low %v393_v60, %v397_v63  ;;  %v7066_v8 = vcombine.high %v656_v4, %v660_v5  ;;  %v461_v60 = vld [vmem:[#allocation5 + $0x9b8] sm:$0xff] }
 0x249   :  { %3842 = vmatpush1.bf16.msra.mxu1 %v6755_v11  ;;  %v413_v11 = vld [vmem:[#allocation5 + $0x838] sm:$0xff] }
 0x24a   :  { %3843 = vmatprep.subr.bf16.mxu1 %v6764_v13  ;;  %v6811_v13 = vcombine.low %v401_v2, %v405_v3  ;;  %v6820_v15 = vcombine.high %v409_v9, %v413_v11  ;;  %v7560_v2 = vld [vmem:[#allocation8 + $0xc0] ss:$16 sps:$4 sm:$0xff]  }
 0x24b   :  { %3760 = vmatpush1.bf16.msra.mxu0 %v7009_v12  ;;  %v3949_v12 = vmul.f32 0.1, %v8535_v59 }
 0x24c   :  { %3761 = vmatprep.subr.bf16.mxu0 %v7018_v14  ;;  %v7065_v14 = vcombine.low %v656_v4, %v660_v5  ;;  %v7565_v4 = vld [vmem:[#allocation8 + $0xe4] ss:$16 sps:$4 sm:$0xff]  }
 0x24d   :  { %3844 = vmatpush1.bf16.msra.mxu1 %v6763_v22  ;;  %v3957_v18 = vmax.f32 %v8535_v59, %v3949_v12  ;;  %v421_v22 = vld [vmem:[#allocation5 + $0x878] sm:$0xff] }
 0x24e   :  { %3845 = vmatprep.subr.bf16.mxu1 %v6772_v24  ;;  %v7542_v24 = vld [vmem:[#allocation8] ss:$16 sps:$4 sm:$0xff]   ;;  %v6827_v59 = vcombine.low %v417_v61, %v421_v22 }
 0x24f   :  { %3762 = vmatpush1.bf16.msra.mxu0 %v7017_v23  ;;  %v6819_v23 = vcombine.low %v409_v9, %v413_v11  ;;  %v8539_v30 = vpack.c.bf16 %v3957_v18, %v3957_v18  ;;  %v473_v5 = vld [vmem:[#allocation5 + $0xa18] sm:$0xff] }
 0x250   :  { %3763 = vmatprep.subr.bf16.mxu0 %v7026_v53  ;;  %v6828_v53 = vcombine.high %v417_v61, %v421_v22  ;;  %v7568_v9 = vld [vmem:[#allocation8 + $0x104] ss:$16 sps:$4 sm:$0xff]  }
 0x251   :  { %3846 = vmatpush1.bf16.msra.mxu1 %v6771_v31  ;;  %v7545_v31 = vld [vmem:[#allocation8 + $0x20] ss:$16 sps:$4 sm:$0xff]  }
 0x252   :  { %3847 = vmatprep.subr.bf16.mxu1 %v6780_v35  ;;  %v7550_v35 = vld [vmem:[#allocation8 + $0x44] ss:$16 sps:$4 sm:$0xff]  }
 0x253   :  { %3764 = vmatpush1.bf16.msra.mxu0 %v7025_v33  ;;  %v6836_v33 = vcombine.high %v425_v54, %v429_v29  ;;  %v481_v11 = vld [vmem:[#allocation5 + $0xa58] sm:$0xff] }
 0x254   :  { %3765 = vmatprep.subr.bf16.mxu0 %v7034_v36  ;;  %v433_v36 = vld [vmem:[#allocation5 + $0x8d8] sm:$0xff] }
 0x255   :  { %3848 = vmatpush1.bf16.msra.mxu1 %v6779_v41  ;;  %v6844_v39 = vcombine.high %v433_v36, %v437_v37  ;;  %v441_v41 = vld [vmem:[#allocation5 + $0x918] sm:$0xff] }
 0x256   :  { %3849 = vmatprep.subr.bf16.mxu1 %v6788_v43  ;;  %v6843_v43 = vcombine.low %v433_v36, %v437_v37  ;;  %v485_v12 = vld [vmem:[#allocation5 + $0xa78] sm:$0xff] }
 0x257   :  { %3766 = vmatpush1.bf16.msra.mxu0 %v7033_v19  ;;  %v445_v19 = vld [vmem:[#allocation5 + $0x938] sm:$0xff]  ;;  %v6891_v22 = vcombine.low %v481_v11, %v485_v12 }
 0x258   :  { %3767 = vmatprep.subr.bf16.mxu0 %v7042_v44  ;;  %v7551_v44 = vld [vmem:[#allocation8 + $0x60] ss:$16 sps:$4 sm:$0xff]   ;;  %v6852_v45 = vcombine.high %v441_v41, %v445_v19  ;;  %v6851_v48 = vcombine.low %v441_v41, %v445_v19 }
 0x259   :  { %3850 = vmatpush1.bf16.msra.mxu1 %v6787_v49  ;;  %v7554_v49 = vld [vmem:[#allocation8 + $0x80] ss:$16 sps:$4 sm:$0xff]  }
 0x25a   :  { %3851 = vmatprep.subr.bf16.mxu1 %v6796_v55  ;;  %v7559_v55 = vld [vmem:[#allocation8 + $0xa4] ss:$16 sps:$4 sm:$0xff]  }
 0x25b   :  { %3768 = vmatpush1.bf16.msra.mxu0 %v7041_v51  ;;  %v489_v18 = vld [vmem:[#allocation5 + $0xa98] sm:$0xff] }
 0x25c   :  { %3769 = vmatprep.subr.bf16.mxu0 %v7050_v57  ;;  %v457_v57 = vld [vmem:[#allocation5 + $0x998] sm:$0xff] }
 0x25d   :  { %3852 = vmatpush1.bf16.msra.mxu1 %v6795_v0  ;;  %v6868_v32 = vcombine.high %v457_v57, %v461_v60  ;;  %v7562_v0 = vld [vmem:[#allocation8 + $0xc4] ss:$16 sps:$4 sm:$0xff]  }
 0x25e   :  { %3853 = vmatprep.subr.bf16.mxu1 %v6804_v62  ;;  %v469_v62 = vld [vmem:[#allocation5 + $0x9f8] sm:$0xff] }
 0x25f   :  { %3770 = vmatpush1.bf16.msra.mxu0 %v7049_v58  ;;  %v465_v58 = vld [vmem:[#allocation5 + $0x9d8] sm:$0xff] }
 0x260   :  { %3771 = vmatprep.subr.bf16.mxu0 %v7058_v1  ;;  %v6867_v1 = vcombine.low %v457_v57, %v461_v60  ;;  %v6876_v3 = vcombine.high %v465_v58, %v469_v62  ;;  %v493_v61 = vld [vmem:[#allocation5 + $0xab8] sm:$0xff] }
 0x261   :  { %3854 = vmatpush1.bf16.msra.mxu1 %v6803_v6  ;;  %v477_v6 = vld [vmem:[#allocation5 + $0xa38] sm:$0xff]  ;;  %v6899_v29 = vcombine.low %v489_v18, %v493_v61 }
 0x262   :  { %3855 = vmatprep.subr.bf16.mxu1 %v6812_v16  ;;  %v7563_v16 = vld [vmem:[#allocation8 + $0xe0] ss:$16 sps:$4 sm:$0xff]  }
 0x263   :  { %3772 = vmatpush1.bf16.msra.mxu0 %v7057_v7  ;;  %v6875_v7 = vcombine.low %v465_v58, %v469_v62  ;;  %v501_v54 = vld [vmem:[#allocation5 + $0xaf8] sm:$0xff] }
 0x264   :  { %3773 = vmatprep.subr.bf16.mxu0 %v7066_v8  ;;  %v6884_v8 = vcombine.high %v473_v5, %v477_v6  ;;  %v509_v36 = vld [vmem:[#allocation5 + $0xb38] sm:$0xff] }
 0x265   :  { %3856 = vmatpush1.bf16.msra.mxu1 %v6811_v13  ;;  %v6883_v13 = vcombine.low %v473_v5, %v477_v6  ;;  %v517_v41 = vld [vmem:[#allocation5 + $0xb78] sm:$0xff] }
 0x266   :  { %3866 = vmatprep.subr.bf16.mxu1 %v6820_v15  ;;  %v6892_v15 = vcombine.high %v481_v11, %v485_v12  ;;  %v533_v57 = vld [vmem:[#allocation5 + $0xbf8] sm:$0xff] }
 0x267   :  { %3774 = vmatpush1.bf16.msra.mxu0 %v7065_v14  ;;  %v7566_v14 = vld [vmem:[#allocation8 + $0x100] ss:$16 sps:$4 sm:$0xff]   ;;  %v7592_v5 = vld [vmem:[#allocation8 + $0x204] ss:$16 sps:$4 sm:$0xff]  }
 0x268   :  { %5530 = vmatprep.subr.bf16.mxu0 %v7544_v17  ;;  %3858 = vmatmul.mubr.bf16.vlgmr.msra.gmra.mrb[8].mxu1 %v8469_v21  ;;  %v7548_v21 = vld [vmem:[#allocation8 + $0x40] ss:$16 sps:$4 sm:$0xff]   ;;  %v7571_v17 = vld [vmem:[#allocation8 + $0x124] ss:$16 sps:$4 sm:$0xff]  }
 0x269   :  { %3867 = vmatpush1.bf16.msra.mxu1 %v6819_v23  ;;  %3898 = vmatprep.mubr.bf16.mxu1 %v8473_v28  ;;  %v453_v28 = vld [vmem:[#allocation5 + $0x978] sm:$0xff] }
 0x26a   :  { %3776 = vmatmul.mubr.bf16.vlgmr.msra.gmra.mrb[4].mxu0 %v8495_v50  ;;  %3868 = vmatprep.subr.bf16.mxu1 %v6828_v53  ;;  %v6860_v51 = vcombine.high %v449_v47, %v453_v28  ;;  %v6859_v63 = vcombine.low %v449_v47, %v453_v28  ;;  %v7569_v23 = vld [vmem:[#allocation8 + $0x120] ss:$16 sps:$4 sm:$0xff]   ;;  %v7574_v53 = vld [vmem:[#allocation8 + $0x144] ss:$16 sps:$4 sm:$0xff]  }
 0x26b   :  { %5531 = vmatpush1.bf16.msra.mxu0 %v7542_v24  ;;  %5562 = vmatprep.mubr.bf16.mxu0 %v8539_v30  ;;  %v6900_v24 = vcombine.high %v489_v18, %v493_v61  ;;  %v525_v47 = vld [vmem:[#allocation5 + $0xbb8] sm:$0xff] }
 0x26c   :  { %5532 = vmatprep.subr.bf16.mxu0 %v7547_v27  ;;  %v497_v27 = vld [vmem:[#allocation5 + $0xad8] sm:$0xff] }
 0x26d   :  { %3869 = vmatpush1.bf16.msra.mxu1 %v6827_v59  ;;  %v7572_v59 = vld [vmem:[#allocation8 + $0x140] ss:$16 sps:$4 sm:$0xff]   ;;  %v6907_v37 = vcombine.low %v497_v27, %v501_v54  ;;  %v7595_v12 = vld [vmem:[#allocation8 + $0x224] ss:$16 sps:$4 sm:$0xff]  }
 0x26e   :  { %3870 = vmatprep.subr.bf16.mxu1 %v6836_v33  ;;  %v7577_v33 = vld [vmem:[#allocation8 + $0x164] ss:$16 sps:$4 sm:$0xff]  }
 0x26f   :  { %5533 = vmatpush1.bf16.msra.mxu0 %v7545_v31  ;;  %v6908_v31 = vcombine.high %v497_v27, %v501_v54  ;;  %v537_v58 = vld [vmem:[#allocation5 + $0xc18] sm:$0xff] }
 0x270   :  { %5534 = vmatprep.subr.bf16.mxu0 %v7550_v35  ;;  %v505_v35 = vld [vmem:[#allocation5 + $0xb18] sm:$0xff] }
 0x271   :  { %3871 = vmatpush1.bf16.msra.mxu1 %v6835_v38  ;;  %v7575_v38 = vld [vmem:[#allocation8 + $0x160] ss:$16 sps:$4 sm:$0xff]   ;;  %v6915_v19 = vcombine.low %v505_v35, %v509_v36  ;;  %v7598_v18 = vld [vmem:[#allocation8 + $0x244] ss:$16 sps:$4 sm:$0xff]  }
 0x272   :  { %3872 = vmatprep.subr.bf16.mxu1 %v6844_v39  ;;  %v7580_v39 = vld [vmem:[#allocation8 + $0x184] ss:$16 sps:$4 sm:$0xff]  }
 0x273   :  { %5535 = vmatpush1.bf16.msra.mxu0 %v7548_v21  ;;  %v6916_v21 = vcombine.high %v505_v35, %v509_v36  ;;  %v541_v62 = vld [vmem:[#allocation5 + $0xc38] sm:$0xff] }
 0x274   :  { %5536 = vmatprep.subr.bf16.mxu0 %v7553_v40  ;;  %v513_v40 = vld [vmem:[#allocation5 + $0xb58] sm:$0xff] }
 0x275   :  { %3873 = vmatpush1.bf16.msra.mxu1 %v6843_v43  ;;  %v7578_v43 = vld [vmem:[#allocation8 + $0x180] ss:$16 sps:$4 sm:$0xff]   ;;  %v6923_v28 = vcombine.low %v513_v40, %v517_v41 }
 0x276   :  { %3874 = vmatprep.subr.bf16.mxu1 %v6852_v45  ;;  %v7583_v45 = vld [vmem:[#allocation8 + $0x1a4] ss:$16 sps:$4 sm:$0xff]  }
 0x277   :  { %5537 = vmatpush1.bf16.msra.mxu0 %v7551_v44  ;;  %v6924_v44 = vcombine.high %v513_v40, %v517_v41  ;;  %v545_v6 = vld [vmem:[#allocation5 + $0xc58] sm:$0xff] }
 0x278   :  { %5538 = vmatprep.subr.bf16.mxu0 %v7556_v46  ;;  %v521_v46 = vld [vmem:[#allocation5 + $0xb98] sm:$0xff] }
 0x279   :  { %3875 = vmatpush1.bf16.msra.mxu1 %v6851_v48  ;;  %v7581_v48 = vld [vmem:[#allocation8 + $0x1a0] ss:$16 sps:$4 sm:$0xff]   ;;  %v6931_v60 = vcombine.low %v521_v46, %v525_v47 }
 0x27a   :  { %3876 = vmatprep.subr.bf16.mxu1 %v6860_v51  ;;  %v7586_v51 = vld [vmem:[#allocation8 + $0x1c4] ss:$16 sps:$4 sm:$0xff]  }
 0x27b   :  { %5539 = vmatpush1.bf16.msra.mxu0 %v7554_v49  ;;  %v6932_v49 = vcombine.high %v521_v46, %v525_v47  ;;  %v561_v61 = vld [vmem:[#allocation5 + $0xcd8] sm:$0xff] }
 0x27c   :  { %5540 = vmatprep.subr.bf16.mxu0 %v7559_v55  ;;  %v529_v55 = vld [vmem:[#allocation5 + $0xbd8] sm:$0xff] }
 0x27d   :  { %3877 = vmatpush1.bf16.msra.mxu1 %v6859_v63  ;;  %v7584_v63 = vld [vmem:[#allocation8 + $0x1c0] ss:$16 sps:$4 sm:$0xff]   ;;  %v7610_v47 = vld [vmem:[#allocation8 + $0x2c4] ss:$16 sps:$4 sm:$0xff]  }
 0x27e   :  { %3878 = vmatprep.subr.bf16.mxu1 %v6868_v32  ;;  %v3948_v32 = vmul.f32 0.1, %v8533_v52  ;;  %v569_v27 = vld [vmem:[#allocation5 + $0xd18] sm:$0xff] }
 0x27f   :  { %5541 = vmatpush1.bf16.msra.mxu0 %v7557_v56  ;;  %v6940_v56 = vcombine.high %v529_v55, %v533_v57  ;;  %v573_v54 = vld [vmem:[#allocation5 + $0xd38] sm:$0xff] }
 0x280   :  { %5542 = vmatprep.subr.bf16.mxu0 %v7562_v0  ;;  %v7589_v0 = vld [vmem:[#allocation8 + $0x1e4] ss:$16 sps:$4 sm:$0xff]   ;;  %v6979_v36 = vcombine.low %v569_v27, %v573_v54 }
 0x281   :  { %3879 = vmatpush1.bf16.msra.mxu1 %v6867_v1  ;;  %v6939_v1 = vcombine.low %v529_v55, %v533_v57  ;;  %v577_v35 = vld [vmem:[#allocation5 + $0xd58] sm:$0xff] }
 0x282   :  { %3880 = vmatprep.subr.bf16.mxu1 %v6876_v3  ;;  %v6948_v3 = vcombine.high %v537_v58, %v541_v62  ;;  %v585_v40 = vld [vmem:[#allocation5 + $0xd98] sm:$0xff] }
 0x283   :  { %5543 = vmatpush1.bf16.msra.mxu0 %v7560_v2  ;;  %v7587_v2 = vld [vmem:[#allocation8 + $0x1e0] ss:$16 sps:$4 sm:$0xff]  }
 0x284   :  { %5544 = vmatprep.subr.bf16.mxu0 %v7565_v4  ;;  %v3956_v4 = vmax.f32 %v8533_v52, %v3948_v32  ;;  %v589_v41 = vld [vmem:[#allocation5 + $0xdb8] sm:$0xff] }
 0x285   :  { %3881 = vmatpush1.bf16.msra.mxu1 %v6875_v7  ;;  %v549_v7 = vld [vmem:[#allocation5 + $0xc78] sm:$0xff]  ;;  %v6995_v57 = vcombine.low %v585_v40, %v589_v41 }
 0x286   :  { %3882 = vmatprep.subr.bf16.mxu1 %v6884_v8  ;;  %v7590_v8 = vld [vmem:[#allocation8 + $0x200] ss:$16 sps:$4 sm:$0xff]   ;;  %v8547_v11 = vpack.c.bf16 %v3956_v4, %v3956_v4  ;;  %v6955_v52 = vcombine.low %v545_v6, %v549_v7 }
 0x287   :  { %5545 = vmatpush1.bf16.msra.mxu0 %v7563_v16  ;;  %v6947_v16 = vcombine.low %v537_v58, %v541_v62  ;;  %v601_v58 = vld [vmem:[#allocation5 + $0xe18] sm:$0xff] }
 0x288   :  { %5546 = vmatprep.subr.bf16.mxu0 %v7568_v9  ;;  %v6956_v9 = vcombine.high %v545_v6, %v549_v7  ;;  %v605_v62 = vld [vmem:[#allocation5 + $0xe38] sm:$0xff] }
 0x289   :  { %3883 = vmatpush1.bf16.msra.mxu1 %v6883_v13  ;;  %v553_v13 = vld [vmem:[#allocation5 + $0xc98] sm:$0xff]  ;;  %v7012_v4 = vcombine.high %v601_v58, %v605_v62 }
 0x28a   :  { %3884 = vmatprep.subr.bf16.mxu1 %v6892_v15  ;;  %v7593_v15 = vld [vmem:[#allocation8 + $0x220] ss:$16 sps:$4 sm:$0xff]   ;;  %v7616_v6 = vld [vmem:[#allocation8 + $0x304] ss:$16 sps:$4 sm:$0xff]  }
 0x28b   :  { %5547 = vmatpush1.bf16.msra.mxu0 %v7566_v14  ;;  %v557_v14 = vld [vmem:[#allocation5 + $0xcb8] sm:$0xff] }
 0x28c   :  { %5548 = vmatprep.subr.bf16.mxu0 %v7571_v17  ;;  %v6964_v17 = vcombine.high %v553_v13, %v557_v14  ;;  %v609_v7 = vld [vmem:[#allocation5 + $0xe58] sm:$0xff] }
 0x28d   :  { %3885 = vmatpush1.bf16.msra.mxu1 %v6891_v22  ;;  %v565_v22 = vld [vmem:[#allocation5 + $0xcf8] sm:$0xff] }
 0x28e   :  { %3886 = vmatprep.subr.bf16.mxu1 %v6900_v24  ;;  %v7596_v24 = vld [vmem:[#allocation8 + $0x240] ss:$16 sps:$4 sm:$0xff]  }
 0x28f   :  { %5549 = vmatpush1.bf16.msra.mxu0 %v7569_v23  ;;  %v6963_v23 = vcombine.low %v553_v13, %v557_v14  ;;  %v7619_v13 = vld [vmem:[#allocation8 + $0x324] ss:$16 sps:$4 sm:$0xff]  }
 0x290   :  { %5550 = vmatprep.subr.bf16.mxu0 %v7574_v53  ;;  %v7601_v53 = vld [vmem:[#allocation8 + $0x264] ss:$16 sps:$4 sm:$0xff]  }
 0x291   :  { %3887 = vmatpush1.bf16.msra.mxu1 %v6899_v29  ;;  %v6971_v29 = vcombine.low %v561_v61, %v565_v22  ;;  %v617_v14 = vld [vmem:[#allocation5 + $0xe98] sm:$0xff] }
 0x292   :  { %3888 = vmatprep.subr.bf16.mxu1 %v6908_v31  ;;  %v6980_v31 = vcombine.high %v569_v27, %v573_v54  ;;  %v7625_v27 = vld [vmem:[#allocation8 + $0x364] ss:$16 sps:$4 sm:$0xff]  }
 0x293   :  { %5551 = vmatpush1.bf16.msra.mxu0 %v7572_v59  ;;  %v7599_v59 = vld [vmem:[#allocation8 + $0x260] ss:$16 sps:$4 sm:$0xff]  }
 0x294   :  { %5552 = vmatprep.subr.bf16.mxu0 %v7577_v33  ;;  %v7604_v33 = vld [vmem:[#allocation8 + $0x284] ss:$16 sps:$4 sm:$0xff]  }
 0x295   :  { %3889 = vmatpush1.bf16.msra.mxu1 %v6907_v37  ;;  %v678_v37 = vsub.s32 3, %v8517_v10  ;;  %v633_v54 = vld [vmem:[#allocation5 + $0xf18] sm:$0xff] }
 0x296   :  { %3890 = vmatprep.subr.bf16.mxu1 %v6916_v21 }
 0x297   :  { %5553 = vmatpush1.bf16.msra.mxu0 %v7575_v38  ;;  %v7602_v38 = vld [vmem:[#allocation8 + $0x280] ss:$16 sps:$4 sm:$0xff]  }
 0x298   :  { %5554 = vmatprep.subr.bf16.mxu0 %v7580_v39  ;;  %v7607_v39 = vld [vmem:[#allocation8 + $0x2a4] ss:$16 sps:$4 sm:$0xff]  }
 0x299   :  { %3891 = vmatpush1.bf16.msra.mxu1 %v6915_v19  ;;  %v679_v19 = vrot.slane %v8522_v25, %v678_v37 }
 0x29a   :  { %3892 = vmatprep.subr.bf16.mxu1 %v6924_v44  ;;  %v7605_v44 = vld [vmem:[#allocation8 + $0x2a0] ss:$16 sps:$4 sm:$0xff]  }
 0x29b   :  { %5555 = vmatpush1.bf16.msra.mxu0 %v7578_v43 }
 0x29c   :  { %5556 = vmatprep.subr.bf16.mxu0 %v7583_v45  ;;  %v6996_v45 = vcombine.high %v585_v40, %v589_v41 }
 0x29d   :  { %3893 = vmatpush1.bf16.msra.mxu1 %v6923_v28  ;;  %v593_v28 = vld [vmem:[#allocation5 + $0xdd8] sm:$0xff] }
 0x29e   :  { %3894 = vmatprep.subr.bf16.mxu1 %v6932_v49 }
 0x29f   :  { %5557 = vmatpush1.bf16.msra.mxu0 %v7581_v48  ;;  %v597_v48 = vld [vmem:[#allocation5 + $0xdf8] sm:$0xff] }
 0x2a0   :  { %5558 = vmatprep.subr.bf16.mxu0 %v7586_v51 }
 0x2a1   :  { %3895 = vmatpush1.bf16.msra.mxu1 %v6931_v60 }
 0x2a2   :  { %3896 = vmatprep.subr.bf16.mxu1 %v6940_v56  ;;  %v7004_v56 = vcombine.high %v593_v28, %v597_v48 }
 0x2a3   :  { %5559 = vmatpush1.bf16.msra.mxu0 %v7584_v63  ;;  %v7608_v63 = vld [vmem:[#allocation8 + $0x2c0] ss:$16 sps:$4 sm:$0xff]  }
 0x2a4   :  { %5560 = vmatprep.subr.bf16.mxu0 %v7589_v0  ;;  %v7613_v0 = vld [vmem:[#allocation8 + $0x2e4] ss:$16 sps:$4 sm:$0xff]  }
 0x2a5   :  { %3897 = vmatpush1.bf16.msra.mxu1 %v6939_v1 }
 0x2a6   :  { %3907 = vmatprep.subr.bf16.mxu1 %v6948_v3  ;;  %v7611_v3 = vld [vmem:[#allocation8 + $0x2e0] ss:$16 sps:$4 sm:$0xff]  }
 0x2a7   :  { %5561 = vmatpush1.bf16.msra.mxu0 %v7587_v2  ;;  %v7003_v2 = vcombine.low %v593_v28, %v597_v48 }
 0x2a8   :  { %5571 = vmatprep.subr.bf16.mxu0 %v7592_v5  ;;  %3899 = vmatmul.mubr.bf16.vlgmr.msra.gmra.mrb[8].mxu1 %v8483_v34  ;;  %v6972_v34 = vcombine.high %v561_v61, %v565_v22  ;;  %v7622_v61 = vld [vmem:[#allocation8 + $0x344] ss:$16 sps:$4 sm:$0xff]  }
 0x2a9   :  { %3908 = vmatpush1.bf16.msra.mxu1 %v6947_v16  ;;  %3939 = vmatprep.mubr.bf16.mxu1 %v8487_v42  ;;  %v581_v42 = vld [vmem:[#allocation5 + $0xd78] sm:$0xff] }
 0x2aa   :  { %5563 = vmatmul.mubr.bf16.vlgmr.msra.gmra.mrb[8].mxu0 %v8547_v11  ;;  %3909 = vmatprep.subr.bf16.mxu1 %v6956_v9  ;;  %v6988_v21 = vcombine.high %v577_v35, %v581_v42  ;;  %v6987_v43 = vcombine.low %v577_v35, %v581_v42  ;;  %v613_v16 = vld [vmem:[#allocation5 + $0xe78] sm:$0xff]  ;;  %v674_v35 = vsub.s32 2, %v8517_v10 }
 0x2ab   :  { %5572 = vmatpush1.bf16.msra.mxu0 %v7590_v8  ;;  %v7011_v8 = vcombine.low %v601_v58, %v605_v62  ;;  %v7614_v9 = vld [vmem:[#allocation8 + $0x300] ss:$16 sps:$4 sm:$0xff]   ;;  %v7628_v42 = vld [vmem:[#allocation8 + $0x384] ss:$16 sps:$4 sm:$0xff]   ;;  %v7640_v58 = vld [vmem:[#allocation8 + $0xc] ss:$16 sps:$4 sm:$0xff]  }
 0x2ac   :  { %5573 = vmatprep.subr.bf16.mxu0 %v7595_v12  ;;  %v7020_v12 = vcombine.high %v609_v7, %v613_v16  ;;  %v625_v22 = vld [vmem:[#allocation5 + $0xed8] sm:$0xff]  ;;  %v675_v41 = vrot.slane %v8522_v25, %v674_v35 }
 0x2ad   :  { %3910 = vmatpush1.bf16.msra.mxu1 %v6955_v52  ;;  %v621_v52 = vld [vmem:[#allocation5 + $0xeb8] sm:$0xff] }
 0x2ae   :  { %3911 = vmatprep.subr.bf16.mxu1 %v6964_v17  ;;  %v7617_v17 = vld [vmem:[#allocation8 + $0x320] ss:$16 sps:$4 sm:$0xff]   ;;  %v7664_v62 = vld [vmem:[#allocation8 + $0x404] ss:$16 sps:$4 sm:$0xff]  }
 0x2af   :  { %5574 = vmatpush1.bf16.msra.mxu0 %v7593_v15  ;;  %v7019_v15 = vcombine.low %v609_v7, %v613_v16  ;;  %v7632_v25 = vld [vmem:[#allocation8 + $0x3c0] ss:$16 sps:$4 sm:$0xff]   ;;  %v7641_v7 = vld [vmem:[#allocation8 + $0x28] ss:$16 sps:$4 sm:$0xff]   ;;  %v7646_v16 = vld [vmem:[#allocation8 + $0x4c] ss:$16 sps:$4 sm:$0xff]  }
 0x2b0   :  { %5575 = vmatprep.subr.bf16.mxu0 %v7598_v18  ;;  %v7028_v18 = vcombine.high %v617_v14, %v621_v52 }
 0x2b1   :  { %3912 = vmatpush1.bf16.msra.mxu1 %v6963_v23  ;;  %v629_v23 = vld [vmem:[#allocation5 + $0xef8] sm:$0xff] }
 0x2b2   :  { %3913 = vmatprep.subr.bf16.mxu1 %v6972_v34  ;;  %v7620_v34 = vld [vmem:[#allocation8 + $0x340] ss:$16 sps:$4 sm:$0xff]  }
 0x2b3   :  { %5576 = vmatpush1.bf16.msra.mxu0 %v7596_v24  ;;  %v7027_v24 = vcombine.low %v617_v14, %v621_v52  ;;  %v7674_v14 = vld [vmem:[#allocation8 + $0x440] ss:$16 sps:$4 sm:$0xff]   ;;  %v7647_v52 = vld [vmem:[#allocation8 + $0x68] ss:$16 sps:$4 sm:$0xff]  }
 0x2b4   :  { %5577 = vmatprep.subr.bf16.mxu0 %v7601_v53  ;;  %v7036_v53 = vcombine.high %v625_v22, %v629_v23 }
 0x2b5   :  { %3914 = vmatpush1.bf16.msra.mxu1 %v6971_v29  ;;  %v637_v29 = vld [vmem:[#allocation5 + $0xf38] sm:$0xff] }
 0x2b6   :  { %3915 = vmatprep.subr.bf16.mxu1 %v6980_v31  ;;  %v7623_v31 = vld [vmem:[#allocation8 + $0x360] ss:$16 sps:$4 sm:$0xff]  }
 0x2b7   :  { %5578 = vmatpush1.bf16.msra.mxu0 %v7599_v59  ;;  %v7035_v59 = vcombine.low %v625_v22, %v629_v23  ;;  %v7686_v22 = vld [vmem:[#allocation8 + $0x480] ss:$16 sps:$4 sm:$0xff]   ;;  %v7694_v23 = vld [vmem:[#allocation8 + $0x4a4] ss:$16 sps:$4 sm:$0xff]  }
 0x2b8   :  { %5579 = vmatprep.subr.bf16.mxu0 %v7604_v33  ;;  %v7044_v33 = vcombine.high %v633_v54, %v637_v29 }
 0x2b9   :  { %3916 = vmatpush1.bf16.msra.mxu1 %v6979_v36  ;;  %v641_v36 = vld [vmem:[#allocation5 + $0xf58] sm:$0xff] }
 0x2ba   :  { %3917 = vmatprep.subr.bf16.mxu1 %v6988_v21  ;;  %v7043_v21 = vcombine.low %v633_v54, %v637_v29  ;;  %v7656_v54 = vld [vmem:[#allocation8 + $0xc8] ss:$16 sps:$4 sm:$0xff]   ;;  %v7661_v29 = vld [vmem:[#allocation8 + $0xec] ss:$16 sps:$4 sm:$0xff]  }
 0x2bb   :  { %5580 = vmatpush1.bf16.msra.mxu0 %v7602_v38  ;;  %v8556_v46 = vpop.f32.mrb[4].mxu1  ;;  %v645_v38 = vld [vmem:[#allocation5 + $0xf78] sm:$0xff] }
 0x2bc   :  { %5581 = vmatprep.subr.bf16.mxu0 %v7607_v39  ;;  %v3615_v49 = vpop.f32.mrb[5].mxu1  ;;  %v7626_v39 = vld [vmem:[#allocation8 + $0x380] ss:$16 sps:$4 sm:$0xff]   ;;  %v7052_v40 = vcombine.high %v641_v36, %v645_v38  ;;  %v7432_v48 = vadd.f32 %v8556_v46, %v675_v41  ;;  %v7718_v41 = vld [vmem:[#allocation8 + $0x524] ss:$16 sps:$4 sm:$0xff]  }
 0x2bd   :  { %v7433_v51 = vadd.f32 %v3615_v49, %v679_v19  ;;  %v3617_v55 = vpop.f32.mrb[6].mxu1  ;;  %3918 = vmatpush1.bf16.msra.mxu1 %v6987_v43  ;;  %v7631_v19 = vld [vmem:[#allocation8 + $0x3a4] ss:$16 sps:$4 sm:$0xff]  }
 0x2be   :  { %v3618_v60 = vpop.f32.mrb[7].mxu1  ;;  %3919 = vmatprep.subr.bf16.mxu1 %v6996_v45  ;;  %v649_v43 = vld [vmem:[#allocation5 + $0xf98] sm:$0xff]  ;;  %v7051_v45 = vcombine.low %v641_v36, %v645_v38 }
 0x2bf   :  { %5582 = vmatpush1.bf16.msra.mxu0 %v7605_v44  ;;  %v3951_v32 = vmul.f32 0.1, %v7433_v51  ;;  %v653_v44 = vld [vmem:[#allocation5 + $0xfb8] sm:$0xff] }
 0x2c0   :  { %5583 = vmatprep.subr.bf16.mxu0 %v7610_v47  ;;  %v7629_v47 = vld [vmem:[#allocation8 + $0x3a0] ss:$16 sps:$4 sm:$0xff]   ;;  %v7060_v28 = vcombine.high %v649_v43, %v653_v44  ;;  %v7634_v49 = vld [vmem:[#allocation8 + $0x3c4] ss:$16 sps:$4 sm:$0xff]  }
 0x2c1   :  { %v3959_v1 = vmax.f32 %v7433_v51, %v3951_v32  ;;  %3920 = vmatpush1.bf16.msra.mxu1 %v6995_v57  ;;  %v657_v51 = vld [vmem:[#allocation5 + $0xfd8] sm:$0xff]  ;;  %v7059_v57 = vcombine.low %v649_v43, %v653_v44  ;;  %v7679_v43 = vld [vmem:[#allocation8 + $0x14c] ss:$16 sps:$4 sm:$0xff]  }
 0x2c2   :  { %3921 = vmatprep.subr.bf16.mxu1 %v7004_v56  ;;  %v661_v55 = vld [vmem:[#allocation5 + $0xff8] sm:$0xff] }
 0x2c3   :  { %5584 = vmatpush1.bf16.msra.mxu0 %v7608_v63  ;;  %v8558_v5 = vpack.c.bf16 %v3959_v1, %v3959_v1  ;;  %v7068_v60 = vcombine.high %v657_v51, %v661_v55  ;;  %v3950_v63 = vmul.f32 0.1, %v7432_v48  ;;  %v7637_v56 = vld [vmem:[#allocation8 + $0x3e4] ss:$16 sps:$4 sm:$0xff]   ;;  %v7067_v32 = vcombine.low %v657_v51, %v661_v55  ;;  %v7638_v1 = vld [vmem:[#allocation8 + $0x8] ss:$16 sps:$4 sm:$0xff]  }
 0x2c4   :  { %5585 = vmatprep.subr.bf16.mxu0 %v7613_v0  ;;  %v7635_v0 = vld [vmem:[#allocation8 + $0x3e0] ss:$16 sps:$4 sm:$0xff]   ;;  %v7712_v38 = vld [vmem:[#allocation8 + $0x504] ss:$16 sps:$4 sm:$0xff]   ;;  %v7683_v51 = vld [vmem:[#allocation8 + $0x168] ss:$16 sps:$4 sm:$0xff]  }
 0x2c5   :  { %3922 = vmatpush1.bf16.msra.mxu1 %v7003_v2  ;;  %5603 = vmatprep.mubr.bf16.mxu0 %v8558_v5  ;;  %v3958_v46 = vmax.f32 %v7432_v48, %v3950_v63  ;;  %v7643_v2 = vld [vmem:[#allocation8 + $0x2c] ss:$16 sps:$4 sm:$0xff]   ;;  %v7704_v36 = vld [vmem:[#allocation8 + $0x4e0] ss:$16 sps:$4 sm:$0xff]  }
 0x2c6   :  { %3923 = vmatprep.subr.bf16.mxu1 %v7012_v4  ;;  %v7662_v4 = vld [vmem:[#allocation8 + $0x400] ss:$16 sps:$4 sm:$0xff]   ;;  %v7691_v55 = vld [vmem:[#allocation8 + $0x18c] ss:$16 sps:$4 sm:$0xff]  }
 0x2c7   :  { %5586 = vmatpush1.bf16.msra.mxu0 %v7611_v3  ;;  %v8566_v3 = vpack.c.bf16 %v3958_v46, %v3958_v46  ;;  %v7716_v44 = vld [vmem:[#allocation8 + $0x520] ss:$16 sps:$4 sm:$0xff]   ;;  %v7697_v63 = vld [vmem:[#allocation8 + $0x1ac] ss:$16 sps:$4 sm:$0xff]  }
 0x2c8   :  { %5587 = vmatprep.subr.bf16.mxu0 %v7616_v6  ;;  %v7670_v6 = vld [vmem:[#allocation8 + $0x424] ss:$16 sps:$4 sm:$0xff]   ;;  %v7722_v48 = vld [vmem:[#allocation8 + $0x540] ss:$16 sps:$4 sm:$0xff]  }
 0x2c9   :  { %3924 = vmatpush1.bf16.msra.mxu1 %v7011_v8  ;;  %v7668_v8 = vld [vmem:[#allocation8 + $0x420] ss:$16 sps:$4 sm:$0xff]  }
 0x2ca   :  { %3925 = vmatprep.subr.bf16.mxu1 %v7020_v12  ;;  %v7644_v12 = vld [vmem:[#allocation8 + $0x48] ss:$16 sps:$4 sm:$0xff]   ;;  %v7740_v46 = vld [vmem:[#allocation8 + $0x5a0] ss:$16 sps:$4 sm:$0xff]  }
 0x2cb   :  { %5588 = vmatpush1.bf16.msra.mxu0 %v7614_v9  ;;  %v7676_v9 = vld [vmem:[#allocation8 + $0x444] ss:$16 sps:$4 sm:$0xff]  }
 0x2cc   :  { %5589 = vmatprep.subr.bf16.mxu0 %v7619_v13  ;;  %v7649_v13 = vld [vmem:[#allocation8 + $0x6c] ss:$16 sps:$4 sm:$0xff]  }
 0x2cd   :  { %3926 = vmatpush1.bf16.msra.mxu1 %v7019_v15  ;;  %v7652_v15 = vld [vmem:[#allocation8 + $0x8c] ss:$16 sps:$4 sm:$0xff]  }
 0x2ce   :  { %3927 = vmatprep.subr.bf16.mxu1 %v7028_v18  ;;  %v7650_v18 = vld [vmem:[#allocation8 + $0x88] ss:$16 sps:$4 sm:$0xff]  }
 0x2cf   :  { %5590 = vmatpush1.bf16.msra.mxu0 %v7617_v17  ;;  %v7688_v17 = vld [vmem:[#allocation8 + $0x484] ss:$16 sps:$4 sm:$0xff]  }
 0x2d0   :  { %5591 = vmatprep.subr.bf16.mxu0 %v7622_v61  ;;  %v7655_v61 = vld [vmem:[#allocation8 + $0xac] ss:$16 sps:$4 sm:$0xff]  }
 0x2d1   :  { %3928 = vmatpush1.bf16.msra.mxu1 %v7027_v24  ;;  %v7653_v24 = vld [vmem:[#allocation8 + $0xa8] ss:$16 sps:$4 sm:$0xff]  }
 0x2d2   :  { %3929 = vmatprep.subr.bf16.mxu1 %v7036_v53  ;;  %v7692_v53 = vld [vmem:[#allocation8 + $0x4a0] ss:$16 sps:$4 sm:$0xff]  }
 0x2d3   :  { %5592 = vmatpush1.bf16.msra.mxu0 %v7620_v34  ;;  %v7658_v34 = vld [vmem:[#allocation8 + $0xcc] ss:$16 sps:$4 sm:$0xff]  }
 0x2d4   :  { %5593 = vmatprep.subr.bf16.mxu0 %v7625_v27  ;;  %v7700_v27 = vld [vmem:[#allocation8 + $0x4c4] ss:$16 sps:$4 sm:$0xff]  }
 0x2d5   :  { %3930 = vmatpush1.bf16.msra.mxu1 %v7035_v59  ;;  %v7698_v59 = vld [vmem:[#allocation8 + $0x4c0] ss:$16 sps:$4 sm:$0xff]  }
 0x2d6   :  { %3931 = vmatprep.subr.bf16.mxu1 %v7044_v33  ;;  %v7659_v33 = vld [vmem:[#allocation8 + $0xe8] ss:$16 sps:$4 sm:$0xff]  }
 0x2d7   :  { %5594 = vmatpush1.bf16.msra.mxu0 %v7623_v31  ;;  %v7706_v31 = vld [vmem:[#allocation8 + $0x4e4] ss:$16 sps:$4 sm:$0xff]  }
 0x2d8   :  { %5595 = vmatprep.subr.bf16.mxu0 %v7628_v42  ;;  %v7667_v42 = vld [vmem:[#allocation8 + $0x10c] ss:$16 sps:$4 sm:$0xff]  }
 0x2d9   :  { %3932 = vmatpush1.bf16.msra.mxu1 %v7043_v21  ;;  %v7665_v21 = vld [vmem:[#allocation8 + $0x108] ss:$16 sps:$4 sm:$0xff]  }
 0x2da   :  { %3933 = vmatprep.subr.bf16.mxu1 %v7052_v40  ;;  %v7710_v40 = vld [vmem:[#allocation8 + $0x500] ss:$16 sps:$4 sm:$0xff]  }
 0x2db   :  { %5596 = vmatpush1.bf16.msra.mxu0 %v7626_v39  ;;  %v7673_v39 = vld [vmem:[#allocation8 + $0x12c] ss:$16 sps:$4 sm:$0xff]  }
 0x2dc   :  { %5597 = vmatprep.subr.bf16.mxu0 %v7631_v19  ;;  %v7671_v19 = vld [vmem:[#allocation8 + $0x128] ss:$16 sps:$4 sm:$0xff]  }
 0x2dd   :  { %3934 = vmatpush1.bf16.msra.mxu1 %v7051_v45  ;;  %v7724_v45 = vld [vmem:[#allocation8 + $0x544] ss:$16 sps:$4 sm:$0xff]  }
 0x2de   :  { %3935 = vmatprep.subr.bf16.mxu1 %v7060_v28  ;;  %v7685_v28 = vld [vmem:[#allocation8 + $0x16c] ss:$16 sps:$4 sm:$0xff]  }
 0x2df   :  { %5598 = vmatpush1.bf16.msra.mxu0 %v7629_v47  ;;  %v7677_v47 = vld [vmem:[#allocation8 + $0x148] ss:$16 sps:$4 sm:$0xff]  }
 0x2e0   :  { %5599 = vmatprep.subr.bf16.mxu0 %v7634_v49  ;;  %v7730_v49 = vld [vmem:[#allocation8 + $0x564] ss:$16 sps:$4 sm:$0xff]  }
 0x2e1   :  { %3936 = vmatpush1.bf16.msra.mxu1 %v7059_v57  ;;  %v7728_v57 = vld [vmem:[#allocation8 + $0x560] ss:$16 sps:$4 sm:$0xff]  }
 0x2e2   :  { %3937 = vmatprep.subr.bf16.mxu1 %v7068_v60  ;;  %v7689_v60 = vld [vmem:[#allocation8 + $0x188] ss:$16 sps:$4 sm:$0xff]  }
 0x2e3   :  { %5600 = vmatpush1.bf16.msra.mxu0 %v7632_v25  ;;  %v7736_v25 = vld [vmem:[#allocation8 + $0x584] ss:$16 sps:$4 sm:$0xff]  }
 0x2e4   :  { %5601 = vmatprep.subr.bf16.mxu0 %v7637_v56  ;;  %v7734_v56 = vld [vmem:[#allocation8 + $0x580] ss:$16 sps:$4 sm:$0xff]  }
 0x2e5   :  { %3938 = vmatpush1.bf16.msra.mxu1 %v7067_v32  ;;  %v7742_v32 = vld [vmem:[#allocation8 + $0x5a4] ss:$16 sps:$4 sm:$0xff]  }
 0x2e6   :  { %5694 = vmatprep.subr.bf16.mxu1 %v7640_v58  ;;  %v7703_v58 = vld [vmem:[#allocation8 + $0x1cc] ss:$16 sps:$4 sm:$0xff]  }
 0x2e7   :  { %5602 = vmatpush1.bf16.msra.mxu0 %v7635_v0  ;;  %v7695_v0 = vld [vmem:[#allocation8 + $0x1a8] ss:$16 sps:$4 sm:$0xff]  }
 0x2e8   :  { %5612 = vmatprep.subr.bf16.mxu0 %v7664_v62  ;;  %3940 = vmatmul.mubr.bf16.vlgmr.msra.gmra.mrb[8].mxu1 %v8495_v50  ;;  %v7682_v50 = vld [vmem:[#allocation8 + $0x464] ss:$16 sps:$4 sm:$0xff]  }
 0x2e9   :  { %5695 = vmatpush1.bf16.msra.mxu1 %v7638_v1  ;;  %5726 = vmatprep.mubr.bf16.mxu1 %v8539_v30  ;;  %v7680_v30 = vld [vmem:[#allocation8 + $0x460] ss:$16 sps:$4 sm:$0xff]   ;;  %v7748_v62 = vld [vmem:[#allocation8 + $0x5c4] ss:$16 sps:$4 sm:$0xff]   ;;  %v7701_v1 = vld [vmem:[#allocation8 + $0x1c8] ss:$16 sps:$4 sm:$0xff]  }
 0x2ea   :  { %5604 = vmatmul.mubr.bf16.vlgmr.msra.gmra.mrb[8].mxu0 %v8566_v3  ;;  %5696 = vmatprep.subr.bf16.mxu1 %v7643_v2  ;;  %v7709_v2 = vld [vmem:[#allocation8 + $0x1ec] ss:$16 sps:$4 sm:$0xff]  }
 0x2eb   :  { %5613 = vmatpush1.bf16.msra.mxu0 %v7662_v4  ;;  %v7746_v4 = vld [vmem:[#allocation8 + $0x5c0] ss:$16 sps:$4 sm:$0xff]  }
 0x2ec   :  { %5614 = vmatprep.subr.bf16.mxu0 %v7670_v6  ;;  %v7754_v6 = vld [vmem:[#allocation8 + $0x5e4] ss:$16 sps:$4 sm:$0xff]  }
 0x2ed   :  { %5697 = vmatpush1.bf16.msra.mxu1 %v7641_v7  ;;  %v7707_v7 = vld [vmem:[#allocation8 + $0x1e8] ss:$16 sps:$4 sm:$0xff]  }
 0x2ee   :  { %5698 = vmatprep.subr.bf16.mxu1 %v7646_v16  ;;  %v7715_v16 = vld [vmem:[#allocation8 + $0x20c] ss:$16 sps:$4 sm:$0xff]  }
 0x2ef   :  { %5615 = vmatpush1.bf16.msra.mxu0 %v7668_v8  ;;  %v7752_v8 = vld [vmem:[#allocation8 + $0x5e0] ss:$16 sps:$4 sm:$0xff]  }
 0x2f0   :  { %5616 = vmatprep.subr.bf16.mxu0 %v7676_v9  ;;  %v7808_v9 = vld [vmem:[#allocation8 + $0x604] ss:$16 sps:$4 sm:$0xff]  }
 0x2f1   :  { %5699 = vmatpush1.bf16.msra.mxu1 %v7644_v12  ;;  %v7713_v12 = vld [vmem:[#allocation8 + $0x208] ss:$16 sps:$4 sm:$0xff]  }
 0x2f2   :  { %5700 = vmatprep.subr.bf16.mxu1 %v7649_v13  ;;  %v7721_v13 = vld [vmem:[#allocation8 + $0x22c] ss:$16 sps:$4 sm:$0xff]  }
 0x2f3   :  { %5617 = vmatpush1.bf16.msra.mxu0 %v7674_v14  ;;  %v7719_v14 = vld [vmem:[#allocation8 + $0x228] ss:$16 sps:$4 sm:$0xff]  }
 0x2f4   :  { %5618 = vmatprep.subr.bf16.mxu0 %v7682_v50  ;;  %v7727_v50 = vld [vmem:[#allocation8 + $0x24c] ss:$16 sps:$4 sm:$0xff]  }
 0x2f5   :  { %5701 = vmatpush1.bf16.msra.mxu1 %v7647_v52  ;;  %v7725_v52 = vld [vmem:[#allocation8 + $0x248] ss:$16 sps:$4 sm:$0xff]  }
 0x2f6   :  { %5702 = vmatprep.subr.bf16.mxu1 %v7652_v15  ;;  %v7733_v15 = vld [vmem:[#allocation8 + $0x26c] ss:$16 sps:$4 sm:$0xff]  }
 0x2f7   :  { %5619 = vmatpush1.bf16.msra.mxu0 %v7680_v30  ;;  %v7731_v30 = vld [vmem:[#allocation8 + $0x268] ss:$16 sps:$4 sm:$0xff]  }
 0x2f8   :  { %5620 = vmatprep.subr.bf16.mxu0 %v7688_v17  ;;  %v7739_v17 = vld [vmem:[#allocation8 + $0x28c] ss:$16 sps:$4 sm:$0xff]  }
 0x2f9   :  { %5703 = vmatpush1.bf16.msra.mxu1 %v7650_v18  ;;  %v7737_v18 = vld [vmem:[#allocation8 + $0x288] ss:$16 sps:$4 sm:$0xff]  }
 0x2fa   :  { %5704 = vmatprep.subr.bf16.mxu1 %v7655_v61  ;;  %v682_v61 = vsub.s32 4, %v8517_v10 }
 0x2fb   :  { %5621 = vmatpush1.bf16.msra.mxu0 %v7686_v22  ;;  %v7745_v22 = vld [vmem:[#allocation8 + $0x2ac] ss:$16 sps:$4 sm:$0xff]  }
 0x2fc   :  { %5622 = vmatprep.subr.bf16.mxu0 %v7694_v23 }
 0x2fd   :  { %5705 = vmatpush1.bf16.msra.mxu1 %v7653_v24  ;;  %v7743_v24 = vld [vmem:[#allocation8 + $0x2a8] ss:$16 sps:$4 sm:$0xff]  }
 0x2fe   :  { %5706 = vmatprep.subr.bf16.mxu1 %v7658_v34 }
 0x2ff   :  { %5623 = vmatpush1.bf16.msra.mxu0 %v7692_v53  ;;  %v7751_v53 = vld [vmem:[#allocation8 + $0x2cc] ss:$16 sps:$4 sm:$0xff]  }
 0x300   :  { %5624 = vmatprep.subr.bf16.mxu0 %v7700_v27 }
 0x301   :  { %5707 = vmatpush1.bf16.msra.mxu1 %v7656_v54 }
 0x302   :  { %5708 = vmatprep.subr.bf16.mxu1 %v7661_v29 }
 0x303   :  { %5625 = vmatpush1.bf16.msra.mxu0 %v7698_v59  ;;  %v7749_v59 = vld [vmem:[#allocation8 + $0x2c8] ss:$16 sps:$4 sm:$0xff]  }
 0x304   :  { %5626 = vmatprep.subr.bf16.mxu0 %v7706_v31 }
 0x305   :  { %5709 = vmatpush1.bf16.msra.mxu1 %v7659_v33 }
 0x306   :  { %5710 = vmatprep.subr.bf16.mxu1 %v7667_v42  ;;  %v7757_v42 = vld [vmem:[#allocation8 + $0x2ec] ss:$16 sps:$4 sm:$0xff]  }
 0x307   :  { %5627 = vmatpush1.bf16.msra.mxu0 %v7704_v36 }
 0x308   :  { %5628 = vmatprep.subr.bf16.mxu0 %v7712_v38 }
 0x309   :  { %5711 = vmatpush1.bf16.msra.mxu1 %v7665_v21 }
 0x30a   :  { %5712 = vmatprep.subr.bf16.mxu1 %v7673_v39 }
 0x30b   :  { %5629 = vmatpush1.bf16.msra.mxu0 %v7710_v40  ;;  %v7755_v40 = vld [vmem:[#allocation8 + $0x2e8] ss:$16 sps:$4 sm:$0xff]  }
 0x30c   :  { %5630 = vmatprep.subr.bf16.mxu0 %v7718_v41 }
 0x30d   :  { %5713 = vmatpush1.bf16.msra.mxu1 %v7671_v19  ;;  %v7760_v19 = vld [vmem:[#allocation8 + $0x30c] ss:$16 sps:$4 sm:$0xff]  }
 0x30e   :  { %5714 = vmatprep.subr.bf16.mxu1 %v7679_v43 }
 0x30f   :  { %5631 = vmatpush1.bf16.msra.mxu0 %v7716_v44  ;;  %v7806_v44 = vld [vmem:[#allocation8 + $0x600] ss:$16 sps:$4 sm:$0xff]  }
 0x310   :  { %5632 = vmatprep.subr.bf16.mxu0 %v7724_v45 }
 0x311   :  { %5715 = vmatpush1.bf16.msra.mxu1 %v7677_v47  ;;  %v7758_v47 = vld [vmem:[#allocation8 + $0x308] ss:$16 sps:$4 sm:$0xff]  }
 0x312   :  { %5716 = vmatprep.subr.bf16.mxu1 %v7685_v28  ;;  %v7814_v28 = vld [vmem:[#allocation8 + $0x624] ss:$16 sps:$4 sm:$0xff]  }
 0x313   :  { %5633 = vmatpush1.bf16.msra.mxu0 %v7722_v48  ;;  %v7763_v48 = vld [vmem:[#allocation8 + $0x32c] ss:$16 sps:$4 sm:$0xff]  }
 0x314   :  { %5634 = vmatprep.subr.bf16.mxu0 %v7730_v49  ;;  %v7812_v49 = vld [vmem:[#allocation8 + $0x620] ss:$16 sps:$4 sm:$0xff]  }
 0x315   :  { %5717 = vmatpush1.bf16.msra.mxu1 %v7683_v51  ;;  %v7761_v51 = vld [vmem:[#allocation8 + $0x328] ss:$16 sps:$4 sm:$0xff]  }
 0x316   :  { %5718 = vmatprep.subr.bf16.mxu1 %v7691_v55  ;;  %v7820_v55 = vld [vmem:[#allocation8 + $0x644] ss:$16 sps:$4 sm:$0xff]  }
 0x317   :  { %5635 = vmatpush1.bf16.msra.mxu0 %v7728_v57  ;;  %v7766_v57 = vld [vmem:[#allocation8 + $0x34c] ss:$16 sps:$4 sm:$0xff]  }
 0x318   :  { %5636 = vmatprep.subr.bf16.mxu0 %v7736_v25  ;;  %v7818_v25 = vld [vmem:[#allocation8 + $0x640] ss:$16 sps:$4 sm:$0xff]  }
 0x319   :  { %5719 = vmatpush1.bf16.msra.mxu1 %v7689_v60  ;;  %v7764_v60 = vld [vmem:[#allocation8 + $0x348] ss:$16 sps:$4 sm:$0xff]  }
 0x31a   :  { %5720 = vmatprep.subr.bf16.mxu1 %v7697_v63  ;;  %v7826_v63 = vld [vmem:[#allocation8 + $0x664] ss:$16 sps:$4 sm:$0xff]  }
 0x31b   :  { %5637 = vmatpush1.bf16.msra.mxu0 %v7734_v56  ;;  %v7769_v56 = vld [vmem:[#allocation8 + $0x36c] ss:$16 sps:$4 sm:$0xff]  }
 0x31c   :  { %5638 = vmatprep.subr.bf16.mxu0 %v7742_v32  ;;  %v7824_v32 = vld [vmem:[#allocation8 + $0x660] ss:$16 sps:$4 sm:$0xff]  }
 0x31d   :  { %5721 = vmatpush1.bf16.msra.mxu1 %v7695_v0  ;;  %v7767_v0 = vld [vmem:[#allocation8 + $0x368] ss:$16 sps:$4 sm:$0xff]  }
 0x31e   :  { %5722 = vmatprep.subr.bf16.mxu1 %v7703_v58  ;;  %v7832_v58 = vld [vmem:[#allocation8 + $0x684] ss:$16 sps:$4 sm:$0xff]  }
 0x31f   :  { %5639 = vmatpush1.bf16.msra.mxu0 %v7740_v46  ;;  %v7772_v46 = vld [vmem:[#allocation8 + $0x38c] ss:$16 sps:$4 sm:$0xff]  }
 0x320   :  { %5640 = vmatprep.subr.bf16.mxu0 %v7748_v62  ;;  %v7830_v62 = vld [vmem:[#allocation8 + $0x680] ss:$16 sps:$4 sm:$0xff]  }
 0x321   :  { %5723 = vmatpush1.bf16.msra.mxu1 %v7701_v1  ;;  %v7770_v1 = vld [vmem:[#allocation8 + $0x388] ss:$16 sps:$4 sm:$0xff]  }
 0x322   :  { %5724 = vmatprep.subr.bf16.mxu1 %v7709_v2  ;;  %v7838_v2 = vld [vmem:[#allocation8 + $0x6a4] ss:$16 sps:$4 sm:$0xff]  }
 0x323   :  { %5641 = vmatpush1.bf16.msra.mxu0 %v7746_v4  ;;  %v7775_v4 = vld [vmem:[#allocation8 + $0x3ac] ss:$16 sps:$4 sm:$0xff]  }
 0x324   :  { %5642 = vmatprep.subr.bf16.mxu0 %v7754_v6  ;;  %v7836_v6 = vld [vmem:[#allocation8 + $0x6a0] ss:$16 sps:$4 sm:$0xff]  }
 0x325   :  { %5725 = vmatpush1.bf16.msra.mxu1 %v7707_v7  ;;  %v7773_v7 = vld [vmem:[#allocation8 + $0x3a8] ss:$16 sps:$4 sm:$0xff]  }
 0x326   :  { %5735 = vmatprep.subr.bf16.mxu1 %v7715_v16  ;;  %v7844_v16 = vld [vmem:[#allocation8 + $0x6c4] ss:$16 sps:$4 sm:$0xff]  }
 0x327   :  { %5643 = vmatpush1.bf16.msra.mxu0 %v7752_v8  ;;  %v7778_v8 = vld [vmem:[#allocation8 + $0x3cc] ss:$16 sps:$4 sm:$0xff]  }
 0x328   :  { %5727 = vmatmul.mubr.bf16.vlgmr.msra.gmra.mrb[12].mxu1 %v8547_v11  ;;  %5653 = vmatprep.subr.bf16.mxu0 %v7808_v9  ;;  %v686_v11 = vsub.s32 5, %v8517_v10  ;;  %v7842_v9 = vld [vmem:[#allocation8 + $0x6c0] ss:$16 sps:$4 sm:$0xff]  }
 0x329   :  { %5736 = vmatpush1.bf16.msra.mxu1 %v7713_v12  ;;  %5767 = vmatprep.mubr.bf16.mxu1 %v8558_v5  ;;  %v8575_v5 = vld [vmem:[#allocation7] sm:$0xff] }
 0x32a   :  { %5737 = vmatprep.subr.bf16.mxu1 %v7721_v13  ;;  %v683_v23 = vrot.slane %v8575_v5, %v682_v61  ;;  %v687_v34 = vrot.slane %v8575_v5, %v686_v11  ;;  %v7776_v12 = vld [vmem:[#allocation8 + $0x3c8] ss:$16 sps:$4 sm:$0xff]   ;;  %v7850_v13 = vld [vmem:[#allocation8 + $0x6e4] ss:$16 sps:$4 sm:$0xff]   ;;  %v7787_v61 = vld [vmem:[#allocation8 + $0x42c] ss:$16 sps:$4 sm:$0xff]  }
 0x32b   :  { %v7862_v11 = vld [vmem:[#allocation8 + $0x724] ss:$16 sps:$4 sm:$0xff]  }
 0x32d   :  { %5738 = vmatpush1.bf16.msra.mxu1 %v7719_v14  ;;  %v7781_v14 = vld [vmem:[#allocation8 + $0x3ec] ss:$16 sps:$4 sm:$0xff]  }
 0x32e   :  { %5739 = vmatprep.subr.bf16.mxu1 %v7727_v50  ;;  %v7848_v50 = vld [vmem:[#allocation8 + $0x6e0] ss:$16 sps:$4 sm:$0xff]  }
 0x331   :  { %5740 = vmatpush1.bf16.msra.mxu1 %v7725_v52  ;;  %v7779_v52 = vld [vmem:[#allocation8 + $0x3e8] ss:$16 sps:$4 sm:$0xff]  }
 0x332   :  { %5741 = vmatprep.subr.bf16.mxu1 %v7733_v15  ;;  %v7856_v15 = vld [vmem:[#allocation8 + $0x704] ss:$16 sps:$4 sm:$0xff]  }
 0x335   :  { %5742 = vmatpush1.bf16.msra.mxu1 %v7731_v30  ;;  %v7784_v30 = vld [vmem:[#allocation8 + $0x40c] ss:$16 sps:$4 sm:$0xff]  }
 0x336   :  { %5743 = vmatprep.subr.bf16.mxu1 %v7739_v17  ;;  %v7854_v17 = vld [vmem:[#allocation8 + $0x700] ss:$16 sps:$4 sm:$0xff]  }
 0x339   :  { %5744 = vmatpush1.bf16.msra.mxu1 %v7737_v18  ;;  %v7782_v18 = vld [vmem:[#allocation8 + $0x408] ss:$16 sps:$4 sm:$0xff]  }
 0x33a   :  { %5745 = vmatprep.subr.bf16.mxu1 %v7745_v22  ;;  %v7860_v22 = vld [vmem:[#allocation8 + $0x720] ss:$16 sps:$4 sm:$0xff]  }
 0x33d   :  { %v3777_v27 = vpop.f32.mrb[4].mxu0  ;;  %5746 = vmatpush1.bf16.msra.mxu1 %v7743_v24  ;;  %v7868_v24 = vld [vmem:[#allocation8 + $0x744] ss:$16 sps:$4 sm:$0xff]  }
 0x33e   :  { %v7434_v54 = vadd.f32 %v3777_v27, %v683_v23  ;;  %v3779_v29 = vpop.f32.mrb[5].mxu0  ;;  %5747 = vmatprep.subr.bf16.mxu1 %v7751_v53  ;;  %v7785_v23 = vld [vmem:[#allocation8 + $0x428] ss:$16 sps:$4 sm:$0xff]   ;;  %v7866_v53 = vld [vmem:[#allocation8 + $0x740] ss:$16 sps:$4 sm:$0xff]  }
 0x33f   :  { %v7435_v31 = vadd.f32 %v3779_v29, %v687_v34  ;;  %v3781_v33 = vpop.f32.mrb[6].mxu0  ;;  %v7790_v34 = vld [vmem:[#allocation8 + $0x44c] ss:$16 sps:$4 sm:$0xff]   ;;  %v7788_v27 = vld [vmem:[#allocation8 + $0x448] ss:$16 sps:$4 sm:$0xff]  }
 0x340   :  { %v3952_v36 = vmul.f32 0.1, %v7434_v54  ;;  %v3782_v38 = vpop.f32.mrb[7].mxu0  ;;  %v7793_v29 = vld [vmem:[#allocation8 + $0x46c] ss:$16 sps:$4 sm:$0xff]  }
 0x341   :  { %v3953_v21 = vmul.f32 0.1, %v7435_v31  ;;  %5748 = vmatpush1.bf16.msra.mxu1 %v7749_v59  ;;  %v7791_v59 = vld [vmem:[#allocation8 + $0x468] ss:$16 sps:$4 sm:$0xff]   ;;  %v7796_v33 = vld [vmem:[#allocation8 + $0x48c] ss:$16 sps:$4 sm:$0xff]  }
 0x342   :  { %v3960_v39 = vmax.f32 %v7434_v54, %v3952_v36  ;;  %5749 = vmatprep.subr.bf16.mxu1 %v7757_v42  ;;  %v7874_v54 = vld [vmem:[#allocation8 + $0x764] ss:$16 sps:$4 sm:$0xff]   ;;  %v7878_v42 = vld [vmem:[#allocation8 + $0x780] ss:$16 sps:$4 sm:$0xff]   ;;  %v7794_v36 = vld [vmem:[#allocation8 + $0x488] ss:$16 sps:$4 sm:$0xff]  }
 0x343   :  { %v3961_v41 = vmax.f32 %v7435_v31, %v3953_v21  ;;  %v7880_v31 = vld [vmem:[#allocation8 + $0x784] ss:$16 sps:$4 sm:$0xff]   ;;  %v7799_v21 = vld [vmem:[#allocation8 + $0x4ac] ss:$16 sps:$4 sm:$0xff]  }
 0x344   :  { %v8581_v45 = vpack.c.bf16 %v3960_v39, %v3960_v39  ;;  %v7886_v38 = vld [vmem:[#allocation8 + $0x7a4] ss:$16 sps:$4 sm:$0xff]   ;;  %v7884_v39 = vld [vmem:[#allocation8 + $0x7a0] ss:$16 sps:$4 sm:$0xff]  }
 0x345   :  { %v8579_v43 = vpack.c.bf16 %v3961_v41, %v3961_v41  ;;  %5750 = vmatpush1.bf16.msra.mxu1 %v7755_v40  ;;  %v7797_v40 = vld [vmem:[#allocation8 + $0x4a8] ss:$16 sps:$4 sm:$0xff]   ;;  %v7892_v41 = vld [vmem:[#allocation8 + $0x7c4] ss:$16 sps:$4 sm:$0xff]  }
 0x346   :  { %5751 = vmatprep.subr.bf16.mxu1 %v7760_v19  ;;  %v7802_v19 = vld [vmem:[#allocation8 + $0x4cc] ss:$16 sps:$4 sm:$0xff]  }
 0x347   :  { %5644 = vmatprep.mubr.bf16.mxu0 %v8579_v43 }
 0x348   :  { %5645 = vmatmul.mubr.bf16.vlgmr.msra.gmra.mrb[8].mxu0 %v8581_v45 }
 0x349   :  { %5654 = vmatpush1.bf16.msra.mxu0 %v7806_v44  ;;  %5752 = vmatpush1.bf16.msra.mxu1 %v7758_v47  ;;  %v7800_v44 = vld [vmem:[#allocation8 + $0x4c8] ss:$16 sps:$4 sm:$0xff]   ;;  %v7898_v47 = vld [vmem:[#allocation8 + $0x7e4] ss:$16 sps:$4 sm:$0xff]  }
 0x34a   :  { %5655 = vmatprep.subr.bf16.mxu0 %v7814_v28  ;;  %5753 = vmatprep.subr.bf16.mxu1 %v7763_v48  ;;  %v7805_v28 = vld [vmem:[#allocation8 + $0x4ec] ss:$16 sps:$4 sm:$0xff]   ;;  %v7896_v48 = vld [vmem:[#allocation8 + $0x7e0] ss:$16 sps:$4 sm:$0xff]  }
 0x34d   :  { %5656 = vmatpush1.bf16.msra.mxu0 %v7812_v49  ;;  %5754 = vmatpush1.bf16.msra.mxu1 %v7761_v51  ;;  %v7803_v49 = vld [vmem:[#allocation8 + $0x4e8] ss:$16 sps:$4 sm:$0xff]  }
 0x34e   :  { %5657 = vmatprep.subr.bf16.mxu0 %v7820_v55  ;;  %5755 = vmatprep.subr.bf16.mxu1 %v7766_v57  ;;  %v7928_v51 = vld [vmem:[#allocation11 + $0x4] ss:$8 sps:$4 sm:$0xff]   ;;  %v7811_v55 = vld [vmem:[#allocation8 + $0x50c] ss:$16 sps:$4 sm:$0xff]  }
 0x34f   :  { %v7809_v57 = vld [vmem:[#allocation8 + $0x508] ss:$16 sps:$4 sm:$0xff]  }
 0x351   :  { %5658 = vmatpush1.bf16.msra.mxu0 %v7818_v25  ;;  %5756 = vmatpush1.bf16.msra.mxu1 %v7764_v60  ;;  %v7817_v25 = vld [vmem:[#allocation8 + $0x52c] ss:$16 sps:$4 sm:$0xff]   ;;  %v7815_v60 = vld [vmem:[#allocation8 + $0x528] ss:$16 sps:$4 sm:$0xff]  }
 0x352   :  { %5659 = vmatprep.subr.bf16.mxu0 %v7826_v63  ;;  %5757 = vmatprep.subr.bf16.mxu1 %v7769_v56  ;;  %v7823_v63 = vld [vmem:[#allocation8 + $0x54c] ss:$16 sps:$4 sm:$0xff]   ;;  %v7821_v56 = vld [vmem:[#allocation8 + $0x548] ss:$16 sps:$4 sm:$0xff]  }
 0x355   :  { %5660 = vmatpush1.bf16.msra.mxu0 %v7824_v32  ;;  %5758 = vmatpush1.bf16.msra.mxu1 %v7767_v0  ;;  %v7829_v32 = vld [vmem:[#allocation8 + $0x56c] ss:$16 sps:$4 sm:$0xff]   ;;  %v7827_v0 = vld [vmem:[#allocation8 + $0x568] ss:$16 sps:$4 sm:$0xff]  }
 0x356   :  { %5661 = vmatprep.subr.bf16.mxu0 %v7832_v58  ;;  %5759 = vmatprep.subr.bf16.mxu1 %v7772_v46  ;;  %v7835_v58 = vld [vmem:[#allocation8 + $0x58c] ss:$16 sps:$4 sm:$0xff]   ;;  %v7833_v46 = vld [vmem:[#allocation8 + $0x588] ss:$16 sps:$4 sm:$0xff]  }
 0x359   :  { %5662 = vmatpush1.bf16.msra.mxu0 %v7830_v62  ;;  %5760 = vmatpush1.bf16.msra.mxu1 %v7770_v1  ;;  %v7841_v62 = vld [vmem:[#allocation8 + $0x5ac] ss:$16 sps:$4 sm:$0xff]   ;;  %v7839_v1 = vld [vmem:[#allocation8 + $0x5a8] ss:$16 sps:$4 sm:$0xff]  }
 0x35a   :  { %5663 = vmatprep.subr.bf16.mxu0 %v7838_v2  ;;  %5761 = vmatprep.subr.bf16.mxu1 %v7775_v4  ;;  %v7847_v2 = vld [vmem:[#allocation8 + $0x5cc] ss:$16 sps:$4 sm:$0xff]   ;;  %v7845_v4 = vld [vmem:[#allocation8 + $0x5c8] ss:$16 sps:$4 sm:$0xff]  }
 0x35d   :  { %5664 = vmatpush1.bf16.msra.mxu0 %v7836_v6  ;;  %5762 = vmatpush1.bf16.msra.mxu1 %v7773_v7  ;;  %v7853_v6 = vld [vmem:[#allocation8 + $0x5ec] ss:$16 sps:$4 sm:$0xff]   ;;  %v7851_v7 = vld [vmem:[#allocation8 + $0x5e8] ss:$16 sps:$4 sm:$0xff]  }
 0x35e   :  { %5665 = vmatprep.subr.bf16.mxu0 %v7844_v16  ;;  %5763 = vmatprep.subr.bf16.mxu1 %v7778_v8  ;;  %v7859_v16 = vld [vmem:[#allocation8 + $0x60c] ss:$16 sps:$4 sm:$0xff]   ;;  %v7857_v8 = vld [vmem:[#allocation8 + $0x608] ss:$16 sps:$4 sm:$0xff]  }
 0x361   :  { %5666 = vmatpush1.bf16.msra.mxu0 %v7842_v9  ;;  %5764 = vmatpush1.bf16.msra.mxu1 %v7776_v12  ;;  %v7865_v9 = vld [vmem:[#allocation8 + $0x62c] ss:$16 sps:$4 sm:$0xff]   ;;  %v7863_v12 = vld [vmem:[#allocation8 + $0x628] ss:$16 sps:$4 sm:$0xff]  }
 0x362   :  { %5667 = vmatprep.subr.bf16.mxu0 %v7850_v13  ;;  %5765 = vmatprep.subr.bf16.mxu1 %v7781_v14  ;;  %v7871_v13 = vld [vmem:[#allocation8 + $0x64c] ss:$16 sps:$4 sm:$0xff]   ;;  %v7869_v14 = vld [vmem:[#allocation8 + $0x648] ss:$16 sps:$4 sm:$0xff]  }
 0x365   :  { %5668 = vmatpush1.bf16.msra.mxu0 %v7848_v50  ;;  %5766 = vmatpush1.bf16.msra.mxu1 %v7779_v52  ;;  %v7877_v50 = vld [vmem:[#allocation8 + $0x66c] ss:$16 sps:$4 sm:$0xff]   ;;  %v7875_v52 = vld [vmem:[#allocation8 + $0x668] ss:$16 sps:$4 sm:$0xff]  }
 0x366   :  { %5669 = vmatprep.subr.bf16.mxu0 %v7856_v15  ;;  %5776 = vmatprep.subr.bf16.mxu1 %v7784_v30  ;;  %v7883_v15 = vld [vmem:[#allocation8 + $0x68c] ss:$16 sps:$4 sm:$0xff]   ;;  %v690_v30 = vsub.s32 6, %v8517_v10 }
 0x368   :  { %5768 = vmatmul.mubr.bf16.vlgmr.msra.gmra.mrb[12].mxu1 %v8566_v3  ;;  %v7872_v3 = vld [vmem:[#allocation8 + $0x760] ss:$16 sps:$4 sm:$0xff]  }
 0x369   :  { %5670 = vmatpush1.bf16.msra.mxu0 %v7854_v17  ;;  %5777 = vmatpush1.bf16.msra.mxu1 %v7782_v18  ;;  %v7881_v17 = vld [vmem:[#allocation8 + $0x688] ss:$16 sps:$4 sm:$0xff]   ;;  %v694_v18 = vsub.s32 7, %v8517_v10 }
 0x36a   :  { %5808 = vmatprep.mubr.bf16.mxu1 %v8579_v43  ;;  %5778 = vmatprep.subr.bf16.mxu1 %v7787_v61  ;;  %v7890_v43 = vld [vmem:[#allocation8 + $0x7c0] ss:$16 sps:$4 sm:$0xff]   ;;  %v691_v61 = vrot.slane %v8575_v5, %v690_v30  ;;  %v7956_v30 = vld [vmem:[#allocation11 + $0xa0] ss:$8 sps:$4 sm:$0xff]  }
 0x36b   :  { %5671 = vmatprep.subr.bf16.mxu0 %v7862_v11  ;;  %v695_v11 = vrot.slane %v8575_v5, %v694_v18  ;;  %v7959_v18 = vld [vmem:[#allocation11 + $0xb0] ss:$8 sps:$4 sm:$0xff]  }
 0x36d   :  { %5672 = vmatpush1.bf16.msra.mxu0 %v7860_v22  ;;  %5779 = vmatpush1.bf16.msra.mxu1 %v7785_v23  ;;  %v7887_v22 = vld [vmem:[#allocation8 + $0x6a8] ss:$16 sps:$4 sm:$0xff]   ;;  %v7895_v23 = vld [vmem:[#allocation8 + $0x6cc] ss:$16 sps:$4 sm:$0xff]  }
 0x36e   :  { %5673 = vmatprep.subr.bf16.mxu0 %v7868_v24  ;;  %5780 = vmatprep.subr.bf16.mxu1 %v7790_v34 }
 0x371   :  { %5674 = vmatpush1.bf16.msra.mxu0 %v7866_v53  ;;  %5781 = vmatpush1.bf16.msra.mxu1 %v7788_v27 }
 0x372   :  { %5675 = vmatprep.subr.bf16.mxu0 %v7874_v54  ;;  %5782 = vmatprep.subr.bf16.mxu1 %v7793_v29  ;;  %v7893_v29 = vld [vmem:[#allocation8 + $0x6c8] ss:$16 sps:$4 sm:$0xff]  }
 0x375   :  { %5676 = vmatpush1.bf16.msra.mxu0 %v7872_v3  ;;  %5783 = vmatpush1.bf16.msra.mxu1 %v7791_v59 }
 0x376   :  { %5677 = vmatprep.subr.bf16.mxu0 %v7880_v31  ;;  %5784 = vmatprep.subr.bf16.mxu1 %v7796_v33  ;;  %v7901_v31 = vld [vmem:[#allocation8 + $0x6ec] ss:$16 sps:$4 sm:$0xff]  }
 0x379   :  { %5678 = vmatpush1.bf16.msra.mxu0 %v7878_v42  ;;  %5785 = vmatpush1.bf16.msra.mxu1 %v7794_v36 }
 0x37a   :  { %5679 = vmatprep.subr.bf16.mxu0 %v7886_v38  ;;  %5786 = vmatprep.subr.bf16.mxu1 %v7799_v21  ;;  %v7899_v38 = vld [vmem:[#allocation8 + $0x6e8] ss:$16 sps:$4 sm:$0xff]   ;;  %v7904_v21 = vld [vmem:[#allocation8 + $0x70c] ss:$16 sps:$4 sm:$0xff]  }
 0x37d   :  { %5680 = vmatpush1.bf16.msra.mxu0 %v7884_v39  ;;  %5787 = vmatpush1.bf16.msra.mxu1 %v7797_v40  ;;  %v7926_v39 = vld [vmem:[#allocation11] ss:$8 sps:$4 sm:$0xff]  }
 0x37e   :  { %5681 = vmatprep.subr.bf16.mxu0 %v7892_v41  ;;  %5788 = vmatprep.subr.bf16.mxu1 %v7802_v19  ;;  %v7931_v41 = vld [vmem:[#allocation11 + $0x14] ss:$8 sps:$4 sm:$0xff]  }
 0x37f   :  { %v7902_v19 = vld [vmem:[#allocation8 + $0x708] ss:$16 sps:$4 sm:$0xff]  }
 0x381   :  { %5682 = vmatpush1.bf16.msra.mxu0 %v7890_v43  ;;  %5789 = vmatpush1.bf16.msra.mxu1 %v7800_v44  ;;  %v7907_v43 = vld [vmem:[#allocation8 + $0x72c] ss:$16 sps:$4 sm:$0xff]  }
 0x382   :  { %5683 = vmatprep.subr.bf16.mxu0 %v7898_v47  ;;  %5790 = vmatprep.subr.bf16.mxu1 %v7805_v28  ;;  %v7929_v44 = vld [vmem:[#allocation11 + $0x10] ss:$8 sps:$4 sm:$0xff]   ;;  %v7934_v47 = vld [vmem:[#allocation11 + $0x24] ss:$8 sps:$4 sm:$0xff]  }
 0x383   :  { %v7905_v28 = vld [vmem:[#allocation8 + $0x728] ss:$16 sps:$4 sm:$0xff]  }
 0x385   :  { %5684 = vmatpush1.bf16.msra.mxu0 %v7896_v48  ;;  %5791 = vmatpush1.bf16.msra.mxu1 %v7803_v49  ;;  %v7910_v48 = vld [vmem:[#allocation8 + $0x74c] ss:$16 sps:$4 sm:$0xff]  }
 0x386   :  { %6266 = vmatprep.subr.bf16.mxu0 %v7928_v51  ;;  %5792 = vmatprep.subr.bf16.mxu1 %v7811_v55  ;;  %v7932_v49 = vld [vmem:[#allocation11 + $0x20] ss:$8 sps:$4 sm:$0xff]   ;;  %v7937_v51 = vld [vmem:[#allocation11 + $0x34] ss:$8 sps:$4 sm:$0xff]  }
 0x387   :  { %v7908_v55 = vld [vmem:[#allocation8 + $0x748] ss:$16 sps:$4 sm:$0xff]  }
 0x389   :  { %5793 = vmatpush1.bf16.msra.mxu1 %v7809_v57  ;;  %v7913_v57 = vld [vmem:[#allocation8 + $0x76c] ss:$16 sps:$4 sm:$0xff]  }
 0x38a   :  { %5794 = vmatprep.subr.bf16.mxu1 %v7817_v25  ;;  %v7935_v25 = vld [vmem:[#allocation11 + $0x30] ss:$8 sps:$4 sm:$0xff]  }
 0x38d   :  { %5795 = vmatpush1.bf16.msra.mxu1 %v7815_v60  ;;  %v7940_v60 = vld [vmem:[#allocation11 + $0x44] ss:$8 sps:$4 sm:$0xff]  }
 0x38e   :  { %5796 = vmatprep.subr.bf16.mxu1 %v7823_v63  ;;  %v7911_v63 = vld [vmem:[#allocation8 + $0x768] ss:$16 sps:$4 sm:$0xff]  }
 0x391   :  { %5797 = vmatpush1.bf16.msra.mxu1 %v7821_v56  ;;  %v7916_v56 = vld [vmem:[#allocation8 + $0x78c] ss:$16 sps:$4 sm:$0xff]  }
 0x392   :  { %5798 = vmatprep.subr.bf16.mxu1 %v7829_v32  ;;  %v7938_v32 = vld [vmem:[#allocation11 + $0x40] ss:$8 sps:$4 sm:$0xff]  }
 0x395   :  { %5799 = vmatpush1.bf16.msra.mxu1 %v7827_v0  ;;  %v7943_v0 = vld [vmem:[#allocation11 + $0x54] ss:$8 sps:$4 sm:$0xff]  }
 0x396   :  { %5800 = vmatprep.subr.bf16.mxu1 %v7835_v58  ;;  %v7914_v58 = vld [vmem:[#allocation8 + $0x788] ss:$16 sps:$4 sm:$0xff]  }
 0x399   :  { %5801 = vmatpush1.bf16.msra.mxu1 %v7833_v46  ;;  %v7919_v46 = vld [vmem:[#allocation8 + $0x7ac] ss:$16 sps:$4 sm:$0xff]  }
 0x39a   :  { %5802 = vmatprep.subr.bf16.mxu1 %v7841_v62  ;;  %v7941_v62 = vld [vmem:[#allocation11 + $0x50] ss:$8 sps:$4 sm:$0xff]  }
 0x39d   :  { %5803 = vmatpush1.bf16.msra.mxu1 %v7839_v1  ;;  %v7946_v1 = vld [vmem:[#allocation11 + $0x64] ss:$8 sps:$4 sm:$0xff]  }
 0x39e   :  { %5804 = vmatprep.subr.bf16.mxu1 %v7847_v2  ;;  %v7917_v2 = vld [vmem:[#allocation8 + $0x7a8] ss:$16 sps:$4 sm:$0xff]  }
 0x3a1   :  { %5805 = vmatpush1.bf16.msra.mxu1 %v7845_v4  ;;  %v7922_v4 = vld [vmem:[#allocation8 + $0x7cc] ss:$16 sps:$4 sm:$0xff]  }
 0x3a2   :  { %5806 = vmatprep.subr.bf16.mxu1 %v7853_v6  ;;  %v7944_v6 = vld [vmem:[#allocation11 + $0x60] ss:$8 sps:$4 sm:$0xff]  }
 0x3a5   :  { %5807 = vmatpush1.bf16.msra.mxu1 %v7851_v7  ;;  %v7949_v7 = vld [vmem:[#allocation11 + $0x74] ss:$8 sps:$4 sm:$0xff]  }
 0x3a6   :  { %5817 = vmatprep.subr.bf16.mxu1 %v7859_v16  ;;  %v7920_v16 = vld [vmem:[#allocation8 + $0x7c8] ss:$16 sps:$4 sm:$0xff]  }
 0x3a8   :  { %5809 = vmatmul.mubr.bf16.vlgmr.msra.gmra.mrb[12].mxu1 %v8581_v45  ;;  %v7889_v45 = vld [vmem:[#allocation8 + $0x6ac] ss:$16 sps:$4 sm:$0xff]  }
 0x3a9   :  { %5818 = vmatpush1.bf16.msra.mxu1 %v7857_v8  ;;  %v7925_v8 = vld [vmem:[#allocation8 + $0x7ec] ss:$16 sps:$4 sm:$0xff]  }
 0x3aa   :  { %5819 = vmatprep.subr.bf16.mxu1 %v7865_v9  ;;  %v7947_v9 = vld [vmem:[#allocation11 + $0x70] ss:$8 sps:$4 sm:$0xff]  }
 0x3ad   :  { %5820 = vmatpush1.bf16.msra.mxu1 %v7863_v12  ;;  %v7952_v12 = vld [vmem:[#allocation11 + $0x84] ss:$8 sps:$4 sm:$0xff]  }
 0x3ae   :  { %5821 = vmatprep.subr.bf16.mxu1 %v7871_v13  ;;  %v7923_v13 = vld [vmem:[#allocation8 + $0x7e8] ss:$16 sps:$4 sm:$0xff]  }
 0x3b1   :  { %5822 = vmatpush1.bf16.msra.mxu1 %v7869_v14  ;;  %v7950_v14 = vld [vmem:[#allocation11 + $0x80] ss:$8 sps:$4 sm:$0xff]  }
 0x3b2   :  { %5823 = vmatprep.subr.bf16.mxu1 %v7877_v50  ;;  %v7955_v50 = vld [vmem:[#allocation11 + $0x94] ss:$8 sps:$4 sm:$0xff]  }
 0x3b5   :  { %5824 = vmatpush1.bf16.msra.mxu1 %v7875_v52  ;;  %v7953_v52 = vld [vmem:[#allocation11 + $0x90] ss:$8 sps:$4 sm:$0xff]  }
 0x3b6   :  { %5825 = vmatprep.subr.bf16.mxu1 %v7883_v15  ;;  %v7958_v15 = vld [vmem:[#allocation11 + $0xa4] ss:$8 sps:$4 sm:$0xff]  }
 0x3b9   :  { %5826 = vmatpush1.bf16.msra.mxu1 %v7881_v17  ;;  %v7961_v17 = vld [vmem:[#allocation11 + $0xb4] ss:$8 sps:$4 sm:$0xff]  }
 0x3ba   :  { %5827 = vmatprep.subr.bf16.mxu1 %v7889_v45  ;;  %v7964_v45 = vld [vmem:[#allocation11 + $0xc4] ss:$8 sps:$4 sm:$0xff]  }
 0x3bb   :  { %v3941_v24 = vpop.f32.mrb[8].mxu1 }
 0x3bc   :  { %v7436_v34 = vadd.f32 %v3941_v24, %v691_v61  ;;  %v3943_v53 = vpop.f32.mrb[9].mxu1  ;;  %v7962_v61 = vld [vmem:[#allocation11 + $0xc0] ss:$8 sps:$4 sm:$0xff]  }
 0x3bd   :  { %v7437_v27 = vadd.f32 %v3943_v53, %v695_v11  ;;  %v3945_v54 = vpop.f32.mrb[10].mxu1  ;;  %5828 = vmatpush1.bf16.msra.mxu1 %v7887_v22  ;;  %v7967_v11 = vld [vmem:[#allocation11 + $0xd4] ss:$8 sps:$4 sm:$0xff]   ;;  %v7965_v22 = vld [vmem:[#allocation11 + $0xd0] ss:$8 sps:$4 sm:$0xff]  }
 0x3be   :  { %v3954_v3 = vmul.f32 0.1, %v7436_v34  ;;  %v3946_v59 = vpop.f32.mrb[11].mxu1  ;;  %5829 = vmatprep.subr.bf16.mxu1 %v7895_v23  ;;  %v7970_v23 = vld [vmem:[#allocation11 + $0xe4] ss:$8 sps:$4 sm:$0xff]  }
 0x3bf   :  { %v3955_v33 = vmul.f32 0.1, %v7437_v27  ;;  %v7968_v24 = vld [vmem:[#allocation11 + $0xe0] ss:$8 sps:$4 sm:$0xff]   ;;  %v7971_v53 = vld [vmem:[#allocation11 + $0xf0] ss:$8 sps:$4 sm:$0xff]  }
 0x3c0   :  { %v3962_v42 = vmax.f32 %v7436_v34, %v3954_v3  ;;  %v7973_v34 = vld [vmem:[#allocation11 + $0xf4] ss:$8 sps:$4 sm:$0xff]   ;;  %v8022_v54 = vld [vmem:[#allocation14 + $0x40] sm:$0xff]   ;;  %v8024_v3 = vld [vmem:[#allocation14 + $0x48] sm:$0xff]  }
 0x3c1   :  { %v3963_v36 = vmax.f32 %v7437_v27, %v3955_v33  ;;  %5830 = vmatpush1.bf16.msra.mxu1 %v7893_v29  ;;  %v7976_v27 = vld [vmem:[#allocation11 + $0x104] ss:$8 sps:$4 sm:$0xff]   ;;  %v8027_v33 = vld [vmem:[#allocation14 + $0x10] sm:$0xff]  }
 0x3c2   :  { %5831 = vmatprep.subr.bf16.mxu1 %v7901_v31  ;;  %v8592_v40 = vpack.c.bf16 %v3962_v42, %v3962_v42  ;;  %v8023_v29 = vld [vmem:[#allocation14] sm:$0xff]   ;;  %v8025_v59 = vld [vmem:[#allocation14 + $0x8] sm:$0xff]   ;;  %v8026_v31 = vld [vmem:[#allocation14 + $0x50] sm:$0xff]  }
 0x3c3   :  { %v3971_v5 = vpack.c.bf16 %v3963_v36, %v3963_v36  ;;  %v8028_v42 = vld [vmem:[#allocation14 + $0x58] sm:$0xff]  }
 0x3c4   :  { %v8029_v36 = vld [vmem:[#allocation14 + $0x18] sm:$0xff]  }
 0x3c5   :  { %5685 = vmatprep.mubr.bf16.mxu0 %v3971_v5  ;;  %5832 = vmatpush1.bf16.msra.mxu1 %v7899_v38  ;;  %v8030_v38 = vld [vmem:[#allocation14 + $0x60] sm:$0xff]  }
 0x3c6   :  { %5849 = vmatprep.mubr.bf16.mxu1 %v3971_v5  ;;  %5686 = vmatmul.mubr.bf16.vlgmr.msra.gmra.mrb[8].mxu0 %v8592_v40  ;;  %v8031_v5 = vld [vmem:[#allocation14 + $0x20] sm:$0xff]  }
 0x3c7   :  { %5833 = vmatprep.subr.bf16.mxu1 %v7904_v21  ;;  %6267 = vmatpush1.bf16.msra.mxu0 %v7926_v39  ;;  %v8032_v21 = vld [vmem:[#allocation14 + $0x68] sm:$0xff]   ;;  %v8596_v39 = vld [vmem:[#allocation10] sm:$0xf] }
 0x3c8   :  { %6268 = vmatprep.subr.bf16.mxu0 %v7931_v41  ;;  %v4237_v41 = vrot.slane %v8596_v39, %v8525_v26 }
 0x3c9   :  { %5834 = vmatpush1.bf16.msra.mxu1 %v7902_v19 }
 0x3ca   :  { %5835 = vmatprep.subr.bf16.mxu1 %v7907_v43 }
 0x3cb   :  { %6269 = vmatpush1.bf16.msra.mxu0 %v7929_v44 }
 0x3cc   :  { %6270 = vmatprep.subr.bf16.mxu0 %v7934_v47 }
 0x3cd   :  { %5836 = vmatpush1.bf16.msra.mxu1 %v7905_v28 }
 0x3ce   :  { %5837 = vmatprep.subr.bf16.mxu1 %v7910_v48 }
 0x3cf   :  { %6271 = vmatpush1.bf16.msra.mxu0 %v7932_v49 }
 0x3d0   :  { %6272 = vmatprep.subr.bf16.mxu0 %v7937_v51 }
 0x3d1   :  { %5838 = vmatpush1.bf16.msra.mxu1 %v7908_v55 }
 0x3d2   :  { %5839 = vmatprep.subr.bf16.mxu1 %v7913_v57 }
 0x3d3   :  { %6273 = vmatpush1.bf16.msra.mxu0 %v7935_v25 }
 0x3d4   :  { %6274 = vmatprep.subr.bf16.mxu0 %v7940_v60  ;;  %v7974_v60 = vld [vmem:[#allocation11 + $0x100] ss:$8 sps:$4 sm:$0xff]  }
 0x3d5   :  { %5840 = vmatpush1.bf16.msra.mxu1 %v7911_v63 }
 0x3d6   :  { %5841 = vmatprep.subr.bf16.mxu1 %v7916_v56  ;;  %v7979_v56 = vld [vmem:[#allocation11 + $0x114] ss:$8 sps:$4 sm:$0xff]  }
 0x3d7   :  { %6275 = vmatpush1.bf16.msra.mxu0 %v7938_v32  ;;  %v7977_v32 = vld [vmem:[#allocation11 + $0x110] ss:$8 sps:$4 sm:$0xff]  }
 0x3d8   :  { %6276 = vmatprep.subr.bf16.mxu0 %v7943_v0  ;;  %v7982_v0 = vld [vmem:[#allocation11 + $0x124] ss:$8 sps:$4 sm:$0xff]  }
 0x3d9   :  { %5842 = vmatpush1.bf16.msra.mxu1 %v7914_v58  ;;  %v7980_v58 = vld [vmem:[#allocation11 + $0x120] ss:$8 sps:$4 sm:$0xff]  }
 0x3da   :  { %5843 = vmatprep.subr.bf16.mxu1 %v7919_v46  ;;  %v7985_v46 = vld [vmem:[#allocation11 + $0x134] ss:$8 sps:$4 sm:$0xff]  }
 0x3db   :  { %6277 = vmatpush1.bf16.msra.mxu0 %v7941_v62  ;;  %v7983_v62 = vld [vmem:[#allocation11 + $0x130] ss:$8 sps:$4 sm:$0xff]  }
 0x3dc   :  { %6278 = vmatprep.subr.bf16.mxu0 %v7946_v1  ;;  %v7988_v1 = vld [vmem:[#allocation11 + $0x144] ss:$8 sps:$4 sm:$0xff]  }
 0x3dd   :  { %5844 = vmatpush1.bf16.msra.mxu1 %v7917_v2  ;;  %v7986_v2 = vld [vmem:[#allocation11 + $0x140] ss:$8 sps:$4 sm:$0xff]  }
 0x3de   :  { %5845 = vmatprep.subr.bf16.mxu1 %v7922_v4  ;;  %v7991_v4 = vld [vmem:[#allocation11 + $0x154] ss:$8 sps:$4 sm:$0xff]  }
 0x3df   :  { %6279 = vmatpush1.bf16.msra.mxu0 %v7944_v6  ;;  %v7989_v6 = vld [vmem:[#allocation11 + $0x150] ss:$8 sps:$4 sm:$0xff]  }
 0x3e0   :  { %6280 = vmatprep.subr.bf16.mxu0 %v7949_v7  ;;  %v7994_v7 = vld [vmem:[#allocation11 + $0x164] ss:$8 sps:$4 sm:$0xff]  }
 0x3e1   :  { %5846 = vmatpush1.bf16.msra.mxu1 %v7920_v16  ;;  %v7992_v16 = vld [vmem:[#allocation11 + $0x160] ss:$8 sps:$4 sm:$0xff]  }
 0x3e2   :  { %5847 = vmatprep.subr.bf16.mxu1 %v7925_v8  ;;  %v4245_v8 = vrot.slane %v8596_v39, %v678_v37  ;;  %v8001_v37 = vld [vmem:[#allocation11 + $0x190] ss:$8 sps:$4 sm:$0xff]  }
 0x3e3   :  { %6281 = vmatpush1.bf16.msra.mxu0 %v7947_v9  ;;  %v7997_v9 = vld [vmem:[#allocation11 + $0x174] ss:$8 sps:$4 sm:$0xff]  }
 0x3e4   :  { %6282 = vmatprep.subr.bf16.mxu0 %v7952_v12 }
 0x3e5   :  { %5848 = vmatpush1.bf16.msra.mxu1 %v7923_v13 }
 0x3e6   :  { %7406 = vmatprep.subr.bf16.mxu1 %v8022_v54  ;;  %v4241_v54 = vrot.slane %v8596_v39, %v674_v35  ;;  %v8033_v35 = vld [vmem:[#allocation14 + $0x28] sm:$0xff]  }
 0x3e7   :  { %6283 = vmatpush1.bf16.msra.mxu0 %v7950_v14 }
 0x3e8   :  { %5850 = vmatmul.mubr.bf16.vlgmr.msra.gmra.mrb[12].mxu1 %v8592_v40  ;;  %6284 = vmatprep.subr.bf16.mxu0 %v7955_v50  ;;  %v4233_v40 = vrot.slane %v8596_v39, %v8520_v20  ;;  %v8035_v39 = vld [vmem:[#allocation14 + $0x30] sm:$0xff]  }
 0x3e9   :  { %7407 = vmatpush3.bf16.msra.mxu1 %v8023_v29  ;;  %v8015_v29 = vld [vmem:[#allocation11 + $0x1d4] ss:$8 sps:$4 sm:$0xff]  }
 0x3ea   :  { %7408 = vmatprep.subr.bf16.mxu1 %v8024_v3  ;;  %v8013_v3 = vld [vmem:[#allocation11 + $0x1d0] ss:$8 sps:$4 sm:$0xff]  }
 0x3eb   :  { %6285 = vmatpush1.bf16.msra.mxu0 %v7953_v52  ;;  %v7995_v52 = vld [vmem:[#allocation11 + $0x170] ss:$8 sps:$4 sm:$0xff]  }
 0x3ec   :  { %6286 = vmatprep.subr.bf16.mxu0 %v7958_v15 }
 0x3ed   :  { %7409 = vmatpush3.bf16.msra.mxu1 %v8025_v59 }
 0x3ee   :  { %7410 = vmatprep.subr.bf16.mxu1 %v8026_v31  ;;  %v8018_v31 = vld [vmem:[#allocation11 + $0x1e4] ss:$8 sps:$4 sm:$0xff]  }
 0x3ef   :  { %6287 = vmatpush1.bf16.msra.mxu0 %v7956_v30  ;;  %v8000_v30 = vld [vmem:[#allocation11 + $0x184] ss:$8 sps:$4 sm:$0xff]  }
 0x3f0   :  { %6288 = vmatprep.subr.bf16.mxu0 %v7961_v17 }
 0x3f1   :  { %7411 = vmatpush3.bf16.msra.mxu1 %v8027_v33  ;;  %v8016_v33 = vld [vmem:[#allocation11 + $0x1e0] ss:$8 sps:$4 sm:$0xff]  }
 0x3f2   :  { %7412 = vmatprep.subr.bf16.mxu1 %v8028_v42 }
 0x3f3   :  { %6289 = vmatpush1.bf16.msra.mxu0 %v7959_v18 }
 0x3f4   :  { %6290 = vmatprep.subr.bf16.mxu0 %v7964_v45  ;;  %v7998_v45 = vld [vmem:[#allocation11 + $0x180] ss:$8 sps:$4 sm:$0xff]  }
 0x3f5   :  { %7413 = vmatpush3.bf16.msra.mxu1 %v8029_v36  ;;  %v8021_v36 = vld [vmem:[#allocation11 + $0x1f4] ss:$8 sps:$4 sm:$0xff]  }
 0x3f6   :  { %7414 = vmatprep.subr.bf16.mxu1 %v8030_v38  ;;  %v8019_v38 = vld [vmem:[#allocation11 + $0x1f0] ss:$8 sps:$4 sm:$0xff]  }
 0x3f7   :  { %6291 = vmatpush1.bf16.msra.mxu0 %v7962_v61  ;;  %v8003_v61 = vld [vmem:[#allocation11 + $0x194] ss:$8 sps:$4 sm:$0xff]  }
 0x3f8   :  { %6292 = vmatprep.subr.bf16.mxu0 %v7967_v11 }
 0x3f9   :  { %7415 = vmatpush3.bf16.msra.mxu1 %v8031_v5 }
 0x3fa   :  { %7416 = vmatprep.subr.bf16.mxu1 %v8032_v21  ;;  %v8034_v21 = vld [vmem:[#allocation14 + $0x70] sm:$0xff]  }
 0x3fb   :  { %6293 = vmatpush1.bf16.msra.mxu0 %v7965_v22  ;;  %v8006_v22 = vld [vmem:[#allocation11 + $0x1a4] ss:$8 sps:$4 sm:$0xff]  }
 0x3fc   :  { %6294 = vmatprep.subr.bf16.mxu0 %v7970_v23  ;;  %v8004_v23 = vld [vmem:[#allocation11 + $0x1a0] ss:$8 sps:$4 sm:$0xff]  }
 0x3fd   :  { %7417 = vmatpush3.bf16.msra.mxu1 %v8033_v35 }
 0x3fe   :  { %7418 = vmatprep.subr.bf16.mxu1 %v8034_v21 }
 0x3ff   :  { %6295 = vmatpush1.bf16.msra.mxu0 %v7968_v24  ;;  %v8009_v24 = vld [vmem:[#allocation11 + $0x1b4] ss:$8 sps:$4 sm:$0xff]  }
 0x400   :  { %6296 = vmatprep.subr.bf16.mxu0 %v7973_v34  ;;  %v8007_v34 = vld [vmem:[#allocation11 + $0x1b0] ss:$8 sps:$4 sm:$0xff]  }
 0x401   :  { %7419 = vmatpush3.bf16.msra.mxu1 %v8035_v39 }
 0x403   :  { %6297 = vmatpush1.bf16.msra.mxu0 %v7971_v53  ;;  %v8012_v53 = vld [vmem:[#allocation11 + $0x1c4] ss:$8 sps:$4 sm:$0xff]  }
 0x404   :  { %6307 = vmatprep.subr.bf16.mxu0 %v7976_v27  ;;  %v8010_v27 = vld [vmem:[#allocation11 + $0x1c0] ss:$8 sps:$4 sm:$0xff]  }
 0x499   :  { %v5687_v19 = vpop.f32.mrb[8].mxu0 }
 0x49a   :  { %v7438_v43 = vadd.f32 %v5687_v19, %v4233_v40  ;;  %v5689_v44 = vpop.f32.mrb[9].mxu0  ;;  %v8036_v40 = vld [vmem:[#allocation14 + $0x78] sm:$0xff]  }
 0x49b   :  { %v7439_v47 = vadd.f32 %v5689_v44, %v4237_v41  ;;  %v5691_v28 = vpop.f32.mrb[10].mxu0  ;;  %v8037_v41 = vld [vmem:[#allocation14 + $0x38] sm:$0xff]   ;;  %7420 = vmatprep.subr.bf16.mxu1 %v8036_v40 }
 0x49c   :  { %v5858_v48 = vmul.f32 0.1, %v7438_v43  ;;  %v5692_v49 = vpop.f32.mrb[11].mxu0  ;;  %7421 = vmatpush3.bf16.msra.mxu1 %v8037_v41  ;;  %v5934_v19 = vld [vmem:[#allocation13] sm:$0x3] }
 0x49d   :  { %v5859_v51 = vmul.f32 0.1, %v7439_v47  ;;  %v5943_v44 = vrot.slane %v5934_v19, %v8525_v26 }
 0x49e   :  { %v5862_v55 = vmax.f32 %v7438_v43, %v5858_v48  ;;  %v5939_v43 = vrot.slane %v5934_v19, %v8520_v20 }
 0x49f   :  { %v5863_v57 = vmax.f32 %v7439_v47, %v5859_v51 }
 0x4a0   :  { %v5866_v63 = vpack.c.bf16 %v5862_v55, %v5862_v55 }
 0x4a1   :  { %v5867_v25 = vpack.c.bf16 %v5863_v57, %v5863_v57 }
 0x4a3   :  { %6298 = vmatprep.mubr.bf16.mxu0 %v5867_v25 }
 0x4a4   :  { %6299 = vmatmul.mubr.bf16.vlgmr.msra.gmra.mrb[12].mxu0 %v5866_v63 }
 0x4a5   :  { %6308 = vmatpush1.bf16.msra.mxu0 %v7974_v60 }
 0x4a6   :  { %6309 = vmatprep.subr.bf16.mxu0 %v7979_v56 }
 0x4a9   :  { %6310 = vmatpush1.bf16.msra.mxu0 %v7977_v32 }
 0x4aa   :  { %6311 = vmatprep.subr.bf16.mxu0 %v7982_v0 }
 0x4ad   :  { %6312 = vmatpush1.bf16.msra.mxu0 %v7980_v58  ;;  %v7389_v58 = vld [vmem:[#allocation16] ss:$0 sm:$0xff] }
 0x4ae   :  { %6313 = vmatprep.subr.bf16.mxu0 %v7985_v46 }
 0x4b1   :  { %6314 = vmatpush1.bf16.msra.mxu0 %v7983_v62 }
 0x4b2   :  { %6315 = vmatprep.subr.bf16.mxu0 %v7988_v1 }
 0x4b5   :  { %6316 = vmatpush1.bf16.msra.mxu0 %v7986_v2 }
 0x4b6   :  { %6317 = vmatprep.subr.bf16.mxu0 %v7991_v4 }
 0x4b9   :  { %6318 = vmatpush1.bf16.msra.mxu0 %v7989_v6 }
 0x4ba   :  { %6319 = vmatprep.subr.bf16.mxu0 %v7994_v7 }
 0x4bb   :  { %v5851_v12 = vpop.f32.mrb[12].mxu1 }
 0x4bc   :  { %v5853_v13 = vpop.f32.mrb[13].mxu1  ;;  %v7440_v59 = vadd.f32 %v5851_v12, %v4241_v54 }
 0x4bd   :  { %v7441_v14 = vadd.f32 %v5853_v13, %v4245_v8  ;;  %6320 = vmatpush1.bf16.msra.mxu0 %v7992_v16  ;;  %v5855_v50 = vpop.f32.mrb[14].mxu1 }
 0x4be   :  { %v5856_v15 = vpop.f32.mrb[15].mxu1  ;;  %6321 = vmatprep.subr.bf16.mxu0 %v7997_v9  ;;  %v5860_v42 = vmul.f32 0.1, %v7440_v59 }
 0x4bf   :  { %v5861_v17 = vmul.f32 0.1, %v7441_v14 }
 0x4c0   :  { %v5864_v5 = vmax.f32 %v7440_v59, %v5860_v42 }
 0x4c1   :  { %v5865_v18 = vmax.f32 %v7441_v14, %v5861_v17  ;;  %6322 = vmatpush1.bf16.msra.mxu0 %v7995_v52 }
 0x4c2   :  { %6323 = vmatprep.subr.bf16.mxu0 %v8000_v30  ;;  %v5868_v10 = vpack.c.bf16 %v5864_v5, %v5864_v5 }
 0x4c3   :  { %v5869_v11 = vpack.c.bf16 %v5865_v18, %v5865_v18 }
 0x4c5   :  { %6324 = vmatpush1.bf16.msra.mxu0 %v7998_v45  ;;  %6339 = vmatprep.mubr.bf16.mxu0 %v5869_v11 }
 0x4c6   :  { %6325 = vmatprep.subr.bf16.mxu0 %v8003_v61 }
 0x4c9   :  { %6326 = vmatpush1.bf16.msra.mxu0 %v8001_v37 }
 0x4ca   :  { %6327 = vmatprep.subr.bf16.mxu0 %v8006_v22 }
 0x4cd   :  { %6328 = vmatpush1.bf16.msra.mxu0 %v8004_v23 }
 0x4ce   :  { %6329 = vmatprep.subr.bf16.mxu0 %v8009_v24 }
 0x4d1   :  { %6330 = vmatpush1.bf16.msra.mxu0 %v8007_v34 }
 0x4d2   :  { %6331 = vmatprep.subr.bf16.mxu0 %v8012_v53 }
 0x4d5   :  { %6332 = vmatpush1.bf16.msra.mxu0 %v8010_v27 }
 0x4d6   :  { %6333 = vmatprep.subr.bf16.mxu0 %v8015_v29 }
 0x4d9   :  { %6334 = vmatpush1.bf16.msra.mxu0 %v8013_v3 }
 0x4da   :  { %6335 = vmatprep.subr.bf16.mxu0 %v8018_v31 }
 0x4dd   :  { %6336 = vmatpush1.bf16.msra.mxu0 %v8016_v33 }
 0x4de   :  { %6337 = vmatprep.subr.bf16.mxu0 %v8021_v36 }
 0x4e1   :  { %6338 = vmatpush1.bf16.msra.mxu0 %v8019_v38 }
 0x4e4   :  { %6340 = vmatmul.mubr.bf16.vlgmr.msra.gmra.mrb[12].mxu0 %v5868_v10 }
 0x5b7   :  { %v6341_v47 = vpop.f32.mrb[12].mxu0 }
 0x5b8   :  { %v7442_v28 = vadd.f32 %v6341_v47, %v5939_v43  ;;  %v6343_v48 = vpop.f32.mrb[13].mxu0 }
 0x5b9   :  { %v7443_v49 = vadd.f32 %v6343_v48, %v5943_v44  ;;  %v6345_v51 = vpop.f32.mrb[14].mxu0 }
 0x5ba   :  { %v6348_v55 = vmul.f32 0.1, %v7442_v28  ;;  %v6346_v57 = vpop.f32.mrb[15].mxu0 }
 0x5bb   :  { %v6349_v25 = vmul.f32 0.1, %v7443_v49 }
 0x5bc   :  { %v6350_v60 = vmax.f32 %v7442_v28, %v6348_v55 }
 0x5bd   :  { %v6351_v63 = vmax.f32 %v7443_v49, %v6349_v25 }
 0x5be   :  { %v6352_v32 = vpack.c.bf16 %v6350_v60, %v6350_v60 }
 0x5bf   :  { %v6353_v56 = vpack.c.bf16 %v6351_v63, %v6351_v63 }
 0x5c1   :  { %6521 = vmatprep.mubr.bf16.mxu1 %v6353_v56 }
 0x5c2   :  { %6522 = vmatmul.mubr.bf16.vlgmr.msra.gmra.mrb[16].mxu1 %v6352_v32 }
 0x695   :  { %v7422_v0 = vpop.f32.mrb[16].mxu1 }
 0x696   :  { %v7423_v46 = vpop.f32.mrb[17].mxu1 }
 0x697   :  { %v7424_v20 = vadd.f32 %v7423_v46, %v7422_v0  ;;  %v7425_v26 = vpop.f32.mrb[18].mxu1 }
 0x698   :  { %v7426_v62 = vpop.f32.mrb[19].mxu1 }
 0x699   :  { %v6524_v1 = vadd.f32 %v7424_v20, %v7389_v58 }
 0x69b   :  { %6529 = vst [vmem:[#allocation17] sm:$0xff] %v6524_v1 }
 0x69c   :  { %8248 = shalt.err (!%p8245_p6)
}
 0x69d   :  { %s8249_s22 = scalar_lea.hbm %s8631_s9, 128 }
 0x69e   :  { %p8250_p7 = scmp.ne.s32.totalorder %s8631_s9, %s8249_s22  ;;  %p8253_p8 = scmp.lt.u32.totalorder %s8249_s22, %s8631_s9 }
 0x6a0   :  { %p8255_p9 = pnand %p8253_p8, %p8250_p7 }
 0x6a2   :  { %8258 = shalt.err (!%p8255_p9)
}
 0x6a3   :  { %6539 = dma.vmem_to_hbm [thread:$0]  %s6537_s24, 128, %s8631_s9, [#allocation4]  }
 0x6a4   :  { %8269 = dma.done.wait [#allocation4], 128  }
 0x6a5   :  { %8270 = vsyncadd [#allocation4], 4294967168 }
 0x6a6   :  { %6543 = vsyncpa [#allocation3], 1 }
 0x6a7   :  { %6544 = vsyncpa [#allocation6], 1 }
 0x6a8   :  { %6545 = vsyncpa [#allocation9], 1 }
 0x6a9   :  { %6546 = vsyncpa [#allocation12], 1 }
 0x6aa   :  { %6547 = vsyncpa [#allocation15], 1 }
 0x6ab   :  { %6548 = vsyncpa [#allocation4], 1 }

</bundles_post_ra>
